<compile_context>
chip_gen: v7x
topology: tpu7x:2x2x1
jax: 0.10.0
libtpu: 0.0.40
codegen_flags: <defaults>
</compile_context>

<pallas_src>
import jax
import jax.numpy as jnp
from jax.experimental import pallas as pl
from jax.experimental.pallas import tpu as pltpu

LAYERS = 4
UNITS = 128
OUT_DIM = 1            # module default; softmax path not exercised
BN_EPS = 1e-5          # torch BatchNorm1d default
_HP = jax.lax.Precision.HIGHEST

# Contract last dim of lhs with last dim of rhs:  W[u,i] . x[b,i] -> [u,b]
_NT_DIMS = (((1,), (1,)), ((), ()))


def gc_distance_kernel(x_ref, w_ref, b_ref, gamma_ref, beta_ref,
                       wout_ref, bout_ref, o_ref):
    # x_ref:     [B, UNITS]             (module input orientation)
    # w_ref:     [LAYERS, UNITS, UNITS] torch layout (out, in)
    # b_ref:     [LAYERS, UNITS, 1]
    # gamma/beta:[LAYERS, UNITS, 1]
    # wout_ref:  [UNITS, 1]
    # bout_ref:  [1, 1]
    # o_ref:     [1, B]                 lane-dense output (batch on lanes)
    B = x_ref.shape[0]
    inv_b = jnp.float32(1.0 / B)

    xT = None                                         # [UNITS, B] between layers
    for l in range(LAYERS):                           # static unroll
        if l == 0:
            # Fold the [B,U] -> [U,B] layout flip into the first matmul.
            h = jax.lax.dot_general(
                w_ref[0], x_ref[...], dimension_numbers=_NT_DIMS,
                preferred_element_type=jnp.float32, precision=_HP)   # [U, B]
        else:
            h = jnp.dot(w_ref[l], xT,
                        preferred_element_type=jnp.float32, precision=_HP)  # [U, B]
        h = jnp.maximum(h + b_ref[l], 0.0)            # bias + ReLU

        # BatchNorm1d (training mode): batch stats over the lane (batch) axis,
        # one sweep producing sum and sumsq; biased variance, eps=1e-5.
        mean = jnp.sum(h, axis=1, keepdims=True) * inv_b              # [U, 1]
        ex2 = jnp.sum(h * h, axis=1, keepdims=True) * inv_b           # [U, 1]
        var = jnp.maximum(ex2 - mean * mean, 0.0)                     # cancellation guard
        scale = gamma_ref[l] * jax.lax.rsqrt(var + BN_EPS)            # [U, 1]
        shift = beta_ref[l] - mean * scale                            # [U, 1]

        if l < LAYERS - 1:
            xT = h * scale + shift                    # fused affine: 2 slab passes
        else:
            # Fold last-layer BN affine into the output head:
            #   out[b] = sum_u (h*scale + shift)[u,b] * w_out[u] + b_out
            #          = sum_u h[u,b] * (w_out*scale)[u] + (sum_u w_out[u]*shift[u] + b_out)
            w_fold = wout_ref[...] * scale                            # [U, 1]
            c_fold = jnp.sum(wout_ref[...] * shift) + bout_ref[0, 0]  # scalar
            o_ref[...] = jnp.sum(h * w_fold, axis=0, keepdims=True) + c_fold  # [1, B]


@jax.jit
def gc_distance_forward(x, w, b, gamma, beta, w_out, b_out):
    B = x.shape[0]
    out = pl.pallas_call(
        gc_distance_kernel,
        out_shape=jax.ShapeDtypeStruct((1, B), jnp.float32),
        in_specs=[pl.BlockSpec(memory_space=pltpu.MemorySpace.VMEM)] * 7,
        out_specs=pl.BlockSpec(memory_space=pltpu.MemorySpace.VMEM),
        compiler_params=pltpu.CompilerParams(
            vmem_limit_bytes=32 * 1024 * 1024),
    )(x, w, b, gamma, beta, w_out, b_out)
    # PyTorch `.squeeze()` for out_dim == 1 -> shape [B]
    return out[0]


def gc_distance_reference(x, w, b, gamma, beta, w_out, b_out):
    """Pure-JAX reference matching PyTorch semantics (f32, torch-layout weights)."""
    for l in range(LAYERS):
        h = jnp.maximum(
            jnp.einsum('bi,oi->bo', x, w[l], precision=_HP) + b[l][:, 0], 0.0)
        mean = jnp.mean(h, axis=0)
        var = jnp.mean((h - mean) ** 2, axis=0)        # biased (training-mode BN)
        x = (h - mean) / jnp.sqrt(var + BN_EPS) * gamma[l][:, 0] + beta[l][:, 0]
    out = jnp.dot(x, w_out, precision=_HP) + b_out     # [B, 1]
    return out[:, 0]                                   # .squeeze()


if __name__ == "__main__":
    B = 8  # batch size (> 1 so BatchNorm batch statistics are well defined)
    key = jax.random.PRNGKey(0)
    k_x, k_w, k_b, k_wo, k_bo = jax.random.split(key, 5)

    # deterministic synthetic parameters (torch layouts, reshaped for the kernel)
    x = jax.random.normal(k_x, (B, UNITS), dtype=jnp.float32)
    w = jax.random.normal(k_w, (LAYERS, UNITS, UNITS), dtype=jnp.float32) * 0.05  # [out, in]
    b = jax.random.normal(k_b, (LAYERS, UNITS, 1), dtype=jnp.float32) * 0.05
    gamma = jnp.ones((LAYERS, UNITS, 1), dtype=jnp.float32)   # BN default affine init
    beta = jnp.zeros((LAYERS, UNITS, 1), dtype=jnp.float32)
    w_out = jax.random.normal(k_wo, (UNITS, OUT_DIM), dtype=jnp.float32) * 0.05
    b_out = jax.random.normal(k_bo, (1, OUT_DIM), dtype=jnp.float32) * 0.05

    out = jax.block_until_ready(gc_distance_forward(x, w, b, gamma, beta, w_out, b_out))
    ref = gc_distance_reference(x, w, b, gamma, beta, w_out, b_out)

    assert out.shape == ref.shape, (out.shape, ref.shape)
    assert jnp.allclose(out, ref, atol=1e-4, rtol=1e-4), (out, ref)
    print("KERNEL_OK")
</pallas_src>

<mosaic_0001>
module attributes {stable_mosaic.version = 11 : i64} {
  func.func @gc_distance_kernel(%arg0: memref<8x128xf32, #tpu.memory_space<vmem>>, %arg1: memref<4x128x128xf32, #tpu.memory_space<vmem>>, %arg2: memref<4x128x1xf32, #tpu.memory_space<vmem>>, %arg3: memref<4x128x1xf32, #tpu.memory_space<vmem>>, %arg4: memref<4x128x1xf32, #tpu.memory_space<vmem>>, %arg5: memref<128x1xf32, #tpu.memory_space<vmem>>, %arg6: memref<1x1xf32, #tpu.memory_space<vmem>>, %arg7: memref<1x8xf32, #tpu.memory_space<vmem>>) attributes {dimension_semantics = [], scalar_prefetch = 0 : i64, scratch_operands = 0 : i64, tpu.core_type = #tpu.core_type<tc>} {
    %c0 = arith.constant 0 : index
    %c0_0 = arith.constant 0 : index
    %c0_1 = arith.constant 0 : index
    %0 = vector.load %arg1[%c0, %c0_0, %c0_1] : memref<4x128x128xf32, #tpu.memory_space<vmem>>, vector<1x128x128xf32>
    %1 = vector.shape_cast %0 : vector<1x128x128xf32> to vector<128x128xf32>
    %c0_2 = arith.constant 0 : index
    %c0_3 = arith.constant 0 : index
    %2 = vector.load %arg0[%c0_2, %c0_3] : memref<8x128xf32, #tpu.memory_space<vmem>>, vector<8x128xf32>
    %cst = arith.constant dense<0.000000e+00> : vector<128x8xf32>
    %3 = tpu.matmul %1, %2, %cst {dimension_numbers = #tpu.dot_dimension_numbers<[1], [1], [0], [0], [0, 0, 1, 0], [], []>, precision = #tpu.contract_precision<fp32>} : vector<128x128xf32>, vector<8x128xf32>, vector<128x8xf32> -> vector<128x8xf32>
    %c0_4 = arith.constant 0 : index
    %c0_5 = arith.constant 0 : index
    %c0_6 = arith.constant 0 : index
    %4 = vector.load %arg2[%c0_4, %c0_5, %c0_6] : memref<4x128x1xf32, #tpu.memory_space<vmem>>, vector<1x128x1xf32>
    %5 = vector.shape_cast %4 : vector<1x128x1xf32> to vector<128x1xf32>
    %6 = vector.broadcast %5 : vector<128x1xf32> to vector<128x8xf32>
    %7 = arith.addf %3, %6 : vector<128x8xf32>
    %cst_7 = arith.constant 0.000000e+00 : f32
    %8 = vector.broadcast %cst_7 : f32 to vector<128x8xf32>
    %9 = arith.maximumf %7, %8 : vector<128x8xf32>
    %cst_8 = arith.constant dense<0.000000e+00> : vector<128xf32>
    %10 = vector.multi_reduction <add>, %9, %cst_8 [1] : vector<128x8xf32> to vector<128xf32>
    %11 = vector.shape_cast %10 : vector<128xf32> to vector<128x1xf32>
    %cst_9 = arith.constant 1.250000e-01 : f32
    %12 = vector.broadcast %cst_9 : f32 to vector<128x1xf32>
    %13 = arith.mulf %11, %12 : vector<128x1xf32>
    %14 = arith.mulf %9, %9 : vector<128x8xf32>
    %cst_10 = arith.constant dense<0.000000e+00> : vector<128xf32>
    %15 = vector.multi_reduction <add>, %14, %cst_10 [1] : vector<128x8xf32> to vector<128xf32>
    %16 = vector.shape_cast %15 : vector<128xf32> to vector<128x1xf32>
    %cst_11 = arith.constant 1.250000e-01 : f32
    %17 = vector.broadcast %cst_11 : f32 to vector<128x1xf32>
    %18 = arith.mulf %16, %17 : vector<128x1xf32>
    %19 = arith.mulf %13, %13 : vector<128x1xf32>
    %20 = arith.subf %18, %19 : vector<128x1xf32>
    %cst_12 = arith.constant 0.000000e+00 : f32
    %21 = vector.broadcast %cst_12 : f32 to vector<128x1xf32>
    %22 = arith.maximumf %20, %21 : vector<128x1xf32>
    %c0_13 = arith.constant 0 : index
    %c0_14 = arith.constant 0 : index
    %c0_15 = arith.constant 0 : index
    %23 = vector.load %arg3[%c0_13, %c0_14, %c0_15] : memref<4x128x1xf32, #tpu.memory_space<vmem>>, vector<1x128x1xf32>
    %24 = vector.shape_cast %23 : vector<1x128x1xf32> to vector<128x1xf32>
    %cst_16 = arith.constant 9.99999974E-6 : f32
    %25 = vector.broadcast %cst_16 : f32 to vector<128x1xf32>
    %26 = arith.addf %22, %25 : vector<128x1xf32>
    %27 = math.rsqrt %26 : vector<128x1xf32>
    %28 = arith.mulf %24, %27 : vector<128x1xf32>
    %c0_17 = arith.constant 0 : index
    %c0_18 = arith.constant 0 : index
    %c0_19 = arith.constant 0 : index
    %29 = vector.load %arg4[%c0_17, %c0_18, %c0_19] : memref<4x128x1xf32, #tpu.memory_space<vmem>>, vector<1x128x1xf32>
    %30 = vector.shape_cast %29 : vector<1x128x1xf32> to vector<128x1xf32>
    %31 = arith.mulf %13, %28 : vector<128x1xf32>
    %32 = arith.subf %30, %31 : vector<128x1xf32>
    %33 = vector.broadcast %28 : vector<128x1xf32> to vector<128x8xf32>
    %34 = arith.mulf %9, %33 : vector<128x8xf32>
    %35 = vector.broadcast %32 : vector<128x1xf32> to vector<128x8xf32>
    %36 = arith.addf %34, %35 : vector<128x8xf32>
    %c1 = arith.constant 1 : index
    %c0_20 = arith.constant 0 : index
    %c0_21 = arith.constant 0 : index
    %37 = vector.load %arg1[%c1, %c0_20, %c0_21] : memref<4x128x128xf32, #tpu.memory_space<vmem>>, vector<1x128x128xf32>
    %38 = vector.shape_cast %37 : vector<1x128x128xf32> to vector<128x128xf32>
    %cst_22 = arith.constant dense<0.000000e+00> : vector<128x8xf32>
    %39 = tpu.matmul %38, %36, %cst_22 {dimension_numbers = #tpu.dot_dimension_numbers<[1], [0], [0], [1], [0, 0, 1, 1], [], []>, precision = #tpu.contract_precision<fp32>} : vector<128x128xf32>, vector<128x8xf32>, vector<128x8xf32> -> vector<128x8xf32>
    %c1_23 = arith.constant 1 : index
    %c0_24 = arith.constant 0 : index
    %c0_25 = arith.constant 0 : index
    %40 = vector.load %arg2[%c1_23, %c0_24, %c0_25] : memref<4x128x1xf32, #tpu.memory_space<vmem>>, vector<1x128x1xf32>
    %41 = vector.shape_cast %40 : vector<1x128x1xf32> to vector<128x1xf32>
    %42 = vector.broadcast %41 : vector<128x1xf32> to vector<128x8xf32>
    %43 = arith.addf %39, %42 : vector<128x8xf32>
    %cst_26 = arith.constant 0.000000e+00 : f32
    %44 = vector.broadcast %cst_26 : f32 to vector<128x8xf32>
    %45 = arith.maximumf %43, %44 : vector<128x8xf32>
    %cst_27 = arith.constant dense<0.000000e+00> : vector<128xf32>
    %46 = vector.multi_reduction <add>, %45, %cst_27 [1] : vector<128x8xf32> to vector<128xf32>
    %47 = vector.shape_cast %46 : vector<128xf32> to vector<128x1xf32>
    %cst_28 = arith.constant 1.250000e-01 : f32
    %48 = vector.broadcast %cst_28 : f32 to vector<128x1xf32>
    %49 = arith.mulf %47, %48 : vector<128x1xf32>
    %50 = arith.mulf %45, %45 : vector<128x8xf32>
    %cst_29 = arith.constant dense<0.000000e+00> : vector<128xf32>
    %51 = vector.multi_reduction <add>, %50, %cst_29 [1] : vector<128x8xf32> to vector<128xf32>
    %52 = vector.shape_cast %51 : vector<128xf32> to vector<128x1xf32>
    %cst_30 = arith.constant 1.250000e-01 : f32
    %53 = vector.broadcast %cst_30 : f32 to vector<128x1xf32>
    %54 = arith.mulf %52, %53 : vector<128x1xf32>
    %55 = arith.mulf %49, %49 : vector<128x1xf32>
    %56 = arith.subf %54, %55 : vector<128x1xf32>
    %cst_31 = arith.constant 0.000000e+00 : f32
    %57 = vector.broadcast %cst_31 : f32 to vector<128x1xf32>
    %58 = arith.maximumf %56, %57 : vector<128x1xf32>
    %c1_32 = arith.constant 1 : index
    %c0_33 = arith.constant 0 : index
    %c0_34 = arith.constant 0 : index
    %59 = vector.load %arg3[%c1_32, %c0_33, %c0_34] : memref<4x128x1xf32, #tpu.memory_space<vmem>>, vector<1x128x1xf32>
    %60 = vector.shape_cast %59 : vector<1x128x1xf32> to vector<128x1xf32>
    %cst_35 = arith.constant 9.99999974E-6 : f32
    %61 = vector.broadcast %cst_35 : f32 to vector<128x1xf32>
    %62 = arith.addf %58, %61 : vector<128x1xf32>
    %63 = math.rsqrt %62 : vector<128x1xf32>
    %64 = arith.mulf %60, %63 : vector<128x1xf32>
    %c1_36 = arith.constant 1 : index
    %c0_37 = arith.constant 0 : index
    %c0_38 = arith.constant 0 : index
    %65 = vector.load %arg4[%c1_36, %c0_37, %c0_38] : memref<4x128x1xf32, #tpu.memory_space<vmem>>, vector<1x128x1xf32>
    %66 = vector.shape_cast %65 : vector<1x128x1xf32> to vector<128x1xf32>
    %67 = arith.mulf %49, %64 : vector<128x1xf32>
    %68 = arith.subf %66, %67 : vector<128x1xf32>
    %69 = vector.broadcast %64 : vector<128x1xf32> to vector<128x8xf32>
    %70 = arith.mulf %45, %69 : vector<128x8xf32>
    %71 = vector.broadcast %68 : vector<128x1xf32> to vector<128x8xf32>
    %72 = arith.addf %70, %71 : vector<128x8xf32>
    %c2 = arith.constant 2 : index
    %c0_39 = arith.constant 0 : index
    %c0_40 = arith.constant 0 : index
    %73 = vector.load %arg1[%c2, %c0_39, %c0_40] : memref<4x128x128xf32, #tpu.memory_space<vmem>>, vector<1x128x128xf32>
    %74 = vector.shape_cast %73 : vector<1x128x128xf32> to vector<128x128xf32>
    %cst_41 = arith.constant dense<0.000000e+00> : vector<128x8xf32>
    %75 = tpu.matmul %74, %72, %cst_41 {dimension_numbers = #tpu.dot_dimension_numbers<[1], [0], [0], [1], [0, 0, 1, 1], [], []>, precision = #tpu.contract_precision<fp32>} : vector<128x128xf32>, vector<128x8xf32>, vector<128x8xf32> -> vector<128x8xf32>
    %c2_42 = arith.constant 2 : index
    %c0_43 = arith.constant 0 : index
    %c0_44 = arith.constant 0 : index
    %76 = vector.load %arg2[%c2_42, %c0_43, %c0_44] : memref<4x128x1xf32, #tpu.memory_space<vmem>>, vector<1x128x1xf32>
    %77 = vector.shape_cast %76 : vector<1x128x1xf32> to vector<128x1xf32>
    %78 = vector.broadcast %77 : vector<128x1xf32> to vector<128x8xf32>
    %79 = arith.addf %75, %78 : vector<128x8xf32>
    %cst_45 = arith.constant 0.000000e+00 : f32
    %80 = vector.broadcast %cst_45 : f32 to vector<128x8xf32>
    %81 = arith.maximumf %79, %80 : vector<128x8xf32>
    %cst_46 = arith.constant dense<0.000000e+00> : vector<128xf32>
    %82 = vector.multi_reduction <add>, %81, %cst_46 [1] : vector<128x8xf32> to vector<128xf32>
    %83 = vector.shape_cast %82 : vector<128xf32> to vector<128x1xf32>
    %cst_47 = arith.constant 1.250000e-01 : f32
    %84 = vector.broadcast %cst_47 : f32 to vector<128x1xf32>
    %85 = arith.mulf %83, %84 : vector<128x1xf32>
    %86 = arith.mulf %81, %81 : vector<128x8xf32>
    %cst_48 = arith.constant dense<0.000000e+00> : vector<128xf32>
    %87 = vector.multi_reduction <add>, %86, %cst_48 [1] : vector<128x8xf32> to vector<128xf32>
    %88 = vector.shape_cast %87 : vector<128xf32> to vector<128x1xf32>
    %cst_49 = arith.constant 1.250000e-01 : f32
    %89 = vector.broadcast %cst_49 : f32 to vector<128x1xf32>
    %90 = arith.mulf %88, %89 : vector<128x1xf32>
    %91 = arith.mulf %85, %85 : vector<128x1xf32>
    %92 = arith.subf %90, %91 : vector<128x1xf32>
    %cst_50 = arith.constant 0.000000e+00 : f32
    %93 = vector.broadcast %cst_50 : f32 to vector<128x1xf32>
    %94 = arith.maximumf %92, %93 : vector<128x1xf32>
    %c2_51 = arith.constant 2 : index
    %c0_52 = arith.constant 0 : index
    %c0_53 = arith.constant 0 : index
    %95 = vector.load %arg3[%c2_51, %c0_52, %c0_53] : memref<4x128x1xf32, #tpu.memory_space<vmem>>, vector<1x128x1xf32>
    %96 = vector.shape_cast %95 : vector<1x128x1xf32> to vector<128x1xf32>
    %cst_54 = arith.constant 9.99999974E-6 : f32
    %97 = vector.broadcast %cst_54 : f32 to vector<128x1xf32>
    %98 = arith.addf %94, %97 : vector<128x1xf32>
    %99 = math.rsqrt %98 : vector<128x1xf32>
    %100 = arith.mulf %96, %99 : vector<128x1xf32>
    %c2_55 = arith.constant 2 : index
    %c0_56 = arith.constant 0 : index
    %c0_57 = arith.constant 0 : index
    %101 = vector.load %arg4[%c2_55, %c0_56, %c0_57] : memref<4x128x1xf32, #tpu.memory_space<vmem>>, vector<1x128x1xf32>
    %102 = vector.shape_cast %101 : vector<1x128x1xf32> to vector<128x1xf32>
    %103 = arith.mulf %85, %100 : vector<128x1xf32>
    %104 = arith.subf %102, %103 : vector<128x1xf32>
    %105 = vector.broadcast %100 : vector<128x1xf32> to vector<128x8xf32>
    %106 = arith.mulf %81, %105 : vector<128x8xf32>
    %107 = vector.broadcast %104 : vector<128x1xf32> to vector<128x8xf32>
    %108 = arith.addf %106, %107 : vector<128x8xf32>
    %c3 = arith.constant 3 : index
    %c0_58 = arith.constant 0 : index
    %c0_59 = arith.constant 0 : index
    %109 = vector.load %arg1[%c3, %c0_58, %c0_59] : memref<4x128x128xf32, #tpu.memory_space<vmem>>, vector<1x128x128xf32>
    %110 = vector.shape_cast %109 : vector<1x128x128xf32> to vector<128x128xf32>
    %cst_60 = arith.constant dense<0.000000e+00> : vector<128x8xf32>
    %111 = tpu.matmul %110, %108, %cst_60 {dimension_numbers = #tpu.dot_dimension_numbers<[1], [0], [0], [1], [0, 0, 1, 1], [], []>, precision = #tpu.contract_precision<fp32>} : vector<128x128xf32>, vector<128x8xf32>, vector<128x8xf32> -> vector<128x8xf32>
    %c3_61 = arith.constant 3 : index
    %c0_62 = arith.constant 0 : index
    %c0_63 = arith.constant 0 : index
    %112 = vector.load %arg2[%c3_61, %c0_62, %c0_63] : memref<4x128x1xf32, #tpu.memory_space<vmem>>, vector<1x128x1xf32>
    %113 = vector.shape_cast %112 : vector<1x128x1xf32> to vector<128x1xf32>
    %114 = vector.broadcast %113 : vector<128x1xf32> to vector<128x8xf32>
    %115 = arith.addf %111, %114 : vector<128x8xf32>
    %cst_64 = arith.constant 0.000000e+00 : f32
    %116 = vector.broadcast %cst_64 : f32 to vector<128x8xf32>
    %117 = arith.maximumf %115, %116 : vector<128x8xf32>
    %cst_65 = arith.constant dense<0.000000e+00> : vector<128xf32>
    %118 = vector.multi_reduction <add>, %117, %cst_65 [1] : vector<128x8xf32> to vector<128xf32>
    %119 = vector.shape_cast %118 : vector<128xf32> to vector<128x1xf32>
    %cst_66 = arith.constant 1.250000e-01 : f32
    %120 = vector.broadcast %cst_66 : f32 to vector<128x1xf32>
    %121 = arith.mulf %119, %120 : vector<128x1xf32>
    %122 = arith.mulf %117, %117 : vector<128x8xf32>
    %cst_67 = arith.constant dense<0.000000e+00> : vector<128xf32>
    %123 = vector.multi_reduction <add>, %122, %cst_67 [1] : vector<128x8xf32> to vector<128xf32>
    %124 = vector.shape_cast %123 : vector<128xf32> to vector<128x1xf32>
    %cst_68 = arith.constant 1.250000e-01 : f32
    %125 = vector.broadcast %cst_68 : f32 to vector<128x1xf32>
    %126 = arith.mulf %124, %125 : vector<128x1xf32>
    %127 = arith.mulf %121, %121 : vector<128x1xf32>
    %128 = arith.subf %126, %127 : vector<128x1xf32>
    %cst_69 = arith.constant 0.000000e+00 : f32
    %129 = vector.broadcast %cst_69 : f32 to vector<128x1xf32>
    %130 = arith.maximumf %128, %129 : vector<128x1xf32>
    %c3_70 = arith.constant 3 : index
    %c0_71 = arith.constant 0 : index
    %c0_72 = arith.constant 0 : index
    %131 = vector.load %arg3[%c3_70, %c0_71, %c0_72] : memref<4x128x1xf32, #tpu.memory_space<vmem>>, vector<1x128x1xf32>
    %132 = vector.shape_cast %131 : vector<1x128x1xf32> to vector<128x1xf32>
    %cst_73 = arith.constant 9.99999974E-6 : f32
    %133 = vector.broadcast %cst_73 : f32 to vector<128x1xf32>
    %134 = arith.addf %130, %133 : vector<128x1xf32>
    %135 = math.rsqrt %134 : vector<128x1xf32>
    %136 = arith.mulf %132, %135 : vector<128x1xf32>
    %c3_74 = arith.constant 3 : index
    %c0_75 = arith.constant 0 : index
    %c0_76 = arith.constant 0 : index
    %137 = vector.load %arg4[%c3_74, %c0_75, %c0_76] : memref<4x128x1xf32, #tpu.memory_space<vmem>>, vector<1x128x1xf32>
    %138 = vector.shape_cast %137 : vector<1x128x1xf32> to vector<128x1xf32>
    %139 = arith.mulf %121, %136 : vector<128x1xf32>
    %140 = arith.subf %138, %139 : vector<128x1xf32>
    %c0_77 = arith.constant 0 : index
    %c0_78 = arith.constant 0 : index
    %141 = vector.load %arg5[%c0_77, %c0_78] : memref<128x1xf32, #tpu.memory_space<vmem>>, vector<128x1xf32>
    %142 = arith.mulf %141, %136 : vector<128x1xf32>
    %c0_79 = arith.constant 0 : index
    %c0_80 = arith.constant 0 : index
    %143 = vector.load %arg5[%c0_79, %c0_80] : memref<128x1xf32, #tpu.memory_space<vmem>>, vector<128x1xf32>
    %144 = arith.mulf %143, %140 : vector<128x1xf32>
    %145 = vector.shape_cast %144 : vector<128x1xf32> to vector<1x128x1xf32>
    %cst_81 = arith.constant dense<0.000000e+00> : vector<1xf32>
    %146 = vector.multi_reduction <add>, %145, %cst_81 [1, 2] : vector<1x128x1xf32> to vector<1xf32>
    %147 = vector.shape_cast %146 : vector<1xf32> to vector<1x1x1xf32>
    %148 = vector.extract %147[0, 0, 0] : f32 from vector<1x1x1xf32>
    %c0_82 = arith.constant 0 : index
    %c0_83 = arith.constant 0 : index
    %149 = vector.load %arg6[%c0_82, %c0_83] : memref<1x1xf32, #tpu.memory_space<vmem>>, vector<1x1xf32>
    %150 = vector.extract %149[0, 0] : f32 from vector<1x1xf32>
    %151 = arith.addf %148, %150 : f32
    %152 = vector.broadcast %142 : vector<128x1xf32> to vector<128x8xf32>
    %153 = arith.mulf %117, %152 : vector<128x8xf32>
    %cst_84 = arith.constant dense<0.000000e+00> : vector<8xf32>
    %154 = vector.multi_reduction <add>, %153, %cst_84 [0] : vector<128x8xf32> to vector<8xf32>
    %155 = vector.shape_cast %154 : vector<8xf32> to vector<1x8xf32>
    %156 = vector.broadcast %151 : f32 to vector<1x8xf32>
    %157 = arith.addf %155, %156 : vector<1x8xf32>
    %c0_85 = arith.constant 0 : index
    %c0_86 = arith.constant 0 : index
    %158 = vector.load %arg7[%c0_85, %c0_86] : memref<1x8xf32, #tpu.memory_space<vmem>>, vector<1x8xf32>
    tpu.vector_store %arg7[%c0_85, %c0_86], %157 {strides = array<i32>} : memref<1x8xf32, #tpu.memory_space<vmem>>, vector<1x8xf32>,
    return
  }
}

</mosaic_0001>

<bundles_post_ra>
// kernel: gc_distance_forward.1
= control target key start
LH: loop header
LB: loop body
LE: loop exit
PB: predicated region body
PF: predicated region fallthrough
CT: control target
= control target key end

     0   :  { %s14232_s0 = inlined_call_operand.vmem [shape: f32[8,128], index: 0, kind: input, shape index: {}]   ;;  %s14233_s1 = inlined_call_operand.vmem [shape: f32[4,128,128], index: 1, kind: input, shape index: {}]   ;;  %s14234_s2 = inlined_call_operand.vmem [shape: f32[4,128,1], index: 2, kind: input, shape index: {}]   ;;  %s14235_s3 = inlined_call_operand.vmem [shape: f32[4,128,1], index: 3, kind: input, shape index: {}]   ;;  %s14236_s4 = inlined_call_operand.vmem [shape: f32[4,128,1], index: 4, kind: input, shape index: {}]   ;;  %s14237_s5 = inlined_call_operand.vmem [shape: f32[128,1], index: 5, kind: input, shape index: {}]   ;;  %s14238_s6 = inlined_call_operand.<no memory space> [shape: f32[1,1], index: 6, kind: input, shape index: {}]   ;;  %s14239_s7 = inlined_call_operand.hbm [shape: f32[1,8], index: 7, kind: output, shape index: {}]  }
   0x1   :  { %v12_v0 = vstv %s14238_s6 }
   0x2   :  { %13 = vst [vmem:[#allocation2] sm:$0x1] %v12_v0 }
   0x3   :  { %v45_v1 = vld [vmem:[%s14232_s0] sm:$0xff]  ;;  %v30_v3 = vld [vmem:[%s14233_s1 + $0x8] sm:$0xff]  ;;  %v31_v7 = vld [vmem:[%s14233_s1 + $0x10] sm:$0xff] }
   0x4   :  { %v29_v2 = vld [vmem:[%s14233_s1] sm:$0xff]  ;;  %v10763_v4 = vand.u32 4294901760, %v45_v1  ;;  %v10767_v6 = vand.u32 4294901760, %v30_v3  ;;  %v32_v8 = vld [vmem:[%s14233_s1 + $0x18] sm:$0xff]  ;;  %v10778_v10 = vand.u32 4294901760, %v31_v7  ;;  %v34_v13 = vld [vmem:[%s14233_s1 + $0x28] sm:$0xff] }
   0x5   :  { %v10765_v5 = vand.u32 4294901760, %v29_v2  ;;  %v33_v9 = vld [vmem:[%s14233_s1 + $0x20] sm:$0xff]  ;;  %v10780_v11 = vand.u32 4294901760, %v32_v8  ;;  %v35_v14 = vld [vmem:[%s14233_s1 + $0x30] sm:$0xff]  ;;  %v10800_v18 = vand.u32 4294901760, %v34_v13 }
   0x6   :  { %v10782_v12 = vand.u32 4294901760, %v33_v9  ;;  %8409 = vmatprep.subr.mxu0 %v10763_v4  ;;  %v10795_v16 = vsub.f32 %v30_v3, %v10767_v6  ;;  %v10798_v17 = vsub.f32 %v45_v1, %v10763_v4  ;;  %v10804_v19 = vsub.f32 %v31_v7, %v10778_v10 }
   0x7   :  { %v10792_v15 = vsub.f32 %v29_v2, %v10765_v5  ;;  %8410 = vmatpush3.xpose.msra.mxu0 %v10763_v4  ;;  %v10807_v20 = vsub.f32 %v32_v8, %v10780_v11  ;;  %v10812_v22 = vand.u32 4294901760, %v35_v14  ;;  %v10820_v26 = vsub.f32 %v34_v13, %v10800_v18 }
   0x8   :  { %v10810_v21 = vsub.f32 %v33_v9, %v10782_v12  ;;  %v220_v24 = vand.u32 4294901760, %v10795_v16  ;;  %v10817_v25 = vand.u32 4294901760, %v10798_v17  ;;  %v230_v27 = vand.u32 4294901760, %v10804_v19 }
   0x9   :  { %v210_v23 = vand.u32 4294901760, %v10792_v15  ;;  %v240_v28 = vand.u32 4294901760, %v10807_v20  ;;  %v10826_v30 = vsub.f32 %v35_v14, %v10812_v22 }
   0xa   :  { %v250_v29 = vand.u32 4294901760, %v10810_v21 }
   0xb   :  { %14 = vsyncpa [#allocation4], 0  ;;  %v211_v31 = vsub.f32 %v10792_v15, %v210_v23  ;;  %v221_v32 = vsub.f32 %v10795_v16, %v220_v24  ;;  %v372_v33 = vsub.f32 %v10798_v17, %v10817_v25  ;;  %v260_v34 = vand.u32 4294901760, %v10820_v26  ;;  %v36_v38 = vld [vmem:[%s14233_s1 + $0x38] sm:$0xff]  ;;  %v37_v39 = vld [vmem:[%s14233_s1 + $0x40] sm:$0xff]  ;;  %s10710_s13 = smov [#allocation3]  }
   0xc   :  { %v231_v35 = vsub.f32 %v10804_v19, %v230_v27  ;;  %v241_v36 = vsub.f32 %v10807_v20, %v240_v28  ;;  %v270_v37 = vand.u32 4294901760, %v10826_v30  ;;  %v38_v40 = vld [vmem:[%s14233_s1 + $0x48] sm:$0xff]  ;;  %v251_v44 = vsub.f32 %v10810_v21, %v250_v29  ;;  %v39_v45 = vld [vmem:[%s14233_s1 + $0x50] sm:$0xff]  ;;  %v40_v46 = vld [vmem:[%s14233_s1 + $0x58] sm:$0xff]  ;;  %s7531_s14 = sshll.u32 %s10710_s13, 4  ;;  %s7532_s14 = int_to_ptr.vmem [resolvable:$true] %s7531_s14 }
   0xd   :  { %v212_v41 = vand.u32 4294901760, %v211_v31  ;;  %v222_v42 = vand.u32 4294901760, %v221_v32  ;;  %v373_v43 = vand.u32 4294901760, %v372_v33  ;;  %v41_v47 = vld [vmem:[%s14233_s1 + $0x60] sm:$0xff]  ;;  %v261_v49 = vsub.f32 %v10820_v26, %v260_v34  ;;  %v42_v58 = vld [vmem:[%s14233_s1 + $0x68] sm:$0xff]  ;;  %v43_v0 = vld [vmem:[%s14233_s1 + $0x70] sm:$0xff]  ;;  %p10690_p1 = scmp.lt.s32.totalorder %s7532_s14, %s7532_s14 }
   0xe   :  { %v232_v48 = vand.u32 4294901760, %v231_v35  ;;  %v242_v50 = vand.u32 4294901760, %v241_v36  ;;  %v10868_v51 = vand.u32 4294901760, %v36_v38  ;;  %v10870_v52 = vand.u32 4294901760, %v37_v39  ;;  %v44_v36 = vld [vmem:[%s14233_s1 + $0x78] sm:$0xff]  ;;  %s10685_s15 = scalar_lea.vmem %s7532_s14, 16 }
   0xf   :  { %8411 = vmatprep.mubr.f32.mxu0 %v212_v41  ;;  %8435 = vmatprep.subr.mxu0 %v373_v43  ;;  %v10872_v53 = vand.u32 4294901760, %v38_v40  ;;  %v271_v54 = vsub.f32 %v10826_v30, %v270_v37  ;;  %v10877_v55 = vand.u32 4294901760, %v39_v45  ;;  %v10879_v56 = vand.u32 4294901760, %v40_v46  ;;  %p10686_p0 = scmp.ne.s32.totalorder %s7532_s14, %s10685_s15  ;;  %s10689_s16 = scalar_lea.vmem %s7532_s14, 32 }
  0x10   :  { %8412 = vmatmul.mubr.f32.vlgmr.msra.gmra.mrb[0].mxu0 %v222_v42  ;;  %v10881_v57 = vand.u32 4294901760, %v41_v47  ;;  %v252_v59 = vand.u32 4294901760, %v251_v44  ;;  %v10887_v60 = vsub.f32 %v36_v38, %v10868_v51  ;;  %v10890_v61 = vsub.f32 %v37_v39, %v10870_v52  ;;  %p10691_p2 = scmp.lt.s32.totalorder %s10689_s16, %s10685_s15 }
  0x11   :  { %8436 = vmatpush3.xpose.msra.mxu0 %v373_v43  ;;  %8414 = vmatprep.mubr.f32.mxu0 %v232_v48  ;;  %v10893_v62 = vsub.f32 %v38_v40, %v10872_v53  ;;  %v10896_v63 = vsub.f32 %v39_v45, %v10877_v55  ;;  %v262_v1 = vand.u32 4294901760, %v261_v49  ;;  %v10904_v7 = vand.u32 4294901760, %v42_v58 }
  0x12   :  { %8461 = vmatprep.subr.mxu0 %v10798_v17  ;;  %v280_v2 = vand.u32 4294901760, %v10887_v60  ;;  %v290_v3 = vand.u32 4294901760, %v10890_v61  ;;  %v272_v8 = vand.u32 4294901760, %v271_v54  ;;  %v10908_v13 = vsub.f32 %v40_v46, %v10879_v56  ;;  %p10692_p3 = por %p10691_p2, %p10690_p1 }
  0x13   :  { %v300_v9 = vand.u32 4294901760, %v10893_v62  ;;  %v10911_v14 = vsub.f32 %v41_v47, %v10881_v57  ;;  %v310_v33 = vand.u32 4294901760, %v10896_v63  ;;  %v10920_v35 = vand.u32 4294901760, %v43_v0 }
  0x14   :  { %8415 = vmatmul.mubr.f32.gmra.mrb[2].mxu0 %v242_v50  ;;  %v281_v31 = vsub.f32 %v10887_v60, %v280_v2  ;;  %v291_v32 = vsub.f32 %v10890_v61, %v290_v3  ;;  %v10926_v38 = vsub.f32 %v42_v58, %v10904_v7  ;;  %v320_v41 = vand.u32 4294901760, %v10908_v13  ;;  %p10693_p4 = pnand %p10692_p3, %p10686_p0 }
  0x15   :  { %8417 = vmatprep.mubr.f32.mxu0 %v252_v59  ;;  %v301_v40 = vsub.f32 %v10893_v62, %v300_v9  ;;  %v330_v42 = vand.u32 4294901760, %v10911_v14  ;;  %v311_v44 = vsub.f32 %v10896_v63, %v310_v33  ;;  %v10937_v45 = vsub.f32 %v43_v0, %v10920_v35 }
  0x16   :  { %v282_v39 = vand.u32 4294901760, %v281_v31  ;;  %v292_v43 = vand.u32 4294901760, %v291_v32  ;;  %v10939_v46 = vand.u32 4294901760, %v44_v36  ;;  %v321_v48 = vsub.f32 %v10908_v13, %v320_v41 }
  0x17   :  { %v302_v47 = vand.u32 4294901760, %v301_v40  ;;  %v340_v49 = vand.u32 4294901760, %v10926_v38  ;;  %v312_v54 = vand.u32 4294901760, %v311_v44  ;;  %v331_v58 = vsub.f32 %v10911_v14, %v330_v42 }
  0x18   :  { %8418 = vmatmul.mubr.f32.gmra.mrb[4].mxu0 %v262_v1  ;;  %v10946_v50 = vsub.f32 %v44_v36, %v10939_v46  ;;  %v350_v59 = vand.u32 4294901760, %v10937_v45  ;;  %v322_v0 = vand.u32 4294901760, %v321_v48  ;;  %v10709_v44 = vmov 0   ;;  %v47_v48 = vld [vmem:[%s14234_s2 + $0x8] sm:$0xff] }
  0x19   :  { %8420 = vmatprep.mubr.f32.mxu0 %v272_v8  ;;  %v341_v1 = vsub.f32 %v10926_v38, %v340_v49  ;;  %v332_v31 = vand.u32 4294901760, %v331_v58  ;;  %10555 = vset.pattern.permute.xlu0 %v10709_v44  ;;  %v50_v58 = vld [vmem:[%s14234_s2 + $0x20] sm:$0xff]  ;;  %vm1249_vm0 = vcmask 64512   ;;  %vm7344_vm1 = vcmask 7168  }
  0x1a   :  { %v360_v8 = vand.u32 4294901760, %v10946_v50  ;;  %v351_v32 = vsub.f32 %v10937_v45, %v350_v59  ;;  %10556 = vset.pattern.permute.xlu1 %v10709_v44  ;;  %v60_v44 = vld [vmem:[%s14234_s2 + $0x70] sm:$0xff]  ;;  %vm7523_vm2 = vcmask 57344  }
  0x1b   :  { %v342_v36 = vand.u32 4294901760, %v341_v1  ;;  %v52_v1 = vld [vmem:[%s14234_s2 + $0x30] sm:$0xff] }
  0x1c   :  { %8421 = vmatmul.mubr.f32.gmra.mrb[6].mxu0 %v282_v39  ;;  %v361_v39 = vsub.f32 %v10946_v50, %v360_v8  ;;  %v352_v40 = vand.u32 4294901760, %v351_v32  ;;  %v54_v32 = vld [vmem:[%s14234_s2 + $0x40] sm:$0xff] }
  0x1d   :  { %8423 = vmatprep.mubr.f32.mxu0 %v292_v43 }
  0x1e   :  { %v362_v43 = vand.u32 4294901760, %v361_v39  ;;  %v56_v39 = vld [vmem:[%s14234_s2 + $0x50] sm:$0xff] }
  0x20   :  { %8424 = vmatmul.mubr.f32.gmra.mrb[8].mxu0 %v302_v47  ;;  %v48_v47 = vld [vmem:[%s14234_s2 + $0x10] sm:$0xff] }
  0x21   :  { %8426 = vmatprep.mubr.f32.mxu0 %v312_v54  ;;  %74 = vperm.xlu1 %10556, %v48_v47   ;;  %v49_v54 = vld [vmem:[%s14234_s2 + $0x18] sm:$0xff] }
  0x22   :  { %v61_v47 = vld [vmem:[%s14234_s2 + $0x78] sm:$0xff] }
  0x24   :  { %8427 = vmatmul.mubr.f32.gmra.mrb[10].mxu0 %v322_v0  ;;  %v51_v0 = vld [vmem:[%s14234_s2 + $0x28] sm:$0xff] }
  0x25   :  { %8429 = vmatprep.mubr.f32.mxu0 %v332_v31  ;;  %79 = vperm.xlu1 %10556, %v49_v54   ;;  %v53_v31 = vld [vmem:[%s14234_s2 + $0x38] sm:$0xff] }
  0x28   :  { %8430 = vmatmul.mubr.f32.gmra.mrb[12].mxu0 %v342_v36  ;;  %v55_v36 = vld [vmem:[%s14234_s2 + $0x48] sm:$0xff] }
  0x29   :  { %8432 = vmatprep.mubr.f32.mxu0 %v352_v40  ;;  %89 = vperm.xlu1 %10556, %v51_v0   ;;  %v57_v40 = vld [vmem:[%s14234_s2 + $0x58] sm:$0xff] }
  0x2c   :  { %8433 = vmatmul.mubr.f32.gmra.mrb[14].mxu0 %v362_v43  ;;  %v58_v43 = vld [vmem:[%s14234_s2 + $0x60] sm:$0xff] }
  0x2d   :  { %8437 = vmatprep.mubr.f32.mxu0 %v10765_v5  ;;  %99 = vperm.xlu1 %10556, %v53_v31  }
  0x30   :  { %8438 = vmatmul.mubr.f32.vlgmr.msra.gmra.mrb[0].mxu0 %v10767_v6 }
  0x31   :  { %8462 = vmatpush3.xpose.msra.mxu0 %v10798_v17  ;;  %8440 = vmatprep.mubr.f32.mxu0 %v10778_v10  ;;  %v46_v17 = vld [vmem:[%s14234_s2] sm:$0xff] }
  0x32   :  { %8487 = vmatprep.subr.mxu0 %v10763_v4  ;;  %64 = vperm.xlu0 %10555, %v46_v17   ;;  %v59_v17 = vld [vmem:[%s14234_s2 + $0x68] sm:$0xff] }
  0x33   :  { %109 = vperm.xlu1 %10556, %v55_v36  }
  0x34   :  { %8441 = vmatmul.mubr.f32.gmra.mrb[2].mxu0 %v10780_v11 }
  0x35   :  { %8443 = vmatprep.mubr.f32.mxu0 %v10782_v12 }
  0x36   :  { %69 = vperm.xlu0 %10555, %v47_v48  }
  0x37   :  { %119 = vperm.xlu1 %10556, %v57_v40  }
  0x38   :  { %8444 = vmatmul.mubr.f32.gmra.mrb[4].mxu0 %v10800_v18 }
  0x39   :  { %8446 = vmatprep.mubr.f32.mxu0 %v10812_v22 }
  0x3a   :  { %84 = vperm.xlu0 %10555, %v50_v58  }
  0x3b   :  { %129 = vperm.xlu1 %10556, %v59_v17  }
  0x3c   :  { %8447 = vmatmul.mubr.f32.gmra.mrb[6].mxu0 %v10868_v51 }
  0x3d   :  { %8449 = vmatprep.mubr.f32.mxu0 %v10870_v52 }
  0x3e   :  { %94 = vperm.xlu0 %10555, %v52_v1  }
  0x3f   :  { %139 = vperm.xlu1 %10556, %v61_v47  }
  0x40   :  { %8450 = vmatmul.mubr.f32.gmra.mrb[8].mxu0 %v10872_v53 }
  0x41   :  { %8452 = vmatprep.mubr.f32.mxu0 %v10877_v55 }
  0x42   :  { %104 = vperm.xlu0 %10555, %v54_v32  }
  0x44   :  { %8453 = vmatmul.mubr.f32.gmra.mrb[10].mxu0 %v10879_v56 }
  0x45   :  { %8455 = vmatprep.mubr.f32.mxu0 %v10881_v57 }
  0x46   :  { %114 = vperm.xlu0 %10555, %v56_v39  }
  0x48   :  { %8456 = vmatmul.mubr.f32.gmra.mrb[12].mxu0 %v10904_v7 }
  0x49   :  { %8458 = vmatprep.mubr.f32.mxu0 %v10920_v35 }
  0x4a   :  { %124 = vperm.xlu0 %10555, %v58_v43  }
  0x4c   :  { %8459 = vmatmul.mubr.f32.gmra.mrb[14].mxu0 %v10939_v46 }
  0x4d   :  { %8463 = vmatprep.mubr.f32.mxu0 %v10792_v15 }
  0x4e   :  { %134 = vperm.xlu0 %10555, %v60_v44  }
  0x50   :  { %8464 = vmatmul.mubr.f32.vlgmr.msra.gmra.mrb[0].mxu0 %v10795_v16 }
  0x51   :  { %8488 = vmatpush3.xpose.msra.mxu0 %v10763_v4  ;;  %8466 = vmatprep.mubr.f32.mxu0 %v10804_v19 }
  0x52   :  { %8513 = vmatprep.subr.mxu0 %v10817_v25 }
  0x54   :  { %8467 = vmatmul.mubr.f32.gmra.mrb[2].mxu0 %v10807_v20 }
  0x55   :  { %8469 = vmatprep.mubr.f32.mxu0 %v10810_v21 }
  0x58   :  { %8470 = vmatmul.mubr.f32.gmra.mrb[4].mxu0 %v10820_v26 }
  0x59   :  { %8472 = vmatprep.mubr.f32.mxu0 %v10826_v30 }
  0x5c   :  { %8473 = vmatmul.mubr.f32.gmra.mrb[6].mxu0 %v10887_v60 }
  0x5d   :  { %8475 = vmatprep.mubr.f32.mxu0 %v10890_v61 }
  0x60   :  { %8476 = vmatmul.mubr.f32.gmra.mrb[8].mxu0 %v10893_v62 }
  0x61   :  { %8478 = vmatprep.mubr.f32.mxu0 %v10896_v63 }
  0x64   :  { %8479 = vmatmul.mubr.f32.gmra.mrb[10].mxu0 %v10908_v13 }
  0x65   :  { %8481 = vmatprep.mubr.f32.mxu0 %v10911_v14 }
  0x68   :  { %8482 = vmatmul.mubr.f32.gmra.mrb[12].mxu0 %v10926_v38 }
  0x69   :  { %8484 = vmatprep.mubr.f32.mxu0 %v10937_v45 }
  0x6c   :  { %8485 = vmatmul.mubr.f32.gmra.mrb[14].mxu0 %v10946_v50 }
  0x6d   :  { %8489 = vmatprep.mubr.f32.mxu0 %v210_v23 }
  0x70   :  { %8490 = vmatmul.mubr.f32.vlgmr.msra.gmra.mrb[0].mxu0 %v220_v24 }
  0x71   :  { %8514 = vmatpush3.xpose.msra.mxu0 %v10817_v25  ;;  %8492 = vmatprep.mubr.f32.mxu0 %v230_v27 }
  0x72   :  { %8539 = vmatprep.subr.mxu0 %v10763_v4 }
  0x74   :  { %8493 = vmatmul.mubr.f32.gmra.mrb[2].mxu0 %v240_v28 }
  0x75   :  { %8495 = vmatprep.mubr.f32.mxu0 %v250_v29 }
  0x78   :  { %8496 = vmatmul.mubr.f32.gmra.mrb[4].mxu0 %v260_v34 }
  0x79   :  { %8498 = vmatprep.mubr.f32.mxu0 %v270_v37 }
  0x7c   :  { %8499 = vmatmul.mubr.f32.gmra.mrb[6].mxu0 %v280_v2 }
  0x7d   :  { %8501 = vmatprep.mubr.f32.mxu0 %v290_v3 }
  0x80   :  { %8502 = vmatmul.mubr.f32.gmra.mrb[8].mxu0 %v300_v9 }
  0x81   :  { %8504 = vmatprep.mubr.f32.mxu0 %v310_v33 }
  0x84   :  { %8505 = vmatmul.mubr.f32.gmra.mrb[10].mxu0 %v320_v41 }
  0x85   :  { %8507 = vmatprep.mubr.f32.mxu0 %v330_v42 }
  0x88   :  { %8508 = vmatmul.mubr.f32.gmra.mrb[12].mxu0 %v340_v49 }
  0x89   :  { %8510 = vmatprep.mubr.f32.mxu0 %v350_v59 }
  0x8c   :  { %8511 = vmatmul.mubr.f32.gmra.mrb[14].mxu0 %v360_v8 }
  0x8d   :  { %8515 = vmatprep.mubr.f32.mxu0 %v10765_v5 }
  0x90   :  { %8516 = vmatmul.mubr.f32.vlgmr.msra.gmra.mrb[0].mxu0 %v10767_v6 }
  0x91   :  { %8540 = vmatpush3.xpose.msra.mxu0 %v10763_v4  ;;  %8518 = vmatprep.mubr.f32.mxu0 %v10778_v10 }
  0x94   :  { %8519 = vmatmul.mubr.f32.gmra.mrb[2].mxu0 %v10780_v11 }
  0x95   :  { %8521 = vmatprep.mubr.f32.mxu0 %v10782_v12 }
  0x98   :  { %8522 = vmatmul.mubr.f32.gmra.mrb[4].mxu0 %v10800_v18 }
  0x99   :  { %8524 = vmatprep.mubr.f32.mxu0 %v10812_v22 }
  0x9c   :  { %8525 = vmatmul.mubr.f32.gmra.mrb[6].mxu0 %v10868_v51 }
  0x9d   :  { %8527 = vmatprep.mubr.f32.mxu0 %v10870_v52 }
  0xa0   :  { %8528 = vmatmul.mubr.f32.gmra.mrb[8].mxu0 %v10872_v53 }
  0xa1   :  { %8530 = vmatprep.mubr.f32.mxu0 %v10877_v55 }
  0xa4   :  { %8531 = vmatmul.mubr.f32.gmra.mrb[10].mxu0 %v10879_v56 }
  0xa5   :  { %8533 = vmatprep.mubr.f32.mxu0 %v10881_v57 }
  0xa8   :  { %8534 = vmatmul.mubr.f32.gmra.mrb[12].mxu0 %v10904_v7 }
  0xa9   :  { %8536 = vmatprep.mubr.f32.mxu0 %v10920_v35 }
  0xac   :  { %8537 = vmatmul.mubr.f32.gmra.mrb[14].mxu0 %v10939_v46 }
  0xad   :  { %8541 = vmatprep.mubr.f32.mxu0 %v10765_v5 }
  0xb0   :  { %8542 = vmatmul.mubr.f32.vlgmr.msra.gmra.mrb[0].mxu0 %v10767_v6 }
  0xb1   :  { %8544 = vmatprep.mubr.f32.mxu0 %v10778_v10  ;;  %v65_v4 = vpop.permute.xlu0 %64 }
  0xb4   :  { %8545 = vmatmul.mubr.f32.gmra.mrb[2].mxu0 %v10780_v11 }
  0xb5   :  { %8547 = vmatprep.mubr.f32.mxu0 %v10782_v12  ;;  %v70_v5 = vpop.permute.xlu0 %69  ;;  %v75_v12 = vpop.permute.xlu1 %74 }
  0xb8   :  { %8548 = vmatmul.mubr.f32.gmra.mrb[4].mxu0 %v10800_v18 }
  0xb9   :  { %8550 = vmatprep.mubr.f32.mxu0 %v10812_v22  ;;  %v80_v25 = vpop.permute.xlu1 %79  ;;  %v85_v28 = vpop.permute.xlu0 %84 }
  0xbc   :  { %8551 = vmatmul.mubr.f32.gmra.mrb[6].mxu0 %v10868_v51 }
  0xbd   :  { %8553 = vmatprep.mubr.f32.mxu0 %v10870_v52  ;;  %v90_v63 = vpop.permute.xlu1 %89  ;;  %v95_v3 = vpop.permute.xlu0 %94 }
  0xc0   :  { %8554 = vmatmul.mubr.f32.gmra.mrb[8].mxu0 %v10872_v53 }
  0xc1   :  { %8556 = vmatprep.mubr.f32.mxu0 %v10877_v55  ;;  %v100_v59 = vpop.permute.xlu1 %99  ;;  %v105_v48 = vpop.permute.xlu0 %104 }
  0xc4   :  { %8557 = vmatmul.mubr.f32.gmra.mrb[10].mxu0 %v10879_v56 }
  0xc5   :  { %8559 = vmatprep.mubr.f32.mxu0 %v10881_v57 }
  0xc8   :  { %8560 = vmatmul.mubr.f32.gmra.mrb[12].mxu0 %v10904_v7 }
  0xc9   :  { %8562 = vmatprep.mubr.f32.mxu0 %v10920_v35 }
  0xcc   :  { %8563 = vmatmul.mubr.f32.gmra.mrb[14].mxu0 %v10939_v46 }
 0x183   :  { %v8543_v6 = vpop.f32.mrb[0].mxu0 }
 0x184   :  { %v10165_v10 = vadd.f32 %v8543_v6, %v70_v5  ;;  %v1139_v11 = vpop.f32.mrb[1].mxu0  ;;  %v115_v5 = vpop.permute.xlu0 %114 }
 0x185   :  { %v10166_v15 = vadd.f32 %v1139_v11, %v65_v4  ;;  %v110_v4 = vpop.permute.xlu1 %109 }
 0x186   :  { %v11113_v16 = vmax.f32 %v10165_v10, 0.0 }
 0x187   :  { %v11115_v18 = vmax.f32 %v10166_v15, 0.0  ;;  %v8546_v19 = vpop.f32.mrb[2].mxu0 }
 0x188   :  { %v1151_v20 = vpop.f32.mrb[3].mxu0  ;;  %v1253_v21 = vsel %vm1249_vm0, %v11113_v16, 0.0  ;;  %v1315_v24 = vmul.f32 %v11113_v16, %v11113_v16  ;;  %v10167_v29 = vadd.f32 %v8546_v19, %v80_v25  ;;  %v125_v25 = vpop.permute.xlu0 %124 }
 0x189   :  { %v10168_v22 = vadd.f32 %v1151_v20, %v75_v12  ;;  %1254 = vadd.xlane.f32.xlu1 %v1253_v21  ;;  %v1250_v23 = vsel %vm1249_vm0, %v11115_v18, 0.0  ;;  %v1314_v34 = vmul.f32 %v11115_v18, %v11115_v18 }
 0x18a   :  { %1251 = vadd.xlane.f32.xlu0 %v1250_v23  ;;  %v1333_v52 = vsel %vm1249_vm0, %v1315_v24, 0.0  ;;  %v11132_v56 = vmax.f32 %v10167_v29, 0.0  ;;  %v120_v24 = vpop.permute.xlu1 %119 }
 0x18b   :  { %v11123_v26 = vmax.f32 %v10168_v22, 0.0  ;;  %v8549_v27 = vpop.f32.mrb[4].mxu0  ;;  %v1330_v62 = vsel %vm1249_vm0, %v1314_v34, 0.0 }
 0x18c   :  { %v1163_v30 = vpop.f32.mrb[5].mxu0  ;;  %v10169_v7 = vadd.f32 %v8549_v27, %v90_v63  ;;  %v1259_v13 = vsel %vm1249_vm0, %v11132_v56, 0.0  ;;  %v1317_v38 = vmul.f32 %v11132_v56, %v11132_v56 }
 0x18d   :  { %v10170_v37 = vadd.f32 %v1163_v30, %v85_v28  ;;  %v1256_v51 = vsel %vm1249_vm0, %v11123_v26, 0.0  ;;  %v1316_v53 = vmul.f32 %v11123_v26, %v11123_v26 }
 0x18e   :  { %1257 = vadd.xlane.f32.xlu1 %v1256_v51  ;;  %1334 = vadd.xlane.f32.xlu0 %v1333_v52  ;;  %v11146_v42 = vmax.f32 %v10169_v7, 0.0  ;;  %v1339_v50 = vsel %vm1249_vm0, %v1317_v38, 0.0 }
 0x18f   :  { %v8552_v55 = vpop.f32.mrb[6].mxu0  ;;  %v11134_v60 = vmax.f32 %v10170_v37, 0.0  ;;  %v1336_v61 = vsel %vm1249_vm0, %v1316_v53, 0.0 }
 0x190   :  { %v1175_v57 = vpop.f32.mrb[7].mxu0  ;;  %v10171_v54 = vadd.f32 %v8552_v55, %v100_v59  ;;  %v1265_v0 = vsel %vm1249_vm0, %v11146_v42, 0.0  ;;  %v1319_v36 = vmul.f32 %v11146_v42, %v11146_v42 }
 0x191   :  { %v10172_v14 = vadd.f32 %v1175_v57, %v95_v3  ;;  %v1262_v33 = vsel %vm1249_vm0, %v11134_v60, 0.0  ;;  %v1318_v35 = vmul.f32 %v11134_v60, %v11134_v60  ;;  %v130_v57 = vpop.permute.xlu1 %129 }
 0x192   :  { %1337 = vadd.xlane.f32.xlu1 %v1336_v61  ;;  %1331 = vadd.xlane.f32.xlu0 %v1330_v62  ;;  %v11160_v40 = vmax.f32 %v10171_v54, 0.0  ;;  %v1345_v47 = vsel %vm1249_vm0, %v1319_v36, 0.0  ;;  %v135_v61 = vpop.permute.xlu0 %134 }
 0x193   :  { %v8555_v2 = vpop.f32.mrb[8].mxu0  ;;  %v11148_v46 = vmax.f32 %v10172_v14, 0.0  ;;  %v1342_v49 = vsel %vm1249_vm0, %v1318_v35, 0.0 }
 0x194   :  { %v1187_v9 = vpop.f32.mrb[9].mxu0  ;;  %v10173_v6 = vadd.f32 %v8555_v2, %v110_v4  ;;  %v1271_v10 = vsel %vm1249_vm0, %v11160_v40, 0.0  ;;  %v1321_v19 = vmul.f32 %v11160_v40, %v11160_v40 }
 0x195   :  { %v10174_v1 = vadd.f32 %v1187_v9, %v105_v48  ;;  %v1268_v31 = vsel %vm1249_vm0, %v11148_v46, 0.0  ;;  %v1320_v32 = vmul.f32 %v11148_v46, %v11148_v46  ;;  %v140_v38 = vpop.permute.xlu1 %139 }
 0x196   :  { %1263 = vadd.xlane.f32.xlu1 %v1262_v33  ;;  %1260 = vadd.xlane.f32.xlu0 %v1259_v13  ;;  %v11174_v20 = vmax.f32 %v10173_v6, 0.0  ;;  %v1351_v23 = vsel %vm1249_vm0, %v1321_v19, 0.0 }
 0x197   :  { %v8558_v41 = vpop.f32.mrb[10].mxu0  ;;  %v11162_v17 = vmax.f32 %v10174_v1, 0.0  ;;  %v1348_v44 = vsel %vm1249_vm0, %v1320_v32, 0.0 }
 0x198   :  { %v1199_v45 = vpop.f32.mrb[11].mxu0  ;;  %v10175_v27 = vadd.f32 %v8558_v41, %v120_v24  ;;  %v1277_v28 = vsel %vm1249_vm0, %v11174_v20, 0.0  ;;  %v1323_v37 = vmul.f32 %v11174_v20, %v11174_v20 }
 0x199   :  { %v10176_v11 = vadd.f32 %v1199_v45, %v115_v5  ;;  %v1274_v12 = vsel %vm1249_vm0, %v11162_v17, 0.0  ;;  %v1322_v15 = vmul.f32 %v11162_v17, %v11162_v17 }
 0x19a   :  { %1343 = vadd.xlane.f32.xlu1 %v1342_v49  ;;  %1340 = vadd.xlane.f32.xlu0 %v1339_v50  ;;  %v11188_v51 = vmax.f32 %v10175_v27, 0.0  ;;  %v1357_v55 = vsel %vm1249_vm0, %v1323_v37, 0.0 }
 0x19b   :  { %v8561_v8 = vpop.f32.mrb[12].mxu0  ;;  %v11176_v21 = vmax.f32 %v10176_v11, 0.0  ;;  %v1354_v22 = vsel %vm1249_vm0, %v1322_v15, 0.0 }
 0x19c   :  { %v1211_v58 = vpop.f32.mrb[13].mxu0  ;;  %v10177_v62 = vadd.f32 %v8561_v8, %v130_v57  ;;  %v1283_v63 = vsel %vm1249_vm0, %v11188_v51, 0.0  ;;  %v1325_v9 = vmul.f32 %v11188_v51, %v11188_v51 }
 0x19d   :  { %v10178_v29 = vadd.f32 %v1211_v58, %v125_v25  ;;  %v1280_v30 = vsel %vm1249_vm0, %v11176_v21, 0.0  ;;  %v1324_v34 = vmul.f32 %v11176_v21, %v11176_v21 }
 0x19e   :  { %1269 = vadd.xlane.f32.xlu1 %v1268_v31  ;;  %1266 = vadd.xlane.f32.xlu0 %v1265_v0  ;;  %v11202_v13 = vmax.f32 %v10177_v62, 0.0  ;;  %v1363_v35 = vsel %vm1249_vm0, %v1325_v9, 0.0 }
 0x19f   :  { %v8564_v39 = vpop.f32.mrb[14].mxu0  ;;  %v11190_v52 = vmax.f32 %v10178_v29, 0.0  ;;  %v1360_v53 = vsel %vm1249_vm0, %v1324_v34, 0.0 }
 0x1a0   :  { %v1223_v43 = vpop.f32.mrb[15].mxu0  ;;  %v10179_v41 = vadd.f32 %v8564_v39, %v140_v38  ;;  %v1289_v49 = vsel %vm1249_vm0, %v11202_v13, 0.0  ;;  %v1327_v59 = vmul.f32 %v11202_v13, %v11202_v13 }
 0x1a1   :  { %v10180_v2 = vadd.f32 %v1223_v43, %v135_v61  ;;  %v1286_v3 = vsel %vm1249_vm0, %v11190_v52, 0.0  ;;  %v1326_v7 = vmul.f32 %v11190_v52, %v11190_v52 }
 0x1a2   :  { %1349 = vadd.xlane.f32.xlu1 %v1348_v44  ;;  %1346 = vadd.xlane.f32.xlu0 %v1345_v47  ;;  %v11216_v8 = vmax.f32 %v10179_v41, 0.0  ;;  %v1369_v54 = vsel %vm1249_vm0, %v1327_v59, 0.0  ;;  %v1443_v59 = vld [vmem:[%s14235_s3 + $0x8] sm:$0xff] }
 0x1a3   :  { %v11204_v14 = vmax.f32 %v10180_v2, 0.0  ;;  %v1366_v33 = vsel %vm1249_vm0, %v1326_v7, 0.0 }
 0x1a4   :  { %v1295_v58 = vsel %vm1249_vm0, %v11216_v8, 0.0  ;;  %v1329_v0 = vmul.f32 %v11216_v8, %v11216_v8 }
 0x1a5   :  { %v1292_v45 = vsel %vm1249_vm0, %v11204_v14, 0.0  ;;  %v1328_v50 = vmul.f32 %v11204_v14, %v11204_v14 }
 0x1a6   :  { %1275 = vadd.xlane.f32.xlu1 %v1274_v12  ;;  %1272 = vadd.xlane.f32.xlu0 %v1271_v10  ;;  %v1375_v1 = vsel %vm1249_vm0, %v1329_v0, 0.0 }
 0x1a7   :  { %v1372_v48 = vsel %vm1249_vm0, %v1328_v50, 0.0 }
 0x1aa   :  { %1355 = vadd.xlane.f32.xlu1 %v1354_v22  ;;  %1352 = vadd.xlane.f32.xlu0 %v1351_v23 }
 0x1ae   :  { %1281 = vadd.xlane.f32.xlu1 %v1280_v30  ;;  %1278 = vadd.xlane.f32.xlu0 %v1277_v28 }
 0x1b2   :  { %1361 = vadd.xlane.f32.xlu1 %v1360_v53  ;;  %1358 = vadd.xlane.f32.xlu0 %v1357_v55 }
 0x1b6   :  { %1287 = vadd.xlane.f32.xlu1 %v1286_v3  ;;  %1284 = vadd.xlane.f32.xlu0 %v1283_v63 }
 0x1ba   :  { %1367 = vadd.xlane.f32.xlu1 %v1366_v33  ;;  %1364 = vadd.xlane.f32.xlu0 %v1363_v35 }
 0x1be   :  { %1293 = vadd.xlane.f32.xlu1 %v1292_v45  ;;  %1290 = vadd.xlane.f32.xlu0 %v1289_v49 }
 0x1c2   :  { %1373 = vadd.xlane.f32.xlu1 %v1372_v48  ;;  %1370 = vadd.xlane.f32.xlu0 %v1369_v54 }
 0x1c6   :  { %1296 = vadd.xlane.f32.xlu0 %v1295_v58 }
 0x1ca   :  { %1376 = vadd.xlane.f32.xlu0 %v1375_v1 }
 0x216   :  { %v1255_v31 = vpop.xlane.xlu1 %1254 }
 0x217   :  { %v1252_v32 = vpop.xlane.xlu0 %1251  ;;  %v11225_v36 = vmul.f32 0.125, %v1255_v31 }
 0x218   :  { %v11227_v39 = vmul.f32 0.125, %v1252_v32 }
 0x219   :  { %v1395_v47 = vmul.f32 %v11225_v36, %v11225_v36 }
 0x21a   :  { %v1394_v10 = vmul.f32 %v11227_v39, %v11227_v39 }
 0x21b   :  { %v1258_v43 = vpop.xlane.xlu1 %1257  ;;  %v1335_v44 = vpop.xlane.xlu0 %1334 }
 0x21c   :  { %v11231_v4 = vmul.f32 0.125, %v1258_v43  ;;  %v1379_v5 = vmul.f32 0.125, %v1335_v44 }
 0x21e   :  { %v1411_v6 = vsub.f32 %v1379_v5, %v1395_v47  ;;  %v1396_v15 = vmul.f32 %v11231_v4, %v11231_v4  ;;  %v1444_v5 = vld [vmem:[%s14235_s3 + $0x10] sm:$0xff] }
 0x21f   :  { %v1338_v11 = vpop.xlane.xlu1 %1337  ;;  %v1332_v12 = vpop.xlane.xlu0 %1331 }
 0x220   :  { %v1427_v19 = vmax.f32 %v1411_v6, 0.0  ;;  %v1380_v22 = vmul.f32 0.125, %v1338_v11  ;;  %v1378_v23 = vmul.f32 0.125, %v1332_v12  ;;  %v1442_v12 = vld [vmem:[%s14235_s3] sm:$0xff] }
 0x222   :  { %v1459_v24 = vadd.f32 1e-05, %v1427_v19  ;;  %v1412_v25 = vsub.f32 %v1380_v22, %v1396_v15  ;;  %v1410_v27 = vsub.f32 %v1378_v23, %v1394_v10 }
 0x223   :  { %v1264_v28 = vpop.xlane.xlu1 %1263  ;;  %v1261_v29 = vpop.xlane.xlu0 %1260 }
 0x224   :  { %10557 = vrsqrt.f32 %v1459_v24  ;;  %v1428_v30 = vmax.f32 %v1412_v25, 0.0  ;;  %v1426_v34 = vmax.f32 %v1410_v27, 0.0  ;;  %v11237_v37 = vmul.f32 0.125, %v1264_v28 }
 0x225   :  { %v11239_v53 = vmul.f32 0.125, %v1261_v29  ;;  %v1508_v29 = vld [vmem:[%s14236_s4 + $0x10] sm:$0xff] }
 0x226   :  { %v1460_v55 = vadd.f32 1e-05, %v1428_v30  ;;  %v1458_v57 = vadd.f32 1e-05, %v1426_v34  ;;  %v1398_v61 = vmul.f32 %v11237_v37, %v11237_v37 }
 0x227   :  { %v1344_v62 = vpop.xlane.xlu1 %1343  ;;  %v1341_v63 = vpop.xlane.xlu0 %1340  ;;  %v1397_v2 = vmul.f32 %v11239_v53, %v11239_v53 }
 0x228   :  { %10559 = vrsqrt.f32 %v1460_v55  ;;  %v1382_v3 = vmul.f32 0.125, %v1344_v62  ;;  %v1381_v7 = vmul.f32 0.125, %v1341_v63  ;;  %v1507_v62 = vld [vmem:[%s14236_s4 + $0x8] sm:$0xff] }
 0x229   :  { %10561 = vrsqrt.f32 %v1458_v57 }
 0x22a   :  { %v1414_v9 = vsub.f32 %v1382_v3, %v1398_v61  ;;  %v1413_v33 = vsub.f32 %v1381_v7, %v1397_v2 }
 0x22b   :  { %v1270_v35 = vpop.xlane.xlu1 %1269  ;;  %v1267_v38 = vpop.xlane.xlu0 %1266 }
 0x22c   :  { %v1430_v41 = vmax.f32 %v1414_v9, 0.0  ;;  %v1429_v45 = vmax.f32 %v1413_v33, 0.0  ;;  %v11245_v49 = vmul.f32 0.125, %v1270_v35  ;;  %v11247_v50 = vmul.f32 0.125, %v1267_v38 }
 0x22e   :  { %v10558_v48 = vpop.eup %10557  ;;  %v1462_v54 = vadd.f32 1e-05, %v1430_v41  ;;  %v1461_v58 = vadd.f32 1e-05, %v1429_v45  ;;  %v1400_v0 = vmul.f32 %v11245_v49, %v11245_v49  ;;  %v1399_v43 = vmul.f32 %v11247_v50, %v11247_v50 }
 0x22f   :  { %v1350_v1 = vpop.xlane.xlu1 %1349  ;;  %v1347_v31 = vpop.xlane.xlu0 %1346  ;;  %v1491_v32 = vmul.f32 %v10558_v48, %v1443_v59  ;;  %v1445_v59 = vld [vmem:[%s14235_s3 + $0x18] sm:$0xff] }
 0x230   :  { %10563 = vrsqrt.f32 %v1462_v54  ;;  %v1384_v44 = vmul.f32 0.125, %v1350_v1  ;;  %v1383_v47 = vmul.f32 0.125, %v1347_v31 }
 0x231   :  { %10565 = vrsqrt.f32 %v1461_v58  ;;  %1561 = vperm.xlu0 %10555, %v1491_v32   ;;  %v1523_v55 = vmul.f32 %v1491_v32, %v11225_v36  ;;  %v1446_v36 = vld [vmem:[%s14235_s3 + $0x20] sm:$0xff] }
 0x232   :  { %v10560_v6 = vpop.eup %10559  ;;  %v1416_v10 = vsub.f32 %v1384_v44, %v1400_v0  ;;  %v1415_v11 = vsub.f32 %v1383_v47, %v1399_v43  ;;  %v1510_v44 = vld [vmem:[%s14236_s4 + $0x20] sm:$0xff] }
 0x233   :  { %v10562_v15 = vpop.eup %10561  ;;  %v1276_v19 = vpop.xlane.xlu1 %1275  ;;  %v1492_v23 = vmul.f32 %v10560_v6, %v1444_v5  ;;  %v1539_v35 = vsub.f32 %v1507_v62, %v1523_v55  ;;  %v1447_v62 = vld [vmem:[%s14235_s3 + $0x28] sm:$0xff] }
 0x234   :  { %v1273_v22 = vpop.xlane.xlu0 %1272  ;;  %v1432_v24 = vmax.f32 %v1416_v10, 0.0  ;;  %v1431_v25 = vmax.f32 %v1415_v11, 0.0  ;;  %v11262_v27 = vmul.f32 0.125, %v1276_v19  ;;  %v1490_v30 = vmul.f32 %v10562_v15, %v1442_v12  ;;  %v1506_v12 = vld [vmem:[%s14236_s4] sm:$0xff] }
 0x235   :  { %v11264_v28 = vmul.f32 0.125, %v1273_v22  ;;  %1566 = vperm.xlu0 %10555, %v1492_v23   ;;  %v1524_v34 = vmul.f32 %v1492_v23, %v11231_v4 }
 0x236   :  { %v1464_v57 = vadd.f32 1e-05, %v1432_v24  ;;  %v1463_v61 = vadd.f32 1e-05, %v1431_v25  ;;  %v1402_v63 = vmul.f32 %v11262_v27, %v11262_v27  ;;  %1556 = vperm.xlu1 %10556, %v1490_v30   ;;  %v1522_v6 = vmul.f32 %v1490_v30, %v11227_v39  ;;  %v1448_v39 = vld [vmem:[%s14235_s3 + $0x30] sm:$0xff] }
 0x237   :  { %v1356_v2 = vpop.xlane.xlu1 %1355  ;;  %v1540_v7 = vsub.f32 %v1508_v29, %v1524_v34  ;;  %v1401_v9 = vmul.f32 %v11264_v28, %v11264_v28 }
 0x238   :  { %v1353_v3 = vpop.xlane.xlu0 %1352  ;;  %10567 = vrsqrt.f32 %v1464_v57  ;;  %v1386_v4 = vmul.f32 0.125, %v1356_v2  ;;  %v1538_v29 = vsub.f32 %v1506_v12, %v1522_v6  ;;  %v1449_v12 = vld [vmem:[%s14235_s3 + $0x38] sm:$0xff] }
 0x239   :  { %v1385_v33 = vmul.f32 0.125, %v1353_v3  ;;  %10569 = vrsqrt.f32 %v1463_v61  ;;  %1662 = vperm.xlu0 %10555, %v1540_v7   ;;  %v1509_v61 = vld [vmem:[%s14236_s4 + $0x18] sm:$0xff] }
 0x23a   :  { %v10564_v38 = vpop.eup %10563  ;;  %v1418_v41 = vsub.f32 %v1386_v4, %v1402_v63  ;;  %1657 = vperm.xlu1 %10556, %v1539_v35  }
 0x23b   :  { %v1417_v45 = vsub.f32 %v1385_v33, %v1401_v9  ;;  %v10566_v48 = vpop.eup %10565  ;;  %v1282_v54 = vpop.xlane.xlu1 %1281  ;;  %v1494_v0 = vmul.f32 %v10564_v38, %v1446_v36  ;;  %v1512_v36 = vld [vmem:[%s14236_s4 + $0x30] sm:$0xff] }
 0x23c   :  { %v1279_v58 = vpop.xlane.xlu0 %1278  ;;  %v1434_v1 = vmax.f32 %v1418_v41, 0.0  ;;  %v11284_v32 = vmul.f32 0.125, %v1282_v54  ;;  %v1493_v47 = vmul.f32 %v10566_v48, %v1445_v59 }
 0x23d   :  { %v1433_v31 = vmax.f32 %v1417_v45, 0.0  ;;  %v11286_v43 = vmul.f32 0.125, %v1279_v58  ;;  %1576 = vperm.xlu0 %10555, %v1494_v0   ;;  %v1526_v5 = vmul.f32 %v1494_v0, %v11237_v37 }
 0x23e   :  { %v1466_v10 = vadd.f32 1e-05, %v1434_v1  ;;  %v1404_v15 = vmul.f32 %v11284_v32, %v11284_v32  ;;  %1571 = vperm.xlu1 %10556, %v1493_v47   ;;  %v1525_v30 = vmul.f32 %v1493_v47, %v11239_v53 }
 0x23f   :  { %v1465_v11 = vadd.f32 1e-05, %v1433_v31  ;;  %v1362_v19 = vpop.xlane.xlu1 %1361  ;;  %v1542_v23 = vsub.f32 %v1510_v44, %v1526_v5  ;;  %v1403_v24 = vmul.f32 %v11286_v43, %v11286_v43 }
 0x240   :  { %v1359_v22 = vpop.xlane.xlu0 %1358  ;;  %10571 = vrsqrt.f32 %v1466_v10  ;;  %v1388_v37 = vmul.f32 0.125, %v1362_v19  ;;  %v1541_v35 = vsub.f32 %v1509_v61, %v1525_v30 }
 0x241   :  { %v1387_v25 = vmul.f32 0.125, %v1359_v22  ;;  %10573 = vrsqrt.f32 %v1465_v11  ;;  %1672 = vperm.xlu0 %10555, %v1542_v23   ;;  %v1511_v11 = vld [vmem:[%s14236_s4 + $0x28] sm:$0xff] }
 0x242   :  { %v10568_v34 = vpop.eup %10567  ;;  %v1420_v55 = vsub.f32 %v1388_v37, %v1404_v15  ;;  %1652 = vperm.xlu1 %10556, %v1538_v29  }
 0x243   :  { %v1419_v57 = vsub.f32 %v1387_v25, %v1403_v24  ;;  %v10570_v63 = vpop.eup %10569  ;;  %v1288_v2 = vpop.xlane.xlu1 %1287  ;;  %v1496_v7 = vmul.f32 %v10568_v34, %v1448_v39  ;;  %v1514_v39 = vld [vmem:[%s14236_s4 + $0x40] sm:$0xff] }
 0x244   :  { %v1285_v3 = vpop.xlane.xlu0 %1284  ;;  %v1436_v9 = vmax.f32 %v1420_v55, 0.0  ;;  %v11310_v33 = vmul.f32 0.125, %v1288_v2  ;;  %v1495_v41 = vmul.f32 %v10570_v63, %v1447_v62 }
 0x245   :  { %v1435_v4 = vmax.f32 %v1419_v57, 0.0  ;;  %v11312_v53 = vmul.f32 0.125, %v1285_v3  ;;  %1586 = vperm.xlu0 %10555, %v1496_v7   ;;  %v1528_v38 = vmul.f32 %v1496_v7, %v11245_v49  ;;  %v1450_v49 = vld [vmem:[%s14235_s3 + $0x40] sm:$0xff] }
 0x246   :  { %v1468_v45 = vadd.f32 1e-05, %v1436_v9  ;;  %v1406_v48 = vmul.f32 %v11310_v33, %v11310_v33  ;;  %1667 = vperm.xlu1 %10556, %v1541_v35   ;;  %v1527_v47 = vmul.f32 %v1495_v41, %v11247_v50 }
 0x247   :  { %v1467_v59 = vadd.f32 1e-05, %v1435_v4  ;;  %v1368_v54 = vpop.xlane.xlu1 %1367  ;;  %v1544_v0 = vsub.f32 %v1512_v36, %v1528_v38  ;;  %v1405_v1 = vmul.f32 %v11312_v53, %v11312_v53 }
 0x248   :  { %v1365_v58 = vpop.xlane.xlu0 %1364  ;;  %10575 = vrsqrt.f32 %v1468_v45  ;;  %v1390_v31 = vmul.f32 0.125, %v1368_v54  ;;  %v1543_v29 = vsub.f32 %v1511_v11, %v1527_v47  ;;  %v1451_v45 = vld [vmem:[%s14235_s3 + $0x48] sm:$0xff] }
 0x249   :  { %v1389_v44 = vmul.f32 0.125, %v1365_v58  ;;  %10577 = vrsqrt.f32 %v1467_v59  ;;  %1682 = vperm.xlu0 %10555, %v1544_v0  }
 0x24a   :  { %v10572_v5 = vpop.eup %10571  ;;  %v1422_v6 = vsub.f32 %v1390_v31, %v1406_v48  ;;  %1581 = vperm.xlu1 %10556, %v1495_v41   ;;  %v1513_v41 = vld [vmem:[%s14236_s4 + $0x38] sm:$0xff] }
 0x24b   :  { %v1421_v10 = vsub.f32 %v1389_v44, %v1405_v1  ;;  %v10574_v15 = vpop.eup %10573  ;;  %v1294_v19 = vpop.xlane.xlu1 %1293  ;;  %v1498_v23 = vmul.f32 %v10572_v5, %v1450_v49 }
 0x24c   :  { %v1291_v22 = vpop.xlane.xlu0 %1290  ;;  %v1438_v24 = vmax.f32 %v1422_v6, 0.0  ;;  %v11332_v25 = vmul.f32 0.125, %v1294_v19  ;;  %v1497_v34 = vmul.f32 %v10574_v15, %v1449_v12  ;;  %v1454_v15 = vld [vmem:[%s14235_s3 + $0x60] sm:$0xff] }
 0x24d   :  { %v1437_v37 = vmax.f32 %v1421_v10, 0.0  ;;  %v11334_v50 = vmul.f32 0.125, %v1291_v22  ;;  %1596 = vperm.xlu0 %10555, %v1498_v23   ;;  %v1530_v30 = vmul.f32 %v1498_v23, %v11262_v27  ;;  %v1452_v27 = vld [vmem:[%s14235_s3 + $0x50] sm:$0xff]  ;;  %v1515_v23 = vld [vmem:[%s14236_s4 + $0x48] sm:$0xff] }
 0x24e   :  { %v1470_v55 = vadd.f32 1e-05, %v1438_v24  ;;  %v1408_v61 = vmul.f32 %v11332_v25, %v11332_v25  ;;  %1677 = vperm.xlu1 %10556, %v1543_v29   ;;  %v1529_v4 = vmul.f32 %v1497_v34, %v11264_v28  ;;  %v1516_v28 = vld [vmem:[%s14236_s4 + $0x50] sm:$0xff]  ;;  %v1453_v24 = vld [vmem:[%s14235_s3 + $0x58] sm:$0xff] }
 0x24f   :  { %v1469_v57 = vadd.f32 1e-05, %v1437_v37  ;;  %v1374_v62 = vpop.xlane.xlu1 %1373  ;;  %v1546_v2 = vsub.f32 %v1514_v39, %v1530_v30  ;;  %v1407_v3 = vmul.f32 %v11334_v50, %v11334_v50  ;;  %v1518_v30 = vld [vmem:[%s14236_s4 + $0x60] sm:$0xff] }
 0x250   :  { %v1371_v63 = vpop.xlane.xlu0 %1370  ;;  %10579 = vrsqrt.f32 %v1470_v55  ;;  %v1392_v7 = vmul.f32 0.125, %v1374_v62  ;;  %v1545_v31 = vsub.f32 %v1513_v41, %v1529_v4  ;;  %v1456_v62 = vld [vmem:[%s14235_s3 + $0x70] sm:$0xff] }
 0x251   :  { %v1391_v9 = vmul.f32 0.125, %v1371_v63  ;;  %10581 = vrsqrt.f32 %v1469_v57  ;;  %1692 = vperm.xlu0 %10555, %v1546_v2  }
 0x252   :  { %v10576_v36 = vpop.eup %10575  ;;  %v1424_v35 = vsub.f32 %v1392_v7, %v1408_v61  ;;  %1591 = vperm.xlu1 %10556, %v1497_v34  }
 0x253   :  { %v1423_v38 = vsub.f32 %v1391_v9, %v1407_v3  ;;  %v10578_v59 = vpop.eup %10577  ;;  %v1500_v54 = vmul.f32 %v10576_v36, %v1452_v27  ;;  %v1517_v3 = vld [vmem:[%s14236_s4 + $0x58] sm:$0xff]  ;;  %v1520_v27 = vld [vmem:[%s14236_s4 + $0x70] sm:$0xff] }
 0x254   :  { %v1297_v48 = vpop.xlane.xlu0 %1296  ;;  %v1440_v58 = vmax.f32 %v1424_v35, 0.0  ;;  %v1499_v49 = vmul.f32 %v10578_v59, %v1451_v45  ;;  %v7555_v45 = vld [vmem:[%s14234_s2 + $0x80] sm:$0xff]  ;;  %v1519_v59 = vld [vmem:[%s14236_s4 + $0x68] sm:$0xff] }
 0x255   :  { %v1439_v0 = vmax.f32 %v1423_v38, 0.0  ;;  %v11354_v1 = vmul.f32 0.125, %v1297_v48  ;;  %1606 = vperm.xlu0 %10555, %v1500_v54   ;;  %v1532_v44 = vmul.f32 %v1500_v54, %v11284_v32  ;;  %v1457_v48 = vld [vmem:[%s14235_s3 + $0x78] sm:$0xff] }
 0x256   :  { %v1472_v47 = vadd.f32 1e-05, %v1440_v58  ;;  %1687 = vperm.xlu1 %10556, %v1545_v31   ;;  %v1531_v19 = vmul.f32 %v1499_v49, %v11286_v43 }
 0x257   :  { %v1471_v5 = vadd.f32 1e-05, %v1439_v0  ;;  %v1548_v10 = vsub.f32 %v1516_v28, %v1532_v44  ;;  %v1409_v11 = vmul.f32 %v11354_v1, %v11354_v1  ;;  %v7559_v0 = vld [vmem:[%s14234_s2 + $0xa0] sm:$0xff]  ;;  %v1521_v28 = vld [vmem:[%s14236_s4 + $0x78] sm:$0xff]  ;;  %v7561_v44 = vld [vmem:[%s14234_s2 + $0xb0] sm:$0xff] }
 0x258   :  { %v1377_v6 = vpop.xlane.xlu0 %1376  ;;  %10583 = vrsqrt.f32 %v1472_v47  ;;  %v1547_v43 = vsub.f32 %v1515_v23, %v1531_v19  ;;  %v7556_v47 = vld [vmem:[%s14234_s2 + $0x88] sm:$0xff]  ;;  %v7562_v23 = vld [vmem:[%s14234_s2 + $0xb8] sm:$0xff] }
 0x259   :  { %v1393_v12 = vmul.f32 0.125, %v1377_v6  ;;  %10585 = vrsqrt.f32 %v1471_v5  ;;  %1702 = vperm.xlu0 %10555, %v1548_v10   ;;  %v7563_v6 = vld [vmem:[%s14234_s2 + $0xc0] sm:$0xff] }
 0x25a   :  { %v10580_v32 = vpop.eup %10579  ;;  %1601 = vperm.xlu1 %10556, %v1499_v49   ;;  %v7539_v49 = vld [vmem:[%s14233_s1 + $0x80] sm:$0xff] }
 0x25b   :  { %v1425_v22 = vsub.f32 %v1393_v12, %v1409_v11  ;;  %v10582_v37 = vpop.eup %10581  ;;  %v1502_v39 = vmul.f32 %v10580_v32, %v1454_v15  ;;  %v7558_v11 = vld [vmem:[%s14234_s2 + $0x98] sm:$0xff]  ;;  %v7565_v15 = vld [vmem:[%s14234_s2 + $0xd0] sm:$0xff]  ;;  %v7560_v32 = vld [vmem:[%s14234_s2 + $0xa8] sm:$0xff] }
 0x25c   :  { %v1501_v55 = vmul.f32 %v10582_v37, %v1453_v24  ;;  %v7569_v24 = vld [vmem:[%s14234_s2 + $0xf0] sm:$0xff]  ;;  %v7564_v37 = vld [vmem:[%s14234_s2 + $0xc8] sm:$0xff] }
 0x25d   :  { %v1441_v29 = vmax.f32 %v1425_v22, 0.0  ;;  %1616 = vperm.xlu0 %10555, %v1502_v39   ;;  %v1534_v34 = vmul.f32 %v1502_v39, %v11310_v33  ;;  %v1455_v33 = vld [vmem:[%s14235_s3 + $0x68] sm:$0xff]  ;;  %v7567_v22 = vld [vmem:[%s14234_s2 + $0xe0] sm:$0xff]  ;;  %v7566_v39 = vld [vmem:[%s14234_s2 + $0xd8] sm:$0xff] }
 0x25e   :  { %1697 = vperm.xlu1 %10556, %v1547_v43   ;;  %v1533_v63 = vmul.f32 %v1501_v55, %v11312_v53 }
 0x25f   :  { %v1473_v57 = vadd.f32 1e-05, %v1441_v29  ;;  %v1550_v61 = vsub.f32 %v1518_v30, %v1534_v34  ;;  %v7568_v29 = vld [vmem:[%s14234_s2 + $0xe8] sm:$0xff]  ;;  %v7570_v30 = vld [vmem:[%s14234_s2 + $0xf8] sm:$0xff] }
 0x260   :  { %v1549_v4 = vsub.f32 %v1517_v3, %v1533_v63 }
 0x261   :  { %10587 = vrsqrt.f32 %v1473_v57  ;;  %1712 = vperm.xlu0 %10555, %v1550_v61  }
 0x262   :  { %v10584_v2 = vpop.eup %10583  ;;  %1611 = vperm.xlu1 %10556, %v1501_v55  }
 0x263   :  { %v10586_v7 = vpop.eup %10585  ;;  %v1504_v9 = vmul.f32 %v10584_v2, %v1456_v62 }
 0x264   :  { %v1503_v36 = vmul.f32 %v10586_v7, %v1455_v33 }
 0x265   :  { %1626 = vperm.xlu0 %10555, %v1504_v9   ;;  %v1536_v53 = vmul.f32 %v1504_v9, %v11332_v25 }
 0x266   :  { %1707 = vperm.xlu1 %10556, %v1549_v4   ;;  %v1535_v38 = vmul.f32 %v1503_v36, %v11334_v50  ;;  %v7557_v50 = vld [vmem:[%s14234_s2 + $0x90] sm:$0xff] }
 0x267   :  { %v1552_v35 = vsub.f32 %v1520_v27, %v1536_v53 }
 0x268   :  { %v1551_v25 = vsub.f32 %v1519_v59, %v1535_v38 }
 0x269   :  { %1722 = vperm.xlu0 %10555, %v1552_v35  }
 0x26a   :  { %1621 = vperm.xlu1 %10556, %v1503_v36  }
 0x26b   :  { %v10588_v41 = vpop.eup %10587 }
 0x26c   :  { %v1505_v54 = vmul.f32 %v10588_v41, %v1457_v48 }
 0x26d   :  { %1782 = vperm.xlu0 %10555, %v7555_v45  }
 0x26e   :  { %1717 = vperm.xlu1 %10556, %v1551_v25   ;;  %v1537_v58 = vmul.f32 %v1505_v54, %v11354_v1  ;;  %v11416_v1 = vand.u32 4294901760, %v7539_v49 }
 0x270   :  { %v1553_v31 = vsub.f32 %v1521_v28, %v1537_v58  ;;  %v11422_v5 = vsub.f32 %v7539_v49, %v11416_v1 }
 0x271   :  { %1792 = vperm.xlu0 %10555, %v7557_v50  }
 0x272   :  { %1631 = vperm.xlu1 %10556, %v1505_v54   ;;  %v14240_v10 = vand.u32 4294901760, %v11422_v5 }
 0x274   :  { %v1944_v12 = vsub.f32 %v11422_v5, %v14240_v10 }
 0x275   :  { %1802 = vperm.xlu0 %10555, %v7559_v0  }
 0x276   :  { %1727 = vperm.xlu1 %10556, %v1553_v31   ;;  %v1945_v19 = vand.u32 4294901760, %v1944_v12 }
 0x278   :  { %8597 = vmatprep.mubr.f32.mxu1 %v1945_v19 }
 0x279   :  { %1812 = vperm.xlu0 %10555, %v7561_v44  }
 0x27a   :  { %1787 = vperm.xlu1 %10556, %v7556_v47  }
 0x27d   :  { %1822 = vperm.xlu0 %10555, %v7563_v6  }
 0x27e   :  { %1797 = vperm.xlu1 %10556, %v7558_v11  }
 0x281   :  { %1832 = vperm.xlu0 %10555, %v7565_v15  }
 0x282   :  { %1807 = vperm.xlu1 %10556, %v7560_v32  }
 0x285   :  { %1842 = vperm.xlu0 %10555, %v7567_v22  }
 0x286   :  { %1817 = vperm.xlu1 %10556, %v7562_v23  }
 0x289   :  { %1852 = vperm.xlu0 %10555, %v7569_v24  }
 0x28a   :  { %1827 = vperm.xlu1 %10556, %v7564_v37  }
 0x28e   :  { %1837 = vperm.xlu1 %10556, %v7566_v39  }
 0x292   :  { %1847 = vperm.xlu1 %10556, %v7568_v29  }
 0x296   :  { %1857 = vperm.xlu1 %10556, %v7570_v30  }
 0x2b0   :  { %v1562_v43 = vpop.permute.xlu0 %1561 }
 0x2b1   :  { %v1635_v62 = vmul.f32 %v1562_v43, %v11113_v16 }
 0x2b4   :  { %v1567_v34 = vpop.permute.xlu0 %1566 }
 0x2b5   :  { %v1557_v55 = vpop.permute.xlu1 %1556  ;;  %v1636_v33 = vmul.f32 %v1567_v34, %v11123_v26 }
 0x2b6   :  { %v1634_v9 = vmul.f32 %v1557_v55, %v11115_v18 }
 0x2b8   :  { %v1663_v57 = vpop.permute.xlu0 %1662 }
 0x2b9   :  { %v1658_v61 = vpop.permute.xlu1 %1657  ;;  %v1732_v27 = vadd.f32 %v1663_v57, %v1636_v33 }
 0x2ba   :  { %v1731_v2 = vadd.f32 %v1658_v61, %v1635_v62 }
 0x2bb   :  { %v1867_v38 = vand.u32 4294901760, %v1732_v27 }
 0x2bc   :  { %v1577_v63 = vpop.permute.xlu0 %1576  ;;  %v1864_v4 = vand.u32 4294901760, %v1731_v2 }
 0x2bd   :  { %v1572_v3 = vpop.permute.xlu1 %1571  ;;  %v1638_v48 = vmul.f32 %v1577_v63, %v11134_v60  ;;  %v11472_v50 = vsub.f32 %v1732_v27, %v1867_v38 }
 0x2be   :  { %v1637_v41 = vmul.f32 %v1572_v3, %v11132_v56  ;;  %v11465_v59 = vsub.f32 %v1731_v2, %v1864_v4 }
 0x2bf   :  { %v2118_v6 = vand.u32 4294901760, %v11472_v50 }
 0x2c0   :  { %v1673_v7 = vpop.permute.xlu0 %1672  ;;  %v2111_v56 = vand.u32 4294901760, %v11465_v59 }
 0x2c1   :  { %v1653_v53 = vpop.permute.xlu1 %1652  ;;  %v1734_v0 = vadd.f32 %v1673_v7, %v1638_v48 }
 0x2c2   :  { %v1730_v36 = vadd.f32 %v1653_v53, %v1634_v9 }
 0x2c3   :  { %v1873_v11 = vand.u32 4294901760, %v1734_v0 }
 0x2c4   :  { %v1587_v35 = vpop.permute.xlu0 %1586  ;;  %v1861_v45 = vand.u32 4294901760, %v1730_v36 }
 0x2c5   :  { %v1668_v16 = vpop.permute.xlu1 %1667  ;;  %v1640_v32 = vmul.f32 %v1587_v35, %v11148_v46  ;;  %v11500_v37 = vsub.f32 %v1734_v0, %v1873_v11 }
 0x2c6   :  { %v11468_v25 = vpack.c.bf16 %v1864_v4, %v1861_v45  ;;  %v11470_v26 = vsub.f32 %v1730_v36, %v1861_v45  ;;  %v1733_v54 = vadd.f32 %v1668_v16, %v1637_v41 }
 0x2c7   :  { %v14248_v46 = vand.u32 4294901760, %v11500_v37 }
 0x2c8   :  { %v1683_v18 = vpop.permute.xlu0 %1682  ;;  %v2104_v58 = vand.u32 4294901760, %v11470_v26  ;;  %v1870_v28 = vand.u32 4294901760, %v1733_v54  ;;  %9574 = vmatprep.subr.bf16.mxu1 %v11468_v25 }
 0x2c9   :  { %v1582_v31 = vpop.permute.xlu1 %1581  ;;  %9576 = vmatpush3.bf16.msra.mxu1 %v11468_v25  ;;  %v1736_v39 = vadd.f32 %v1683_v18, %v1640_v32 }
 0x2ca   :  { %v11478_v60 = vpack.c.bf16 %v1870_v28, %v1867_v38  ;;  %v11480_v44 = vsub.f32 %v1733_v54, %v1870_v28  ;;  %v11486_v47 = vpack.c.bf16 %v2111_v56, %v2104_v58  ;;  %v1639_v15 = vmul.f32 %v1582_v31, %v11146_v42 }
 0x2cb   :  { %v1879_v55 = vand.u32 4294901760, %v1736_v39 }
 0x2cc   :  { %v1597_v49 = vpop.permute.xlu0 %1596  ;;  %14384 = vst [vmem:[#allocation6_spill] sm:$0xff] %v11486_v47  ;;  %v2125_v12 = vand.u32 4294901760, %v11480_v44  ;;  %9578 = vmatprep.subr.bf16.mxu1 %v11478_v60 }
 0x2cd   :  { %v1678_v19 = vpop.permute.xlu1 %1677  ;;  %9580 = vmatpush3.bf16.msra.mxu1 %v11478_v60  ;;  %v1642_v63 = vmul.f32 %v1597_v49, %v11162_v17  ;;  %v11518_v7 = vsub.f32 %v1736_v39, %v1879_v55 }
 0x2ce   :  { %v1735_v22 = vadd.f32 %v1678_v19, %v1639_v15  ;;  %v11498_v23 = vpack.c.bf16 %v2125_v12, %v2118_v6 }
 0x2cf   :  { %v14246_v17 = vand.u32 4294901760, %v11518_v7 }
 0x2d0   :  { %14385 = vst [vmem:[#allocation7_spill] sm:$0xff] %v11498_v23  ;;  %v1693_v24 = vpop.permute.xlu0 %1692  ;;  %v1876_v29 = vand.u32 4294901760, %v1735_v22 }
 0x2d1   :  { %v1592_v42 = vpop.permute.xlu1 %1591  ;;  %v1738_v9 = vadd.f32 %v1693_v24, %v1642_v63  ;;  %v7541_v63 = vld [vmem:[%s14233_s1 + $0x90] sm:$0xff] }
 0x2d2   :  { %v11502_v30 = vpack.c.bf16 %v1876_v29, %v1873_v11  ;;  %v11504_v43 = vsub.f32 %v1735_v22, %v1876_v29  ;;  %v1641_v61 = vmul.f32 %v1592_v42, %v11160_v40  ;;  %v7540_v22 = vld [vmem:[%s14233_s1 + $0x88] sm:$0xff] }
 0x2d3   :  { %v1885_v35 = vand.u32 4294901760, %v1738_v9 }
 0x2d4   :  { %14386 = vst [vmem:[#allocation8_spill] sm:$0xff] %v11502_v30  ;;  %v1607_v34 = vpop.permute.xlu0 %1606  ;;  %v14249_v57 = vand.u32 4294901760, %v11504_v43  ;;  %9582 = vmatprep.subr.bf16.mxu1 %v11502_v30 }
 0x2d5   :  { %v1688_v62 = vpop.permute.xlu1 %1687  ;;  %9584 = vmatpush3.bf16.msra.mxu1 %v11502_v30  ;;  %v1644_v16 = vmul.f32 %v1607_v34, %v11176_v21  ;;  %v11536_v18 = vsub.f32 %v1738_v9, %v1885_v35  ;;  %v7542_v9 = vld [vmem:[%s14233_s1 + $0x98] sm:$0xff] }
 0x2d6   :  { %v1737_v2 = vadd.f32 %v1688_v62, %v1641_v61  ;;  %v11516_v3 = vpack.c.bf16 %v14249_v57, %v14248_v46 }
 0x2d7   :  { %v14244_v15 = vand.u32 4294901760, %v11536_v18 }
 0x2d8   :  { %14387 = vst [vmem:[#allocation9_spill] sm:$0xff] %v11516_v3  ;;  %v1703_v33 = vpop.permute.xlu0 %1702  ;;  %v1882_v27 = vand.u32 4294901760, %v1737_v2 }
 0x2d9   :  { %v1602_v40 = vpop.permute.xlu1 %1601  ;;  %v1740_v0 = vadd.f32 %v1703_v33, %v1644_v16 }
 0x2da   :  { %v11520_v4 = vpack.c.bf16 %v1882_v27, %v1879_v55  ;;  %v11522_v53 = vsub.f32 %v1737_v2, %v1882_v27  ;;  %v1643_v41 = vmul.f32 %v1602_v40, %v11174_v20  ;;  %v11574_v40 = vand.u32 4294901760, %v7541_v63 }
 0x2db   :  { %v1891_v21 = vand.u32 4294901760, %v1740_v0 }
 0x2dc   :  { %14388 = vst [vmem:[#allocation10_spill] sm:$0xff] %v11520_v4  ;;  %v1617_v36 = vpop.permute.xlu0 %1616  ;;  %v14247_v38 = vand.u32 4294901760, %v11522_v53  ;;  %9586 = vmatprep.subr.bf16.mxu1 %v11520_v4 }
 0x2dd   :  { %v1698_v45 = vpop.permute.xlu1 %1697  ;;  %9588 = vmatpush3.bf16.msra.mxu1 %v11520_v4  ;;  %v1646_v39 = vmul.f32 %v1617_v36, %v11190_v52  ;;  %v11559_v55 = vsub.f32 %v1740_v0, %v1891_v21  ;;  %v11581_v0 = vand.u32 4294901760, %v7542_v9 }
 0x2de   :  { %v1739_v48 = vadd.f32 %v1698_v45, %v1643_v41  ;;  %v11534_v54 = vpack.c.bf16 %v14247_v38, %v14246_v17 }
 0x2df   :  { %v14241_v36 = vand.u32 4294901760, %v11559_v55 }
 0x2e0   :  { %14389 = vst [vmem:[#allocation11_spill] sm:$0xff] %v11534_v54  ;;  %v1888_v28 = vand.u32 4294901760, %v1739_v48  ;;  %v1713_v20 = vpop.permute.xlu0 %1712 }
 0x2e1   :  { %v1612_v31 = vpop.permute.xlu1 %1611  ;;  %v1742_v61 = vadd.f32 %v1713_v20, %v1646_v39  ;;  %v7543_v20 = vld [vmem:[%s14233_s1 + $0xa0] sm:$0xff] }
 0x2e2   :  { %v11538_v49 = vpack.c.bf16 %v1888_v28, %v1885_v35  ;;  %v11540_v11 = vsub.f32 %v1739_v48, %v1888_v28  ;;  %v1645_v32 = vmul.f32 %v1612_v31, %v11188_v51  ;;  %v11557_v51 = vand.u32 4294901760, %v7540_v22 }
 0x2e3   :  { %v1897_v35 = vand.u32 4294901760, %v1742_v61 }
 0x2e4   :  { %14390 = vst [vmem:[#allocation12_spill] sm:$0xff] %v11538_v49  ;;  %v14245_v19 = vand.u32 4294901760, %v11540_v11  ;;  %9590 = vmatprep.subr.bf16.mxu1 %v11538_v49  ;;  %v1627_v34 = vpop.permute.xlu0 %1626  ;;  %v11572_v27 = vsub.f32 %v7540_v22, %v11557_v51 }
 0x2e5   :  { %v1708_v24 = vpop.permute.xlu1 %1707  ;;  %9592 = vmatpush3.bf16.msra.mxu1 %v11538_v49  ;;  %v1648_v28 = vmul.f32 %v1627_v34, %v11204_v14  ;;  %v7544_v14 = vld [vmem:[%s14233_s1 + $0xa8] sm:$0xff]  ;;  %v11600_v22 = vsub.f32 %v1742_v61, %v1897_v35  ;;  %v2105_v61 = vsub.f32 %v11470_v26, %v2104_v58  ;;  %v7546_v58 = vld [vmem:[%s14233_s1 + $0xb8] sm:$0xff]  ;;  %v14409_v49 = vand.u32 4294901760, %v11522_v53 }
 0x2e6   :  { %v1741_v29 = vadd.f32 %v1708_v24, %v1645_v32  ;;  %v11555_v42 = vpack.c.bf16 %v14245_v19, %v14244_v15  ;;  %v11595_v32 = vsub.f32 %v7541_v63, %v11574_v40 }
 0x2e7   :  { %v14250_v10 = vand.u32 4294901760, %v11600_v22  ;;  %v2154_v4 = vsub.f32 %v11522_v53, %v14409_v49 }
 0x2e8   :  { %14391 = vst [vmem:[#allocation13_spill] sm:$0xff] %v11555_v42  ;;  %v1894_v62 = vand.u32 4294901760, %v1741_v29  ;;  %v1723_v16 = vpop.permute.xlu0 %1722 }
 0x2e9   :  { %v1622_v2 = vpop.permute.xlu1 %1621  ;;  %v1744_v24 = vadd.f32 %v1723_v16, %v1648_v28  ;;  %v14252_v28 = vand.u32 4294901760, %v11595_v32 }
 0x2ea   :  { %v11564_v52 = vpack.c.bf16 %v1894_v62, %v1891_v21  ;;  %v11566_v33 = vsub.f32 %v1741_v29, %v1894_v62  ;;  %v1647_v45 = vmul.f32 %v1622_v2, %v11202_v13  ;;  %v14242_v21 = vand.u32 4294901760, %v11572_v27  ;;  %v7545_v29 = vld [vmem:[%s14233_s1 + $0xb0] sm:$0xff] }
 0x2eb   :  { %v11606_v62 = vsub.f32 %v7542_v9, %v11581_v0  ;;  %v11608_v2 = vand.u32 4294901760, %v7543_v20  ;;  %v11623_v9 = vand.u32 4294901760, %v7545_v29  ;;  %v1964_v57 = vsub.f32 %v11595_v32, %v14252_v28 }
 0x2ec   :  { %14392 = vst [vmem:[#allocation14_spill] sm:$0xff] %v11564_v52  ;;  %v14243_v41 = vand.u32 4294901760, %v11566_v33  ;;  %9594 = vmatprep.subr.bf16.mxu1 %v11564_v52  ;;  %v1954_v16 = vsub.f32 %v11572_v27, %v14242_v21  ;;  %v2112_v21 = vsub.f32 %v11465_v59, %v2111_v56  ;;  %v2106_v56 = vand.u32 4294901760, %v2105_v61  ;;  %v7548_v61 = vld [vmem:[%s14233_s1 + $0xc8] sm:$0xff] }
 0x2ed   :  { %v1718_v48 = vpop.permute.xlu1 %1717  ;;  %9596 = vmatpush3.bf16.msra.mxu1 %v11564_v52  ;;  %v11638_v15 = vsub.f32 %v7543_v20, %v11608_v2  ;;  %v11653_v46 = vsub.f32 %v7545_v29, %v11623_v9  ;;  %v11655_v20 = vand.u32 4294901760, %v7546_v58  ;;  %v2119_v28 = vsub.f32 %v11472_v50, %v2118_v6 }
 0x2ee   :  { %v1743_v31 = vadd.f32 %v1718_v48, %v1647_v45  ;;  %v11591_v13 = vpack.c.bf16 %v14243_v41, %v14241_v36  ;;  %v11614_v48 = vand.u32 4294901760, %v7544_v14  ;;  %v14255_v41 = vand.u32 4294901760, %v11606_v62 }
 0x2ef   :  { %14395 = vst [vmem:[#allocation17_spill] sm:$0xff] %v11638_v15  ;;  %v1955_v38 = vand.u32 4294901760, %v1954_v16  ;;  %14398 = vst [vmem:[#allocation20_spill] sm:$0xff] %v11653_v46  ;;  %v2113_v16 = vand.u32 4294901760, %v2112_v21  ;;  %v7549_v21 = vld [vmem:[%s14233_s1 + $0xd0] sm:$0xff] }
 0x2f0   :  { %14393 = vst [vmem:[#allocation15_spill] sm:$0xff] %v11591_v13  ;;  %v1900_v39 = vand.u32 4294901760, %v1743_v31  ;;  %v1974_v29 = vsub.f32 %v11606_v62, %v14255_v41 }
 0x2f1   :  { %v1632_v34 = vpop.permute.xlu1 %1631  ;;  %v9605_v13 = vpack.c.bf16 %v2113_v16, %v2106_v56  ;;  %v7550_v56 = vld [vmem:[%s14233_s1 + $0xd8] sm:$0xff]  ;;  %v14402_v16 = vand.u32 4294901760, %v11638_v15 }
 0x2f2   :  { %v11610_v63 = vpack.c.bf16 %v1900_v39, %v1897_v35  ;;  %v11612_v45 = vsub.f32 %v1743_v31, %v1900_v39  ;;  %v1903_v35 = vand.u32 4294901760, %v1744_v24  ;;  %v1649_v39 = vmul.f32 %v1632_v34, %v11216_v8  ;;  %v7547_v34 = vld [vmem:[%s14233_s1 + $0xc0] sm:$0xff] }
 0x2f3   :  { %v11641_v8 = vsub.f32 %v7544_v14, %v11614_v48  ;;  %v1984_v41 = vsub.f32 %v11638_v15, %v14402_v16 }
 0x2f4   :  { %14394 = vst [vmem:[#allocation16_spill] sm:$0xff] %v11610_v63  ;;  %v14251_v31 = vand.u32 4294901760, %v11612_v45  ;;  %9598 = vmatprep.subr.bf16.mxu1 %v11610_v63 }
 0x2f5   :  { %v1728_v36 = vpop.permute.xlu1 %1727  ;;  %9600 = vmatpush3.bf16.msra.mxu1 %v11610_v63  ;;  %14396 = vst [vmem:[#allocation18_spill] sm:$0xff] %v11641_v8  ;;  %v14405_v3 = vand.u32 4294901760, %v11641_v8 }
 0x2f6   :  { %v1745_v19 = vadd.f32 %v1728_v36, %v1649_v39  ;;  %v11650_v17 = vpack.c.bf16 %v14251_v31, %v14250_v10  ;;  %v11657_v36 = vsub.f32 %v1744_v24, %v1903_v35  ;;  %v2126_v39 = vsub.f32 %v11480_v44, %v2125_v12 }
 0x2f7   :  { %v11672_v10 = vand.u32 4294901760, %v7547_v34  ;;  %v11687_v24 = vsub.f32 %v7546_v58, %v11655_v20  ;;  %v1965_v58 = vand.u32 4294901760, %v1964_v57  ;;  %v1994_v23 = vsub.f32 %v11641_v8, %v14405_v3  ;;  %v7551_v57 = vld [vmem:[%s14233_s1 + $0xe0] sm:$0xff] }
 0x2f8   :  { %14397 = vst [vmem:[#allocation19_spill] sm:$0xff] %v11650_v17  ;;  %v1906_v14 = vand.u32 4294901760, %v1745_v19  ;;  %v2127_v6 = vand.u32 4294901760, %v2126_v39  ;;  %v14401_v17 = vand.u32 4294901760, %v11504_v43  ;;  %v2120_v39 = vand.u32 4294901760, %v2119_v28 }
 0x2f9   :  { %14400 = vst [vmem:[#allocation22_spill] sm:$0xff] %v11687_v24  ;;  %v14406_v16 = vand.u32 4294901760, %v11657_v36  ;;  %v14278_v28 = vand.u32 4294901760, %v11687_v24  ;;  %v14410_v8 = vand.u32 4294901760, %v11653_v46 }
 0x2fa   :  { %v11674_v31 = vpack.c.bf16 %v1906_v14, %v1903_v35  ;;  %v11676_v12 = vsub.f32 %v1745_v19, %v1906_v14  ;;  %v11689_v35 = vand.u32 4294901760, %v7548_v61  ;;  %v2140_v42 = vsub.f32 %v11504_v43, %v14401_v17 }
 0x2fb   :  { %v11705_v14 = vsub.f32 %v7547_v34, %v11672_v10  ;;  %v11707_v19 = vand.u32 4294901760, %v7549_v21  ;;  %v14404_v17 = vand.u32 4294901760, %v11500_v37  ;;  %v9609_v3 = vpack.c.bf16 %v2127_v6, %v2120_v39 }
 0x2fc   :  { %14399 = vst [vmem:[#allocation21_spill] sm:$0xff] %v11674_v31  ;;  %9602 = vmatprep.subr.bf16.mxu1 %v11674_v31  ;;  %v14407_v34 = vand.u32 4294901760, %v11676_v12  ;;  %v11726_v63 = vsub.f32 %v7548_v61, %v11689_v35  ;;  %v2141_v52 = vand.u32 4294901760, %v2140_v42  ;;  %v1985_v61 = vand.u32 4294901760, %v1984_v41 }
 0x2fd   :  { %9604 = vmatpush3.bf16.msra.mxu1 %v11674_v31  ;;  %14403 = vst [vmem:[#allocation23_spill] sm:$0xff] %v11705_v14  ;;  %v2133_v54 = vsub.f32 %v11500_v37, %v14404_v17  ;;  %v1975_v31 = vand.u32 4294901760, %v1974_v29  ;;  %v11728_v17 = vand.u32 4294901760, %v7550_v56  ;;  %v7552_v29 = vld [vmem:[%s14233_s1 + $0xe8] sm:$0xff]  ;;  %v11743_v42 = vand.u32 4294901760, %v7551_v57 }
 0x2fe   :  { %9606 = vmatprep.subr.bf16.mxu1 %v9605_v13  ;;  %v11722_v47 = vpack.c.bf16 %v14407_v34, %v14406_v16  ;;  %v2004_v16 = vsub.f32 %v11653_v46, %v14410_v8  ;;  %v1995_v6 = vand.u32 4294901760, %v1994_v23  ;;  %v14412_v39 = vand.u32 4294901760, %v11518_v7 }
 0x2ff   :  { %v2134_v49 = vand.u32 4294901760, %v2133_v54  ;;  %v2014_v41 = vsub.f32 %v11687_v24, %v14278_v28  ;;  %v11758_v34 = vand.u32 4294901760, %v7552_v29  ;;  %v2155_v54 = vand.u32 4294901760, %v2154_v4  ;;  %v7554_v4 = vld [vmem:[%s14233_s1 + $0xf8] sm:$0xff] }
 0x300   :  { %14408 = vst [vmem:[#allocation24_spill] sm:$0xff] %v11722_v47  ;;  %8598 = vmatmul.mubr.f32.vlgmr.msra.gmra.mrb[0].mxu1 %v1955_v38  ;;  %v11741_v38 = vsub.f32 %v7549_v21, %v11707_v19  ;;  %v2147_v8 = vsub.f32 %v11518_v7, %v14412_v39  ;;  %v2005_v47 = vand.u32 4294901760, %v2004_v16  ;;  %v14413_v39 = vand.u32 4294901760, %v11540_v11 }
 0x301   :  { %9608 = vmatpush3.bf16.msra.mxu1 %v9605_v13  ;;  %8600 = vmatprep.mubr.f32.mxu1 %v1965_v58  ;;  %v7553_v13 = vld [vmem:[%s14233_s1 + $0xf0] sm:$0xff]  ;;  %v11756_v58 = vsub.f32 %v7550_v56, %v11728_v17  ;;  %v9613_v23 = vpack.c.bf16 %v2141_v52, %v2134_v49  ;;  %v14414_v30 = vand.u32 4294901760, %v11705_v14  ;;  %v11768_v56 = vsub.f32 %v7551_v57, %v11743_v42 }
 0x302   :  { %14411 = vst [vmem:[#allocation25_spill] sm:$0xff] %v11741_v38  ;;  %9610 = vmatprep.subr.bf16.mxu1 %v9609_v3  ;;  %v2168_v46 = vsub.f32 %v11540_v11, %v14413_v39  ;;  %v11770_v24 = vand.u32 4294901760, %v7553_v13  ;;  %v2148_v52 = vand.u32 4294901760, %v2147_v8  ;;  %v2015_v16 = vand.u32 4294901760, %v2014_v41 }
 0x303   :  { %v2024_v28 = vsub.f32 %v11705_v14, %v14414_v30  ;;  %v14416_v30 = vand.u32 4294901760, %v11726_v63  ;;  %v11783_v49 = vsub.f32 %v7552_v29, %v11758_v34  ;;  %v14417_v14 = vand.u32 4294901760, %v11566_v33 }
 0x304   :  { %8601 = vmatmul.mubr.f32.gmra.mrb[2].mxu1 %v1975_v31  ;;  %v14415_v31 = vand.u32 4294901760, %v11536_v18  ;;  %v9617_v39 = vpack.c.bf16 %v2155_v54, %v2148_v52  ;;  %v2169_v21 = vand.u32 4294901760, %v2168_v46  ;;  %v11788_v15 = vand.u32 4294901760, %v7554_v4 }
 0x305   :  { %9612 = vmatpush3.bf16.msra.mxu1 %v9609_v3  ;;  %8603 = vmatprep.mubr.f32.mxu1 %v1985_v61  ;;  %v2034_v61 = vsub.f32 %v11726_v63, %v14416_v30  ;;  %v2182_v8 = vsub.f32 %v11566_v33, %v14417_v14  ;;  %v2025_v41 = vand.u32 4294901760, %v2024_v28  ;;  %v11795_v29 = vsub.f32 %v7553_v13, %v11770_v24 }
 0x306   :  { %9614 = vmatprep.subr.bf16.mxu1 %v9613_v23  ;;  %v2161_v3 = vsub.f32 %v11536_v18, %v14415_v31  ;;  %v14418_v31 = vand.u32 4294901760, %v11741_v38  ;;  %v14287_v28 = vand.u32 4294901760, %v11783_v49  ;;  %v14421_v57 = vand.u32 4294901760, %v11612_v45 }
 0x307   :  { %v2035_v54 = vand.u32 4294901760, %v2034_v61  ;;  %v14422_v61 = vand.u32 4294901760, %v11768_v56 }
 0x308   :  { %8604 = vmatmul.mubr.f32.gmra.mrb[4].mxu1 %v1995_v6  ;;  %v2044_v30 = vsub.f32 %v11741_v38, %v14418_v31  ;;  %v2162_v46 = vand.u32 4294901760, %v2161_v3  ;;  %v14419_v6 = vand.u32 4294901760, %v11559_v55  ;;  %v2183_v31 = vand.u32 4294901760, %v2182_v8 }
 0x309   :  { %9616 = vmatpush3.bf16.msra.mxu1 %v9613_v23  ;;  %8606 = vmatprep.mubr.f32.mxu1 %v2005_v47  ;;  %v14420_v23 = vand.u32 4294901760, %v11756_v58  ;;  %v2196_v13 = vsub.f32 %v11612_v45, %v14421_v57  ;;  %v11808_v3 = vsub.f32 %v7554_v4, %v11788_v15  ;;  %v2064_v38 = vsub.f32 %v11768_v56, %v14422_v61 }
 0x30a   :  { %9618 = vmatprep.subr.bf16.mxu1 %v9617_v39  ;;  %v2175_v14 = vsub.f32 %v11559_v55, %v14419_v6  ;;  %v9621_v52 = vpack.c.bf16 %v2169_v21, %v2162_v46  ;;  %v2045_v6 = vand.u32 4294901760, %v2044_v30  ;;  %v14423_v21 = vand.u32 4294901760, %v11600_v22 }
 0x30b   :  { %v2054_v47 = vsub.f32 %v11756_v58, %v14420_v23  ;;  %v2083_v23 = vand.u32 4294901760, %v11795_v29  ;;  %v2074_v4 = vsub.f32 %v11783_v49, %v14287_v28  ;;  %v2093_v61 = vand.u32 4294901760, %v11808_v3 }
 0x30c   :  { %8607 = vmatmul.mubr.f32.gmra.mrb[6].mxu1 %v2015_v16  ;;  %v2176_v16 = vand.u32 4294901760, %v2175_v14  ;;  %v2189_v8 = vsub.f32 %v11600_v22, %v14423_v21  ;;  %v2065_v14 = vand.u32 4294901760, %v2064_v38  ;;  %v14425_v28 = vand.u32 4294901760, %v11657_v36 }
 0x30d   :  { %9620 = vmatpush3.bf16.msra.mxu1 %v9617_v39  ;;  %8609 = vmatprep.mubr.f32.mxu1 %v2025_v41  ;;  %v2055_v46 = vand.u32 4294901760, %v2054_v47  ;;  %v2197_v39 = vand.u32 4294901760, %v2196_v13  ;;  %v14424_v41 = vand.u32 4294901760, %v11676_v12  ;;  %v2084_v47 = vsub.f32 %v11795_v29, %v2083_v23 }
 0x30e   :  { %9622 = vmatprep.subr.bf16.mxu1 %v9621_v52  ;;  %v9625_v57 = vpack.c.bf16 %v2183_v31, %v2176_v16  ;;  %v2190_v21 = vand.u32 4294901760, %v2189_v8  ;;  %v2075_v13 = vand.u32 4294901760, %v2074_v4  ;;  %v9645_v4 = vpack.c.bf16 %v11504_v43, %v11500_v37  ;;  %v14426_v43 = vld [vmem:[#allocation17_spill] sm:$0xff] }
 0x30f   :  { %v2210_v30 = vsub.f32 %v11676_v12, %v14424_v41  ;;  %v2085_v38 = vand.u32 4294901760, %v2084_v47  ;;  %v9665_v37 = vpack.c.bf16 %v11676_v12, %v11657_v36  ;;  %v14436_v12 = vld [vmem:[#allocation16_spill] sm:$0xff]  ;;  %v14441_v47 = vand.u32 4294901760, %v11595_v32 }
 0x310   :  { %8610 = vmatmul.mubr.f32.gmra.mrb[8].mxu1 %v2035_v54  ;;  %v2203_v54 = vsub.f32 %v11657_v36, %v14425_v28  ;;  %v9629_v31 = vpack.c.bf16 %v2197_v39, %v2190_v21  ;;  %v9637_v28 = vpack.c.bf16 %v11465_v59, %v11470_v26  ;;  %v9649_v59 = vpack.c.bf16 %v11522_v53, %v11518_v7  ;;  %v14427_v7 = vld [vmem:[#allocation8_spill] sm:$0xff]  ;;  %v14428_v53 = vld [vmem:[#allocation18_spill] sm:$0xff]  ;;  %v14442_v21 = vld [vmem:[#allocation7_spill] sm:$0xff] }
 0x311   :  { %9624 = vmatpush3.bf16.msra.mxu1 %v9621_v52  ;;  %8612 = vmatprep.mubr.f32.mxu1 %v2045_v6  ;;  %v2211_v16 = vand.u32 4294901760, %v2210_v30  ;;  %v2094_v52 = vsub.f32 %v11808_v3, %v2093_v61  ;;  %v9653_v26 = vpack.c.bf16 %v11540_v11, %v11536_v18  ;;  %v14429_v18 = vld [vmem:[#allocation20_spill] sm:$0xff]  ;;  %v14430_v11 = vld [vmem:[#allocation10_spill] sm:$0xff]  ;;  %v14438_v39 = vand.u32 4294901760, %v11422_v5 }
 0x312   :  { %9626 = vmatprep.subr.bf16.mxu1 %v9625_v57  ;;  %v2204_v6 = vand.u32 4294901760, %v2203_v54  ;;  %v14435_v36 = vld [vmem:[#allocation14_spill] sm:$0xff]  ;;  %v14443_v54 = vand.u32 4294901760, %v11606_v62 }
 0x313   :  { %v2095_v8 = vand.u32 4294901760, %v2094_v52  ;;  %v14439_v30 = vld [vmem:[#allocation6_spill] sm:$0xff]  ;;  %v14451_v52 = vld [vmem:[#allocation13_spill] sm:$0xff] }
 0x314   :  { %8613 = vmatmul.mubr.f32.gmra.mrb[10].mxu1 %v2055_v46  ;;  %v9633_v41 = vpack.c.bf16 %v2211_v16, %v2204_v6  ;;  %v9641_v46 = vpack.c.bf16 %v11480_v44, %v11472_v50  ;;  %v9657_v50 = vpack.c.bf16 %v11566_v33, %v11559_v55  ;;  %v9661_v44 = vpack.c.bf16 %v11612_v45, %v11600_v22  ;;  %v14431_v55 = vld [vmem:[#allocation22_spill] sm:$0xff]  ;;  %v14432_v33 = vld [vmem:[#allocation23_spill] sm:$0xff]  ;;  %v14433_v22 = vld [vmem:[#allocation12_spill] sm:$0xff] }
 0x315   :  { %9628 = vmatpush3.bf16.msra.mxu1 %v9625_v57  ;;  %8615 = vmatprep.mubr.f32.mxu1 %v2065_v14  ;;  %v14434_v45 = vld [vmem:[#allocation25_spill] sm:$0xff]  ;;  %v14440_v14 = vand.u32 4294901760, %v11572_v27  ;;  %v14450_v16 = vand.u32 4294901760, %v14432_v33 }
 0x316   :  { %9630 = vmatprep.subr.bf16.mxu1 %v9629_v31  ;;  %v14437_v57 = vld [vmem:[#allocation21_spill] sm:$0xff]  ;;  %v14453_v6 = vand.u32 4294901760, %v14434_v45 }
 0x318   :  { %8616 = vmatmul.mubr.f32.gmra.mrb[12].mxu1 %v2075_v13  ;;  %v14448_v13 = vld [vmem:[#allocation11_spill] sm:$0xff] }
 0x319   :  { %9632 = vmatpush3.bf16.msra.mxu1 %v9629_v31  ;;  %8618 = vmatprep.mubr.f32.mxu1 %v2085_v38  ;;  %v14445_v31 = vld [vmem:[#allocation9_spill] sm:$0xff]  ;;  %v14452_v38 = vand.u32 4294901760, %v11726_v63 }
 0x31a   :  { %9634 = vmatprep.subr.bf16.mxu1 %v9633_v41 }
 0x31c   :  { %8619 = vmatmul.mubr.f32.gmra.mrb[14].mxu1 %v2095_v8  ;;  %v14455_v8 = vand.u32 4294901760, %v11756_v58 }
 0x31d   :  { %9636 = vmatpush3.bf16.msra.mxu1 %v9633_v41  ;;  %8653 = vmatprep.mubr.f32.mxu1 %v11416_v1  ;;  %v14454_v41 = vld [vmem:[#allocation15_spill] sm:$0xff] }
 0x31e   :  { %9638 = vmatprep.subr.bf16.mxu1 %v9637_v28 }
 0x320   :  { %8654 = vmatmul.mubr.f32.vlgmr.msra.gmra.mrb[0].mxu1 %v11557_v51 }
 0x321   :  { %9640 = vmatpush3.bf16.msra.mxu1 %v9637_v28  ;;  %8656 = vmatprep.mubr.f32.mxu1 %v11574_v40  ;;  %v14456_v28 = vand.u32 4294901760, %v11768_v56 }
 0x322   :  { %9642 = vmatprep.subr.bf16.mxu1 %v9641_v46 }
 0x324   :  { %8657 = vmatmul.mubr.f32.gmra.mrb[2].mxu1 %v11581_v0 }
 0x325   :  { %9644 = vmatpush3.bf16.msra.mxu1 %v9641_v46  ;;  %8659 = vmatprep.mubr.f32.mxu1 %v11608_v2  ;;  %v14457_v46 = vld [vmem:[#allocation19_spill] sm:$0xff] }
 0x326   :  { %9646 = vmatprep.subr.bf16.mxu1 %v9645_v4 }
 0x328   :  { %8660 = vmatmul.mubr.f32.gmra.mrb[4].mxu1 %v11614_v48 }
 0x329   :  { %9648 = vmatpush3.bf16.msra.mxu1 %v9645_v4  ;;  %8662 = vmatprep.mubr.f32.mxu1 %v11623_v9  ;;  %v14459_v4 = vld [vmem:[#allocation24_spill] sm:$0xff] }
 0x32a   :  { %9650 = vmatprep.subr.bf16.mxu1 %v9649_v59 }
 0x32c   :  { %8663 = vmatmul.mubr.f32.gmra.mrb[6].mxu1 %v11655_v20 }
 0x32d   :  { %9652 = vmatpush3.bf16.msra.mxu1 %v9649_v59  ;;  %8665 = vmatprep.mubr.f32.mxu1 %v11672_v10 }
 0x32e   :  { %9654 = vmatprep.subr.bf16.mxu1 %v9653_v26 }
 0x330   :  { %8666 = vmatmul.mubr.f32.gmra.mrb[8].mxu1 %v11689_v35 }
 0x331   :  { %9656 = vmatpush3.bf16.msra.mxu1 %v9653_v26  ;;  %8668 = vmatprep.mubr.f32.mxu1 %v11707_v19 }
 0x332   :  { %9658 = vmatprep.subr.bf16.mxu1 %v9657_v50 }
 0x334   :  { %8669 = vmatmul.mubr.f32.gmra.mrb[10].mxu1 %v11728_v17 }
 0x335   :  { %9660 = vmatpush3.bf16.msra.mxu1 %v9657_v50  ;;  %8671 = vmatprep.mubr.f32.mxu1 %v11743_v42 }
 0x336   :  { %9662 = vmatprep.subr.bf16.mxu1 %v9661_v44 }
 0x338   :  { %8672 = vmatmul.mubr.f32.gmra.mrb[12].mxu1 %v11758_v34 }
 0x339   :  { %9664 = vmatpush3.bf16.msra.mxu1 %v9661_v44  ;;  %8674 = vmatprep.mubr.f32.mxu1 %v11770_v24 }
 0x33a   :  { %9666 = vmatprep.subr.bf16.mxu1 %v9665_v37 }
 0x33c   :  { %8675 = vmatmul.mubr.f32.gmra.mrb[14].mxu1 %v11788_v15 }
 0x33d   :  { %9668 = vmatpush3.bf16.msra.mxu1 %v9665_v37  ;;  %8709 = vmatprep.mubr.f32.mxu1 %v11422_v5  ;;  %v14444_v5 = vand.u32 4294901760, %v14426_v43 }
 0x33e   :  { %9670 = vmatprep.subr.bf16.mxu1 %v11468_v25 }
 0x340   :  { %8710 = vmatmul.mubr.f32.vlgmr.msra.gmra.mrb[0].mxu1 %v11572_v27  ;;  %v14446_v27 = vand.u32 4294901760, %v14428_v53 }
 0x341   :  { %9672 = vmatpush3.bf16.msra.mxu1 %v11468_v25  ;;  %8712 = vmatprep.mubr.f32.mxu1 %v11595_v32  ;;  %v14447_v32 = vand.u32 4294901760, %v14429_v18 }
 0x342   :  { %9674 = vmatprep.subr.bf16.mxu1 %v11478_v60 }
 0x344   :  { %8713 = vmatmul.mubr.f32.gmra.mrb[2].mxu1 %v11606_v62  ;;  %v14449_v62 = vand.u32 4294901760, %v14431_v55 }
 0x345   :  { %9676 = vmatpush3.bf16.msra.mxu1 %v11478_v60  ;;  %8715 = vmatprep.mubr.f32.mxu1 %v14426_v43 }
 0x346   :  { %9678 = vmatprep.subr.bf16.mxu1 %v14427_v7 }
 0x348   :  { %8716 = vmatmul.mubr.f32.gmra.mrb[4].mxu1 %v14428_v53 }
 0x349   :  { %9680 = vmatpush3.bf16.msra.mxu1 %v14427_v7  ;;  %8718 = vmatprep.mubr.f32.mxu1 %v14429_v18 }
 0x34a   :  { %9682 = vmatprep.subr.bf16.mxu1 %v14430_v11 }
 0x34c   :  { %8719 = vmatmul.mubr.f32.gmra.mrb[6].mxu1 %v14431_v55 }
 0x34d   :  { %9684 = vmatpush3.bf16.msra.mxu1 %v14430_v11  ;;  %8721 = vmatprep.mubr.f32.mxu1 %v14432_v33 }
 0x34e   :  { %9686 = vmatprep.subr.bf16.mxu1 %v14433_v22 }
 0x350   :  { %8722 = vmatmul.mubr.f32.gmra.mrb[8].mxu1 %v11726_v63  ;;  %v14458_v63 = vand.u32 4294901760, %v11783_v49 }
 0x351   :  { %9688 = vmatpush3.bf16.msra.mxu1 %v14433_v22  ;;  %8724 = vmatprep.mubr.f32.mxu1 %v14434_v45 }
 0x352   :  { %9690 = vmatprep.subr.bf16.mxu1 %v14435_v36 }
 0x354   :  { %8725 = vmatmul.mubr.f32.gmra.mrb[10].mxu1 %v11756_v58 }
 0x355   :  { %9692 = vmatpush3.bf16.msra.mxu1 %v14435_v36  ;;  %8727 = vmatprep.mubr.f32.mxu1 %v11768_v56 }
 0x356   :  { %9694 = vmatprep.subr.bf16.mxu1 %v14436_v12 }
 0x358   :  { %8728 = vmatmul.mubr.f32.gmra.mrb[12].mxu1 %v11783_v49 }
 0x359   :  { %9696 = vmatpush3.bf16.msra.mxu1 %v14436_v12  ;;  %8730 = vmatprep.mubr.f32.mxu1 %v11795_v29 }
 0x35a   :  { %9698 = vmatprep.subr.bf16.mxu1 %v14437_v57 }
 0x35c   :  { %8731 = vmatmul.mubr.f32.gmra.mrb[14].mxu1 %v11808_v3 }
 0x35d   :  { %9700 = vmatpush3.bf16.msra.mxu1 %v14437_v57  ;;  %8765 = vmatprep.mubr.f32.mxu1 %v14438_v39 }
 0x35e   :  { %9702 = vmatprep.subr.bf16.mxu1 %v14439_v30 }
 0x360   :  { %8766 = vmatmul.mubr.f32.vlgmr.msra.gmra.mrb[0].mxu1 %v14440_v14 }
 0x361   :  { %9704 = vmatpush3.bf16.msra.mxu1 %v14439_v30  ;;  %8768 = vmatprep.mubr.f32.mxu1 %v14441_v47 }
 0x362   :  { %9706 = vmatprep.subr.bf16.mxu1 %v14442_v21 }
 0x364   :  { %8769 = vmatmul.mubr.f32.gmra.mrb[2].mxu1 %v14443_v54 }
 0x365   :  { %9708 = vmatpush3.bf16.msra.mxu1 %v14442_v21  ;;  %8771 = vmatprep.mubr.f32.mxu1 %v14444_v5 }
 0x366   :  { %9710 = vmatprep.subr.bf16.mxu1 %v14445_v31 }
 0x368   :  { %8772 = vmatmul.mubr.f32.gmra.mrb[4].mxu1 %v14446_v27 }
 0x369   :  { %9712 = vmatpush3.bf16.msra.mxu1 %v14445_v31  ;;  %8774 = vmatprep.mubr.f32.mxu1 %v14447_v32 }
 0x36a   :  { %9714 = vmatprep.subr.bf16.mxu1 %v14448_v13 }
 0x36c   :  { %8775 = vmatmul.mubr.f32.gmra.mrb[6].mxu1 %v14449_v62 }
 0x36d   :  { %9716 = vmatpush3.bf16.msra.mxu1 %v14448_v13  ;;  %8777 = vmatprep.mubr.f32.mxu1 %v14450_v16 }
 0x36e   :  { %9718 = vmatprep.subr.bf16.mxu1 %v14451_v52 }
 0x370   :  { %8778 = vmatmul.mubr.f32.gmra.mrb[8].mxu1 %v14452_v38 }
 0x371   :  { %9720 = vmatpush3.bf16.msra.mxu1 %v14451_v52  ;;  %8780 = vmatprep.mubr.f32.mxu1 %v14453_v6 }
 0x372   :  { %9722 = vmatprep.subr.bf16.mxu1 %v14454_v41 }
 0x374   :  { %8781 = vmatmul.mubr.f32.gmra.mrb[10].mxu1 %v14455_v8 }
 0x375   :  { %9724 = vmatpush3.bf16.msra.mxu1 %v14454_v41  ;;  %8783 = vmatprep.mubr.f32.mxu1 %v14456_v28 }
 0x376   :  { %9726 = vmatprep.subr.bf16.mxu1 %v14457_v46 }
 0x378   :  { %8784 = vmatmul.mubr.f32.gmra.mrb[12].mxu1 %v14458_v63 }
 0x379   :  { %9728 = vmatpush3.bf16.msra.mxu1 %v14457_v46  ;;  %8786 = vmatprep.mubr.f32.mxu1 %v2083_v23 }
 0x37a   :  { %9730 = vmatprep.subr.bf16.mxu1 %v14459_v4 }
 0x37c   :  { %8787 = vmatmul.mubr.f32.gmra.mrb[14].mxu1 %v2093_v61 }
 0x37d   :  { %9732 = vmatpush3.bf16.msra.mxu1 %v14459_v4  ;;  %8821 = vmatprep.mubr.f32.mxu1 %v11416_v1 }
 0x37e   :  { %9734 = vmatprep.subr.bf16.mxu1 %v11468_v25 }
 0x380   :  { %8822 = vmatmul.mubr.f32.vlgmr.msra.gmra.mrb[0].mxu1 %v11557_v51 }
 0x381   :  { %9736 = vmatpush3.bf16.msra.mxu1 %v11468_v25  ;;  %8824 = vmatprep.mubr.f32.mxu1 %v11574_v40  ;;  %v1788_v25 = vpop.permute.xlu1 %1787 }
 0x382   :  { %9738 = vmatprep.subr.bf16.mxu1 %v11478_v60 }
 0x384   :  { %8825 = vmatmul.mubr.f32.gmra.mrb[2].mxu1 %v11581_v0 }
 0x385   :  { %9740 = vmatpush3.bf16.msra.mxu1 %v11478_v60  ;;  %8827 = vmatprep.mubr.f32.mxu1 %v11608_v2 }
 0x386   :  { %9742 = vmatprep.subr.bf16.mxu1 %v14427_v7 }
 0x388   :  { %8828 = vmatmul.mubr.f32.gmra.mrb[4].mxu1 %v11614_v48 }
 0x389   :  { %9744 = vmatpush3.bf16.msra.mxu1 %v14427_v7  ;;  %8830 = vmatprep.mubr.f32.mxu1 %v11623_v9 }
 0x38a   :  { %9746 = vmatprep.subr.bf16.mxu1 %v14430_v11 }
 0x38c   :  { %8831 = vmatmul.mubr.f32.gmra.mrb[6].mxu1 %v11655_v20 }
 0x38d   :  { %9748 = vmatpush3.bf16.msra.mxu1 %v14430_v11  ;;  %8833 = vmatprep.mubr.f32.mxu1 %v11672_v10 }
 0x38e   :  { %9750 = vmatprep.subr.bf16.mxu1 %v14433_v22 }
 0x390   :  { %8834 = vmatmul.mubr.f32.gmra.mrb[8].mxu1 %v11689_v35 }
 0x391   :  { %9752 = vmatpush3.bf16.msra.mxu1 %v14433_v22  ;;  %8836 = vmatprep.mubr.f32.mxu1 %v11707_v19 }
 0x392   :  { %9754 = vmatprep.subr.bf16.mxu1 %v14435_v36 }
 0x394   :  { %8837 = vmatmul.mubr.f32.gmra.mrb[10].mxu1 %v11728_v17 }
 0x395   :  { %9756 = vmatpush3.bf16.msra.mxu1 %v14435_v36  ;;  %8839 = vmatprep.mubr.f32.mxu1 %v11743_v42 }
 0x396   :  { %9758 = vmatprep.subr.bf16.mxu1 %v14436_v12 }
 0x398   :  { %8840 = vmatmul.mubr.f32.gmra.mrb[12].mxu1 %v11758_v34 }
 0x399   :  { %9760 = vmatpush3.bf16.msra.mxu1 %v14436_v12  ;;  %8842 = vmatprep.mubr.f32.mxu1 %v11770_v24 }
 0x39a   :  { %9762 = vmatprep.subr.bf16.mxu1 %v14437_v57 }
 0x39c   :  { %8843 = vmatmul.mubr.f32.gmra.mrb[14].mxu1 %v11788_v15 }
 0x39d   :  { %9764 = vmatpush3.bf16.msra.mxu1 %v14437_v57  ;;  %8877 = vmatprep.mubr.f32.mxu1 %v11416_v1  ;;  %v1783_v1 = vpop.permute.xlu0 %1782 }
 0x3a0   :  { %8878 = vmatmul.mubr.f32.vlgmr.msra.gmra.mrb[0].mxu1 %v11557_v51 }
 0x3a1   :  { %8880 = vmatprep.mubr.f32.mxu1 %v11574_v40 }
 0x3a4   :  { %8881 = vmatmul.mubr.f32.gmra.mrb[2].mxu1 %v11581_v0  ;;  %v1793_v0 = vpop.permute.xlu0 %1792 }
 0x3a5   :  { %8883 = vmatprep.mubr.f32.mxu1 %v11608_v2 }
 0x3a8   :  { %8884 = vmatmul.mubr.f32.gmra.mrb[4].mxu1 %v11614_v48  ;;  %v1803_v58 = vpop.permute.xlu0 %1802 }
 0x3a9   :  { %8886 = vmatprep.mubr.f32.mxu1 %v11623_v9 }
 0x3ac   :  { %8887 = vmatmul.mubr.f32.gmra.mrb[6].mxu1 %v11655_v20  ;;  %v1813_v11 = vpop.permute.xlu0 %1812 }
 0x3ad   :  { %8889 = vmatprep.mubr.f32.mxu1 %v11672_v10 }
 0x3b0   :  { %8890 = vmatmul.mubr.f32.gmra.mrb[8].mxu1 %v11689_v35  ;;  %v1823_v27 = vpop.permute.xlu0 %1822 }
 0x3b1   :  { %8892 = vmatprep.mubr.f32.mxu1 %v11707_v19 }
 0x3b4   :  { %8893 = vmatmul.mubr.f32.gmra.mrb[10].mxu1 %v11728_v17  ;;  %v1798_v17 = vpop.permute.xlu1 %1797 }
 0x3b5   :  { %8895 = vmatprep.mubr.f32.mxu1 %v11743_v42 }
 0x3b8   :  { %8896 = vmatmul.mubr.f32.gmra.mrb[12].mxu1 %v11758_v34  ;;  %v1808_v53 = vpop.permute.xlu1 %1807 }
 0x3b9   :  { %8898 = vmatprep.mubr.f32.mxu1 %v11770_v24 }
 0x3bc   :  { %8899 = vmatmul.mubr.f32.gmra.mrb[14].mxu1 %v11788_v15  ;;  %v1818_v5 = vpop.permute.xlu1 %1817 }
 0x473   :  { %v8879_v60 = vpop.f32.mrb[0].mxu1 }
 0x474   :  { %v10181_v51 = vadd.f32 %v8879_v60, %v1788_v25  ;;  %v3052_v40 = vpop.f32.mrb[1].mxu1  ;;  %v1833_v25 = vpop.permute.xlu0 %1832 }
 0x475   :  { %v10182_v10 = vadd.f32 %v3052_v40, %v1783_v1  ;;  %v1828_v1 = vpop.permute.xlu1 %1827 }
 0x476   :  { %v11993_v2 = vmax.f32 %v10181_v51, 0.0 }
 0x477   :  { %v11995_v48 = vmax.f32 %v10182_v10, 0.0  ;;  %v8882_v9 = vpop.f32.mrb[2].mxu1 }
 0x478   :  { %v3064_v20 = vpop.f32.mrb[3].mxu1  ;;  %v3165_v35 = vsel %vm1249_vm0, %v11993_v2, 0.0  ;;  %v3227_v24 = vmul.f32 %v11993_v2, %v11993_v2  ;;  %v10183_v56 = vadd.f32 %v8882_v9, %v1798_v17  ;;  %v1843_v17 = vpop.permute.xlu0 %1842 }
 0x479   :  { %v10184_v19 = vadd.f32 %v3064_v20, %v1793_v0  ;;  %3166 = vadd.xlane.f32.xlu1 %v3165_v35  ;;  %v3162_v15 = vsel %vm1249_vm0, %v11995_v48, 0.0  ;;  %v3226_v29 = vmul.f32 %v11995_v48, %v11995_v48 }
 0x47a   :  { %3163 = vadd.xlane.f32.xlu0 %v3162_v15  ;;  %v3245_v23 = vsel %vm1249_vm0, %v3227_v24, 0.0  ;;  %v12012_v50 = vmax.f32 %v10183_v56, 0.0  ;;  %v1838_v24 = vpop.permute.xlu1 %1837 }
 0x47b   :  { %v12003_v34 = vmax.f32 %v10184_v19, 0.0  ;;  %v8885_v42 = vpop.f32.mrb[4].mxu1  ;;  %v3242_v43 = vsel %vm1249_vm0, %v3226_v29, 0.0 }
 0x47c   :  { %v3076_v49 = vpop.f32.mrb[5].mxu1  ;;  %v10185_v55 = vadd.f32 %v8885_v42, %v1808_v53  ;;  %v3171_v22 = vsel %vm1249_vm0, %v12012_v50, 0.0  ;;  %v3229_v12 = vmul.f32 %v12012_v50, %v12012_v50 }
 0x47d   :  { %v10186_v3 = vadd.f32 %v3076_v49, %v1803_v58  ;;  %v3168_v61 = vsel %vm1249_vm0, %v12003_v34, 0.0  ;;  %v3228_v59 = vmul.f32 %v12003_v34, %v12003_v34 }
 0x47e   :  { %3246 = vadd.xlane.f32.xlu0 %v3245_v23  ;;  %3169 = vadd.xlane.f32.xlu1 %v3168_v61  ;;  %v12026_v30 = vmax.f32 %v10185_v55, 0.0  ;;  %v3251_v21 = vsel %vm1249_vm0, %v3229_v12, 0.0 }
 0x47f   :  { %v8888_v26 = vpop.f32.mrb[6].mxu1  ;;  %v12014_v37 = vmax.f32 %v10186_v3, 0.0  ;;  %v3248_v7 = vsel %vm1249_vm0, %v3228_v59, 0.0 }
 0x480   :  { %v3088_v44 = vpop.f32.mrb[7].mxu1  ;;  %v10187_v32 = vadd.f32 %v8888_v26, %v1818_v5  ;;  %v3177_v62 = vsel %vm1249_vm0, %v12026_v30, 0.0  ;;  %v3231_v38 = vmul.f32 %v12026_v30, %v12026_v30 }
 0x481   :  { %v10188_v45 = vadd.f32 %v3088_v44, %v1813_v11  ;;  %v3174_v36 = vsel %vm1249_vm0, %v12014_v37, 0.0  ;;  %v3230_v57 = vmul.f32 %v12014_v37, %v12014_v37  ;;  %v1848_v44 = vpop.permute.xlu1 %1847 }
 0x482   :  { %3243 = vadd.xlane.f32.xlu0 %v3242_v43  ;;  %3249 = vadd.xlane.f32.xlu1 %v3248_v7  ;;  %v12040_v8 = vmax.f32 %v10187_v32, 0.0  ;;  %v3257_v63 = vsel %vm1249_vm0, %v3231_v38, 0.0  ;;  %v1853_v43 = vpop.permute.xlu0 %1852 }
 0x483   :  { %v8891_v18 = vpop.f32.mrb[8].mxu1  ;;  %v12028_v47 = vmax.f32 %v10188_v45, 0.0  ;;  %v3254_v54 = vsel %vm1249_vm0, %v3230_v57, 0.0 }
 0x484   :  { %v3100_v33 = vpop.f32.mrb[9].mxu1  ;;  %v10189_v60 = vadd.f32 %v8891_v18, %v1828_v1  ;;  %v3183_v51 = vsel %vm1249_vm0, %v12040_v8, 0.0  ;;  %v3233_v0 = vmul.f32 %v12040_v8, %v12040_v8 }
 0x485   :  { %v10190_v16 = vadd.f32 %v3100_v33, %v1823_v27  ;;  %v3180_v52 = vsel %vm1249_vm0, %v12028_v47, 0.0  ;;  %v3232_v6 = vmul.f32 %v12028_v47, %v12028_v47  ;;  %v1858_v57 = vpop.permute.xlu1 %1857 }
 0x486   :  { %3172 = vadd.xlane.f32.xlu0 %v3171_v22  ;;  %3175 = vadd.xlane.f32.xlu1 %v3174_v36  ;;  %v12054_v20 = vmax.f32 %v10189_v60, 0.0  ;;  %v3263_v19 = vsel %vm1249_vm0, %v3233_v0, 0.0 }
 0x487   :  { %v8894_v39 = vpop.f32.mrb[10].mxu1  ;;  %v12042_v46 = vmax.f32 %v10190_v16, 0.0  ;;  %v3260_v4 = vsel %vm1249_vm0, %v3232_v6, 0.0 }
 0x488   :  { %v3112_v14 = vpop.f32.mrb[11].mxu1  ;;  %v10191_v42 = vadd.f32 %v8894_v39, %v1838_v24  ;;  %v3189_v58 = vsel %vm1249_vm0, %v12054_v20, 0.0  ;;  %v3235_v29 = vmul.f32 %v12054_v20, %v12054_v20 }
 0x489   :  { %v10192_v40 = vadd.f32 %v3112_v14, %v1833_v25  ;;  %v3186_v10 = vsel %vm1249_vm0, %v12042_v46, 0.0  ;;  %v3234_v9 = vmul.f32 %v12042_v46, %v12042_v46 }
 0x48a   :  { %3252 = vadd.xlane.f32.xlu0 %v3251_v21  ;;  %3255 = vadd.xlane.f32.xlu1 %v3254_v54  ;;  %v12068_v23 = vmax.f32 %v10191_v42, 0.0  ;;  %v3269_v59 = vsel %vm1249_vm0, %v3235_v29, 0.0 }
 0x48b   :  { %v8897_v31 = vpop.f32.mrb[12].mxu1  ;;  %v12056_v35 = vmax.f32 %v10192_v40, 0.0  ;;  %v3266_v15 = vsel %vm1249_vm0, %v3234_v9, 0.0 }
 0x48c   :  { %v3124_v13 = vpop.f32.mrb[13].mxu1  ;;  %v10193_v7 = vadd.f32 %v8897_v31, %v1848_v44  ;;  %v3195_v53 = vsel %vm1249_vm0, %v12068_v23, 0.0  ;;  %v3237_v55 = vmul.f32 %v12068_v23, %v12068_v23 }
 0x48d   :  { %v10194_v56 = vadd.f32 %v3124_v13, %v1843_v17  ;;  %v3192_v49 = vsel %vm1249_vm0, %v12056_v35, 0.0  ;;  %v3236_v3 = vmul.f32 %v12056_v35, %v12056_v35 }
 0x48e   :  { %3178 = vadd.xlane.f32.xlu0 %v3177_v62  ;;  %3181 = vadd.xlane.f32.xlu1 %v3180_v52  ;;  %v12082_v22 = vmax.f32 %v10193_v7, 0.0  ;;  %v3275_v36 = vsel %vm1249_vm0, %v3237_v55, 0.0 }
 0x48f   :  { %v8900_v41 = vpop.f32.mrb[14].mxu1  ;;  %v12070_v61 = vmax.f32 %v10194_v56, 0.0  ;;  %v3272_v26 = vsel %vm1249_vm0, %v3236_v3, 0.0 }
 0x490   :  { %v3136_v28 = vpop.f32.mrb[15].mxu1  ;;  %v10195_v39 = vadd.f32 %v8900_v41, %v1858_v57  ;;  %v3201_v14 = vsel %vm1249_vm0, %v12082_v22, 0.0  ;;  %v3239_v54 = vmul.f32 %v12082_v22, %v12082_v22 }
 0x491   :  { %v10196_v18 = vadd.f32 %v3136_v28, %v1853_v43  ;;  %v3198_v11 = vsel %vm1249_vm0, %v12070_v61, 0.0  ;;  %v3238_v33 = vmul.f32 %v12070_v61, %v12070_v61 }
 0x492   :  { %3258 = vadd.xlane.f32.xlu0 %v3257_v63  ;;  %3261 = vadd.xlane.f32.xlu1 %v3260_v4  ;;  %v12096_v31 = vmax.f32 %v10195_v39, 0.0  ;;  %v3281_v27 = vsel %vm1249_vm0, %v3239_v54, 0.0 }
 0x493   :  { %v12084_v45 = vmax.f32 %v10196_v18, 0.0  ;;  %v3278_v12 = vsel %vm1249_vm0, %v3238_v33, 0.0 }
 0x494   :  { %v3207_v13 = vsel %vm1249_vm0, %v12096_v31, 0.0  ;;  %v3241_v62 = vmul.f32 %v12096_v31, %v12096_v31 }
 0x495   :  { %v3204_v21 = vsel %vm1249_vm0, %v12084_v45, 0.0  ;;  %v3240_v5 = vmul.f32 %v12084_v45, %v12084_v45 }
 0x496   :  { %3184 = vadd.xlane.f32.xlu0 %v3183_v51  ;;  %3187 = vadd.xlane.f32.xlu1 %v3186_v10  ;;  %v3287_v16 = vsel %vm1249_vm0, %v3241_v62, 0.0 }
 0x497   :  { %v3284_v32 = vsel %vm1249_vm0, %v3240_v5, 0.0  ;;  %v7572_v5 = vld [vmem:[%s14235_s3 + $0x88] sm:$0xff] }
 0x49a   :  { %3264 = vadd.xlane.f32.xlu0 %v3263_v19  ;;  %3267 = vadd.xlane.f32.xlu1 %v3266_v15 }
 0x49e   :  { %3190 = vadd.xlane.f32.xlu0 %v3189_v58  ;;  %3193 = vadd.xlane.f32.xlu1 %v3192_v49 }
 0x4a2   :  { %3270 = vadd.xlane.f32.xlu0 %v3269_v59  ;;  %3273 = vadd.xlane.f32.xlu1 %v3272_v26 }
 0x4a6   :  { %3196 = vadd.xlane.f32.xlu0 %v3195_v53  ;;  %3199 = vadd.xlane.f32.xlu1 %v3198_v11 }
 0x4aa   :  { %3276 = vadd.xlane.f32.xlu0 %v3275_v36  ;;  %3279 = vadd.xlane.f32.xlu1 %v3278_v12 }
 0x4ae   :  { %3202 = vadd.xlane.f32.xlu0 %v3201_v14  ;;  %3205 = vadd.xlane.f32.xlu1 %v3204_v21 }
 0x4b2   :  { %3282 = vadd.xlane.f32.xlu0 %v3281_v27  ;;  %3285 = vadd.xlane.f32.xlu1 %v3284_v32 }
 0x4b6   :  { %3208 = vadd.xlane.f32.xlu0 %v3207_v13 }
 0x4ba   :  { %3288 = vadd.xlane.f32.xlu0 %v3287_v16 }
 0x506   :  { %v3167_v52 = vpop.xlane.xlu1 %3166 }
 0x507   :  { %v3164_v38 = vpop.xlane.xlu0 %3163  ;;  %v12105_v6 = vmul.f32 0.125, %v3167_v52 }
 0x508   :  { %v12107_v41 = vmul.f32 0.125, %v3164_v38 }
 0x509   :  { %v3307_v4 = vmul.f32 %v12105_v6, %v12105_v6 }
 0x50a   :  { %v3306_v51 = vmul.f32 %v12107_v41, %v12107_v41 }
 0x50b   :  { %v3170_v28 = vpop.xlane.xlu1 %3169  ;;  %v3247_v63 = vpop.xlane.xlu0 %3246 }
 0x50c   :  { %v12111_v1 = vmul.f32 0.125, %v3170_v28  ;;  %v3291_v25 = vmul.f32 0.125, %v3247_v63 }
 0x50e   :  { %v3323_v60 = vsub.f32 %v3291_v25, %v3307_v4  ;;  %v3308_v0 = vmul.f32 %v12111_v1, %v12111_v1  ;;  %v7573_v25 = vld [vmem:[%s14235_s3 + $0x90] sm:$0xff] }
 0x50f   :  { %v3250_v40 = vpop.xlane.xlu1 %3249  ;;  %v3244_v10 = vpop.xlane.xlu0 %3243 }
 0x510   :  { %v3339_v9 = vmax.f32 %v3323_v60, 0.0  ;;  %v3292_v19 = vmul.f32 0.125, %v3250_v40  ;;  %v3290_v15 = vmul.f32 0.125, %v3244_v10  ;;  %v7571_v10 = vld [vmem:[%s14235_s3 + $0x80] sm:$0xff] }
 0x512   :  { %v3372_v24 = vadd.f32 1e-05, %v3339_v9  ;;  %v3324_v17 = vsub.f32 %v3292_v19, %v3308_v0  ;;  %v3322_v42 = vsub.f32 %v3290_v15, %v3306_v51 }
 0x513   :  { %v3176_v58 = vpop.xlane.xlu1 %3175  ;;  %v3173_v56 = vpop.xlane.xlu0 %3172 }
 0x514   :  { %10589 = vrsqrt.f32 %v3372_v24  ;;  %v3340_v49 = vmax.f32 %v3324_v17, 0.0  ;;  %v3338_v29 = vmax.f32 %v3322_v42, 0.0  ;;  %v12117_v3 = vmul.f32 0.125, %v3176_v58 }
 0x515   :  { %v12119_v59 = vmul.f32 0.125, %v3173_v56  ;;  %v7589_v56 = vld [vmem:[%s14236_s4 + $0x90] sm:$0xff] }
 0x516   :  { %v3373_v26 = vadd.f32 1e-05, %v3340_v49  ;;  %v3371_v44 = vadd.f32 1e-05, %v3338_v29  ;;  %v3310_v43 = vmul.f32 %v12117_v3, %v12117_v3 }
 0x517   :  { %v3256_v7 = vpop.xlane.xlu1 %3255  ;;  %v3253_v53 = vpop.xlane.xlu0 %3252  ;;  %v3309_v18 = vmul.f32 %v12119_v59, %v12119_v59 }
 0x518   :  { %10591 = vrsqrt.f32 %v3373_v26  ;;  %v3294_v11 = vmul.f32 0.125, %v3256_v7  ;;  %v3293_v55 = vmul.f32 0.125, %v3253_v53  ;;  %v7588_v7 = vld [vmem:[%s14236_s4 + $0x88] sm:$0xff] }
 0x519   :  { %10593 = vrsqrt.f32 %v3371_v44 }
 0x51a   :  { %v3326_v33 = vsub.f32 %v3294_v11, %v3310_v43  ;;  %v3325_v36 = vsub.f32 %v3293_v55, %v3309_v18 }
 0x51b   :  { %v3182_v12 = vpop.xlane.xlu1 %3181  ;;  %v3179_v57 = vpop.xlane.xlu0 %3178 }
 0x51c   :  { %v3342_v39 = vmax.f32 %v3326_v33, 0.0  ;;  %v3341_v14 = vmax.f32 %v3325_v36, 0.0  ;;  %v12125_v21 = vmul.f32 0.125, %v3182_v12  ;;  %v12127_v54 = vmul.f32 0.125, %v3179_v57 }
 0x51e   :  { %v10590_v27 = vpop.eup %10589  ;;  %v3375_v32 = vadd.f32 1e-05, %v3342_v39  ;;  %v3374_v13 = vadd.f32 1e-05, %v3341_v14  ;;  %v3312_v62 = vmul.f32 %v12125_v21, %v12125_v21  ;;  %v3311_v28 = vmul.f32 %v12127_v54, %v12127_v54 }
 0x51f   :  { %v3262_v16 = vpop.xlane.xlu1 %3261  ;;  %v3259_v52 = vpop.xlane.xlu0 %3258  ;;  %v3404_v38 = vmul.f32 %v10590_v27, %v7572_v5  ;;  %v7574_v5 = vld [vmem:[%s14235_s3 + $0x98] sm:$0xff] }
 0x520   :  { %10595 = vrsqrt.f32 %v3375_v32  ;;  %v3296_v63 = vmul.f32 0.125, %v3262_v16  ;;  %v3295_v4 = vmul.f32 0.125, %v3259_v52 }
 0x521   :  { %10597 = vrsqrt.f32 %v3374_v13  ;;  %3475 = vperm.xlu0 %10555, %v3404_v38   ;;  %v3437_v26 = vmul.f32 %v3404_v38, %v12105_v6  ;;  %v7575_v6 = vld [vmem:[%s14235_s3 + $0xa0] sm:$0xff] }
 0x522   :  { %v10592_v60 = vpop.eup %10591  ;;  %v3328_v51 = vsub.f32 %v3296_v63, %v3312_v62  ;;  %v3327_v40 = vsub.f32 %v3295_v4, %v3311_v28  ;;  %v7591_v63 = vld [vmem:[%s14236_s4 + $0xa0] sm:$0xff] }
 0x523   :  { %v10594_v0 = vpop.eup %10593  ;;  %v3188_v9 = vpop.xlane.xlu1 %3187  ;;  %v3405_v15 = vmul.f32 %v10592_v60, %v7573_v25  ;;  %v3453_v12 = vsub.f32 %v7588_v7, %v3437_v26  ;;  %v7576_v7 = vld [vmem:[%s14235_s3 + $0xa8] sm:$0xff] }
 0x524   :  { %v3185_v19 = vpop.xlane.xlu0 %3184  ;;  %v3344_v24 = vmax.f32 %v3328_v51, 0.0  ;;  %v3343_v17 = vmax.f32 %v3327_v40, 0.0  ;;  %v12142_v42 = vmul.f32 0.125, %v3188_v9  ;;  %v3403_v49 = vmul.f32 %v10594_v0, %v7571_v10  ;;  %v7587_v10 = vld [vmem:[%s14236_s4 + $0x80] sm:$0xff] }
 0x525   :  { %v12144_v58 = vmul.f32 0.125, %v3185_v19  ;;  %3480 = vperm.xlu0 %10555, %v3405_v15   ;;  %v3438_v29 = vmul.f32 %v3405_v15, %v12111_v1 }
 0x526   :  { %v3377_v44 = vadd.f32 1e-05, %v3344_v24  ;;  %v3376_v43 = vadd.f32 1e-05, %v3343_v17  ;;  %v3314_v53 = vmul.f32 %v12142_v42, %v12142_v42  ;;  %3470 = vperm.xlu1 %10556, %v3403_v49   ;;  %v3436_v60 = vmul.f32 %v3403_v49, %v12107_v41  ;;  %v7577_v41 = vld [vmem:[%s14235_s3 + $0xb0] sm:$0xff] }
 0x527   :  { %v3268_v18 = vpop.xlane.xlu1 %3267  ;;  %v3454_v55 = vsub.f32 %v7589_v56, %v3438_v29  ;;  %v3313_v33 = vmul.f32 %v12144_v58, %v12144_v58 }
 0x528   :  { %v3265_v11 = vpop.xlane.xlu0 %3264  ;;  %10599 = vrsqrt.f32 %v3377_v44  ;;  %v3298_v1 = vmul.f32 0.125, %v3268_v18  ;;  %v3452_v56 = vsub.f32 %v7587_v10, %v3436_v60  ;;  %v7578_v10 = vld [vmem:[%s14235_s3 + $0xb8] sm:$0xff] }
 0x529   :  { %v3297_v36 = vmul.f32 0.125, %v3265_v11  ;;  %10601 = vrsqrt.f32 %v3376_v43  ;;  %3576 = vperm.xlu0 %10555, %v3454_v55   ;;  %v7590_v43 = vld [vmem:[%s14236_s4 + $0x98] sm:$0xff] }
 0x52a   :  { %v10596_v57 = vpop.eup %10595  ;;  %v3330_v39 = vsub.f32 %v3298_v1, %v3314_v53  ;;  %3571 = vperm.xlu1 %10556, %v3453_v12  }
 0x52b   :  { %v3329_v14 = vsub.f32 %v3297_v36, %v3313_v33  ;;  %v10598_v27 = vpop.eup %10597  ;;  %v3194_v32 = vpop.xlane.xlu1 %3193  ;;  %v3407_v62 = vmul.f32 %v10596_v57, %v7575_v6  ;;  %v7593_v6 = vld [vmem:[%s14236_s4 + $0xb0] sm:$0xff] }
 0x52c   :  { %v3191_v13 = vpop.xlane.xlu0 %3190  ;;  %v3346_v16 = vmax.f32 %v3330_v39, 0.0  ;;  %v12164_v38 = vmul.f32 0.125, %v3194_v32  ;;  %v3406_v4 = vmul.f32 %v10598_v27, %v7574_v5 }
 0x52d   :  { %v3345_v52 = vmax.f32 %v3329_v14, 0.0  ;;  %v12166_v28 = vmul.f32 0.125, %v3191_v13  ;;  %3490 = vperm.xlu0 %10555, %v3407_v62   ;;  %v3440_v25 = vmul.f32 %v3407_v62, %v12117_v3 }
 0x52e   :  { %v3379_v51 = vadd.f32 1e-05, %v3346_v16  ;;  %v3316_v0 = vmul.f32 %v12164_v38, %v12164_v38  ;;  %3485 = vperm.xlu1 %10556, %v3406_v4   ;;  %v3439_v49 = vmul.f32 %v3406_v4, %v12119_v59 }
 0x52f   :  { %v3378_v40 = vadd.f32 1e-05, %v3345_v52  ;;  %v3274_v9 = vpop.xlane.xlu1 %3273  ;;  %v3456_v15 = vsub.f32 %v7591_v63, %v3440_v25  ;;  %v3315_v24 = vmul.f32 %v12166_v28, %v12166_v28 }
 0x530   :  { %v3271_v19 = vpop.xlane.xlu0 %3270  ;;  %10603 = vrsqrt.f32 %v3379_v51  ;;  %v3300_v3 = vmul.f32 0.125, %v3274_v9  ;;  %v3455_v12 = vsub.f32 %v7590_v43, %v3439_v49 }
 0x531   :  { %v3299_v17 = vmul.f32 0.125, %v3271_v19  ;;  %10605 = vrsqrt.f32 %v3378_v40  ;;  %3586 = vperm.xlu0 %10555, %v3456_v15   ;;  %v7592_v40 = vld [vmem:[%s14236_s4 + $0xa8] sm:$0xff] }
 0x532   :  { %v10600_v29 = vpop.eup %10599  ;;  %v3332_v26 = vsub.f32 %v3300_v3, %v3316_v0  ;;  %3566 = vperm.xlu1 %10556, %v3452_v56  }
 0x533   :  { %v3331_v44 = vsub.f32 %v3299_v17, %v3315_v24  ;;  %v10602_v53 = vpop.eup %10601  ;;  %v3200_v18 = vpop.xlane.xlu1 %3199  ;;  %v3409_v55 = vmul.f32 %v10600_v29, %v7577_v41  ;;  %v7595_v41 = vld [vmem:[%s14236_s4 + $0xc0] sm:$0xff] }
 0x534   :  { %v3197_v11 = vpop.xlane.xlu0 %3196  ;;  %v3348_v33 = vmax.f32 %v3332_v26, 0.0  ;;  %v12190_v36 = vmul.f32 0.125, %v3200_v18  ;;  %v3408_v39 = vmul.f32 %v10602_v53, %v7576_v7 }
 0x535   :  { %v3347_v1 = vmax.f32 %v3331_v44, 0.0  ;;  %v12192_v59 = vmul.f32 0.125, %v3197_v11  ;;  %3500 = vperm.xlu0 %10555, %v3409_v55   ;;  %v3442_v57 = vmul.f32 %v3409_v55, %v12125_v21  ;;  %v7579_v21 = vld [vmem:[%s14235_s3 + $0xc0] sm:$0xff] }
 0x536   :  { %v3381_v14 = vadd.f32 1e-05, %v3348_v33  ;;  %v3318_v27 = vmul.f32 %v12190_v36, %v12190_v36  ;;  %3581 = vperm.xlu1 %10556, %v3455_v12   ;;  %v3441_v4 = vmul.f32 %v3408_v39, %v12127_v54 }
 0x537   :  { %v3380_v5 = vadd.f32 1e-05, %v3347_v1  ;;  %v3280_v32 = vpop.xlane.xlu1 %3279  ;;  %v3458_v62 = vsub.f32 %v7593_v6, %v3442_v57  ;;  %v3317_v16 = vmul.f32 %v12192_v59, %v12192_v59 }
 0x538   :  { %v3277_v13 = vpop.xlane.xlu0 %3276  ;;  %10607 = vrsqrt.f32 %v3381_v14  ;;  %v3302_v52 = vmul.f32 0.125, %v3280_v32  ;;  %v3457_v56 = vsub.f32 %v7592_v40, %v3441_v4  ;;  %v7580_v14 = vld [vmem:[%s14235_s3 + $0xc8] sm:$0xff] }
 0x539   :  { %v3301_v63 = vmul.f32 0.125, %v3277_v13  ;;  %10609 = vrsqrt.f32 %v3380_v5  ;;  %3596 = vperm.xlu0 %10555, %v3458_v62  }
 0x53a   :  { %v10604_v25 = vpop.eup %10603  ;;  %v3334_v60 = vsub.f32 %v3302_v52, %v3318_v27  ;;  %3495 = vperm.xlu1 %10556, %v3408_v39   ;;  %v7594_v39 = vld [vmem:[%s14236_s4 + $0xb8] sm:$0xff] }
 0x53b   :  { %v3333_v51 = vsub.f32 %v3301_v63, %v3317_v16  ;;  %v10606_v0 = vpop.eup %10605  ;;  %v3206_v9 = vpop.xlane.xlu1 %3205  ;;  %v3411_v15 = vmul.f32 %v10604_v25, %v7579_v21 }
 0x53c   :  { %v3203_v19 = vpop.xlane.xlu0 %3202  ;;  %v3350_v24 = vmax.f32 %v3334_v60, 0.0  ;;  %v12212_v17 = vmul.f32 0.125, %v3206_v9  ;;  %v3410_v29 = vmul.f32 %v10606_v0, %v7578_v10  ;;  %v7583_v0 = vld [vmem:[%s14235_s3 + $0xe0] sm:$0xff] }
 0x53d   :  { %v3349_v3 = vmax.f32 %v3333_v51, 0.0  ;;  %v12214_v54 = vmul.f32 0.125, %v3203_v19  ;;  %3510 = vperm.xlu0 %10555, %v3411_v15   ;;  %v3444_v49 = vmul.f32 %v3411_v15, %v12142_v42  ;;  %v7581_v42 = vld [vmem:[%s14235_s3 + $0xd0] sm:$0xff]  ;;  %v7596_v15 = vld [vmem:[%s14236_s4 + $0xc8] sm:$0xff] }
 0x53e   :  { %v3383_v26 = vadd.f32 1e-05, %v3350_v24  ;;  %v3320_v43 = vmul.f32 %v12212_v17, %v12212_v17  ;;  %3591 = vperm.xlu1 %10556, %v3457_v56   ;;  %v3443_v1 = vmul.f32 %v3410_v29, %v12144_v58  ;;  %v7597_v58 = vld [vmem:[%s14236_s4 + $0xd0] sm:$0xff]  ;;  %v7582_v24 = vld [vmem:[%s14235_s3 + $0xd8] sm:$0xff] }
 0x53f   :  { %v3382_v44 = vadd.f32 1e-05, %v3349_v3  ;;  %v3286_v7 = vpop.xlane.xlu1 %3285  ;;  %v3460_v18 = vsub.f32 %v7595_v41, %v3444_v49  ;;  %v3319_v11 = vmul.f32 %v12214_v54, %v12214_v54  ;;  %v7599_v49 = vld [vmem:[%s14236_s4 + $0xe0] sm:$0xff] }
 0x540   :  { %v3283_v53 = vpop.xlane.xlu0 %3282  ;;  %10611 = vrsqrt.f32 %v3383_v26  ;;  %v3304_v55 = vmul.f32 0.125, %v3286_v7  ;;  %v3459_v52 = vsub.f32 %v7594_v39, %v3443_v1  ;;  %v7585_v7 = vld [vmem:[%s14235_s3 + $0xf0] sm:$0xff] }
 0x541   :  { %v3303_v33 = vmul.f32 0.125, %v3283_v53  ;;  %10613 = vrsqrt.f32 %v3382_v44  ;;  %3606 = vperm.xlu0 %10555, %v3460_v18  }
 0x542   :  { %v10608_v6 = vpop.eup %10607  ;;  %v3336_v12 = vsub.f32 %v3304_v55, %v3320_v43  ;;  %3505 = vperm.xlu1 %10556, %v3410_v29  }
 0x543   :  { %v3335_v57 = vsub.f32 %v3303_v33, %v3319_v11  ;;  %v10610_v5 = vpop.eup %10609  ;;  %v3413_v32 = vmul.f32 %v10608_v6, %v7581_v42  ;;  %v7598_v11 = vld [vmem:[%s14236_s4 + $0xd8] sm:$0xff]  ;;  %v7601_v42 = vld [vmem:[%s14236_s4 + $0xf0] sm:$0xff] }
 0x544   :  { %v3209_v27 = vpop.xlane.xlu0 %3208  ;;  %v3352_v13 = vmax.f32 %v3336_v12, 0.0  ;;  %v3412_v21 = vmul.f32 %v10610_v5, %v7580_v14  ;;  %v7619_v14 = vld [vmem:[%s14234_s2 + $0x100] sm:$0xff]  ;;  %v7600_v5 = vld [vmem:[%s14236_s4 + $0xe8] sm:$0xff] }
 0x545   :  { %v3351_v62 = vmax.f32 %v3335_v57, 0.0  ;;  %v12234_v16 = vmul.f32 0.125, %v3209_v27  ;;  %3520 = vperm.xlu0 %10555, %v3413_v32   ;;  %v3446_v63 = vmul.f32 %v3413_v32, %v12164_v38  ;;  %v7586_v27 = vld [vmem:[%s14235_s3 + $0xf8] sm:$0xff] }
 0x546   :  { %v3385_v4 = vadd.f32 1e-05, %v3352_v13  ;;  %3601 = vperm.xlu1 %10556, %v3459_v52   ;;  %v3445_v9 = vmul.f32 %v3412_v21, %v12166_v28 }
 0x547   :  { %v3384_v25 = vadd.f32 1e-05, %v3351_v62  ;;  %v3462_v51 = vsub.f32 %v7597_v58, %v3446_v63  ;;  %v3321_v40 = vmul.f32 %v12234_v16, %v12234_v16  ;;  %v7623_v62 = vld [vmem:[%s14234_s2 + $0x120] sm:$0xff]  ;;  %v7602_v58 = vld [vmem:[%s14236_s4 + $0xf8] sm:$0xff]  ;;  %v7625_v63 = vld [vmem:[%s14234_s2 + $0x130] sm:$0xff] }
 0x548   :  { %v3289_v60 = vpop.xlane.xlu0 %3288  ;;  %10615 = vrsqrt.f32 %v3385_v4  ;;  %v3461_v28 = vsub.f32 %v7596_v15, %v3445_v9  ;;  %v7620_v4 = vld [vmem:[%s14234_s2 + $0x108] sm:$0xff]  ;;  %v7626_v15 = vld [vmem:[%s14234_s2 + $0x138] sm:$0xff] }
 0x549   :  { %v3305_v10 = vmul.f32 0.125, %v3289_v60  ;;  %10617 = vrsqrt.f32 %v3384_v25  ;;  %3616 = vperm.xlu0 %10555, %v3462_v51   ;;  %v7627_v60 = vld [vmem:[%s14234_s2 + $0x140] sm:$0xff] }
 0x54a   :  { %v10612_v38 = vpop.eup %10611  ;;  %3515 = vperm.xlu1 %10556, %v3412_v21   ;;  %v7603_v21 = vld [vmem:[%s14233_s1 + $0x100] sm:$0xff] }
 0x54b   :  { %v3337_v19 = vsub.f32 %v3305_v10, %v3321_v40  ;;  %v10614_v3 = vpop.eup %10613  ;;  %v3415_v41 = vmul.f32 %v10612_v38, %v7583_v0  ;;  %v7622_v40 = vld [vmem:[%s14234_s2 + $0x118] sm:$0xff]  ;;  %v7629_v0 = vld [vmem:[%s14234_s2 + $0x150] sm:$0xff]  ;;  %v7624_v38 = vld [vmem:[%s14234_s2 + $0x128] sm:$0xff] }
 0x54c   :  { %v3414_v26 = vmul.f32 %v10614_v3, %v7582_v24  ;;  %v7633_v24 = vld [vmem:[%s14234_s2 + $0x170] sm:$0xff]  ;;  %v7628_v3 = vld [vmem:[%s14234_s2 + $0x148] sm:$0xff] }
 0x54d   :  { %v3353_v56 = vmax.f32 %v3337_v19, 0.0  ;;  %3530 = vperm.xlu0 %10555, %v3415_v41   ;;  %v3448_v29 = vmul.f32 %v3415_v41, %v12190_v36  ;;  %v7584_v36 = vld [vmem:[%s14235_s3 + $0xe8] sm:$0xff]  ;;  %v7631_v19 = vld [vmem:[%s14234_s2 + $0x160] sm:$0xff]  ;;  %v7630_v41 = vld [vmem:[%s14234_s2 + $0x158] sm:$0xff] }
 0x54e   :  { %3611 = vperm.xlu1 %10556, %v3461_v28   ;;  %v3447_v53 = vmul.f32 %v3414_v26, %v12192_v59 }
 0x54f   :  { %v3386_v44 = vadd.f32 1e-05, %v3353_v56  ;;  %v3464_v43 = vsub.f32 %v7599_v49, %v3448_v29  ;;  %v7632_v56 = vld [vmem:[%s14234_s2 + $0x168] sm:$0xff]  ;;  %v7634_v49 = vld [vmem:[%s14234_s2 + $0x178] sm:$0xff] }
 0x550   :  { %v3463_v1 = vsub.f32 %v7598_v11, %v3447_v53 }
 0x551   :  { %10619 = vrsqrt.f32 %v3386_v44  ;;  %3626 = vperm.xlu0 %10555, %v3464_v43  }
 0x552   :  { %v10616_v18 = vpop.eup %10615  ;;  %3525 = vperm.xlu1 %10556, %v3414_v26  }
 0x553   :  { %v10618_v55 = vpop.eup %10617  ;;  %v3417_v33 = vmul.f32 %v10616_v18, %v7585_v7 }
 0x554   :  { %v3416_v6 = vmul.f32 %v10618_v55, %v7584_v36 }
 0x555   :  { %3540 = vperm.xlu0 %10555, %v3417_v33   ;;  %v3450_v59 = vmul.f32 %v3417_v33, %v12212_v17 }
 0x556   :  { %3621 = vperm.xlu1 %10556, %v3463_v1   ;;  %v3449_v57 = vmul.f32 %v3416_v6, %v12214_v54  ;;  %v7621_v54 = vld [vmem:[%s14234_s2 + $0x110] sm:$0xff] }
 0x557   :  { %v3466_v12 = vsub.f32 %v7601_v42, %v3450_v59 }
 0x558   :  { %v3465_v17 = vsub.f32 %v7600_v5, %v3449_v57 }
 0x559   :  { %3636 = vperm.xlu0 %10555, %v3466_v12  }
 0x55a   :  { %3535 = vperm.xlu1 %10556, %v3416_v6  }
 0x55b   :  { %v10620_v39 = vpop.eup %10619 }
 0x55c   :  { %v3418_v32 = vmul.f32 %v10620_v39, %v7586_v27 }
 0x55d   :  { %3696 = vperm.xlu0 %10555, %v7619_v14  }
 0x55e   :  { %3631 = vperm.xlu1 %10556, %v3465_v17   ;;  %v3451_v13 = vmul.f32 %v3418_v32, %v12234_v16  ;;  %v12296_v16 = vand.u32 4294901760, %v7603_v21 }
 0x560   :  { %v3467_v52 = vsub.f32 %v7602_v58, %v3451_v13  ;;  %v12302_v25 = vsub.f32 %v7603_v21, %v12296_v16 }
 0x561   :  { %3706 = vperm.xlu0 %10555, %v7621_v54  }
 0x562   :  { %3545 = vperm.xlu1 %10556, %v3418_v32   ;;  %v14288_v51 = vand.u32 4294901760, %v12302_v25 }
 0x564   :  { %v3858_v10 = vsub.f32 %v12302_v25, %v14288_v51 }
 0x565   :  { %3716 = vperm.xlu0 %10555, %v7623_v62  }
 0x566   :  { %3641 = vperm.xlu1 %10556, %v3467_v52   ;;  %v3859_v9 = vand.u32 4294901760, %v3858_v10 }
 0x568   :  { %8933 = vmatprep.mubr.f32.mxu0 %v3859_v9 }
 0x569   :  { %3726 = vperm.xlu0 %10555, %v7625_v63  }
 0x56a   :  { %3701 = vperm.xlu1 %10556, %v7620_v4  }
 0x56d   :  { %3736 = vperm.xlu0 %10555, %v7627_v60  }
 0x56e   :  { %3711 = vperm.xlu1 %10556, %v7622_v40  }
 0x571   :  { %3746 = vperm.xlu0 %10555, %v7629_v0  }
 0x572   :  { %3721 = vperm.xlu1 %10556, %v7624_v38  }
 0x575   :  { %3756 = vperm.xlu0 %10555, %v7631_v19  }
 0x576   :  { %3731 = vperm.xlu1 %10556, %v7626_v15  }
 0x579   :  { %3766 = vperm.xlu0 %10555, %v7633_v24  }
 0x57a   :  { %3741 = vperm.xlu1 %10556, %v7628_v3  }
 0x57e   :  { %3751 = vperm.xlu1 %10556, %v7630_v41  }
 0x582   :  { %3761 = vperm.xlu1 %10556, %v7632_v56  }
 0x586   :  { %3771 = vperm.xlu1 %10556, %v7634_v49  }
 0x5a0   :  { %v3476_v28 = vpop.permute.xlu0 %3475 }
 0x5a1   :  { %v3549_v7 = vmul.f32 %v3476_v28, %v11993_v2 }
 0x5a4   :  { %v3481_v29 = vpop.permute.xlu0 %3480 }
 0x5a5   :  { %v3471_v26 = vpop.permute.xlu1 %3470  ;;  %v3550_v36 = vmul.f32 %v3481_v29, %v12003_v34 }
 0x5a6   :  { %v3548_v33 = vmul.f32 %v3471_v26, %v11995_v48 }
 0x5a8   :  { %v3577_v44 = vpop.permute.xlu0 %3576 }
 0x5a9   :  { %v3572_v43 = vpop.permute.xlu1 %3571  ;;  %v3646_v42 = vadd.f32 %v3577_v44, %v3550_v36 }
 0x5aa   :  { %v3645_v18 = vadd.f32 %v3572_v43, %v3549_v7 }
 0x5ab   :  { %v3781_v57 = vand.u32 4294901760, %v3646_v42 }
 0x5ac   :  { %v3491_v53 = vpop.permute.xlu0 %3490  ;;  %v3778_v1 = vand.u32 4294901760, %v3645_v18 }
 0x5ad   :  { %v3486_v11 = vpop.permute.xlu1 %3485  ;;  %v3552_v27 = vmul.f32 %v3491_v53, %v12014_v37  ;;  %v12352_v54 = vsub.f32 %v3646_v42, %v3781_v57 }
 0x5ae   :  { %v3551_v39 = vmul.f32 %v3486_v11, %v12012_v50  ;;  %v12345_v5 = vsub.f32 %v3645_v18, %v3778_v1 }
 0x5af   :  { %v4032_v60 = vand.u32 4294901760, %v12352_v54 }
 0x5b0   :  { %v3587_v55 = vpop.permute.xlu0 %3586  ;;  %v4025_v50 = vand.u32 4294901760, %v12345_v5 }
 0x5b1   :  { %v3567_v59 = vpop.permute.xlu1 %3566  ;;  %v3648_v62 = vadd.f32 %v3587_v55, %v3552_v27 }
 0x5b2   :  { %v3644_v6 = vadd.f32 %v3567_v59, %v3548_v33 }
 0x5b3   :  { %v3787_v40 = vand.u32 4294901760, %v3648_v62 }
 0x5b4   :  { %v3501_v12 = vpop.permute.xlu0 %3500  ;;  %v3775_v14 = vand.u32 4294901760, %v3644_v6 }
 0x5b5   :  { %v3582_v2 = vpop.permute.xlu1 %3581  ;;  %v3554_v38 = vmul.f32 %v3501_v12, %v12028_v47  ;;  %v12380_v3 = vsub.f32 %v3648_v62, %v3787_v40 }
 0x5b6   :  { %v12348_v17 = vpack.c.bf16 %v3778_v1, %v3775_v14  ;;  %v12350_v34 = vsub.f32 %v3644_v6, %v3775_v14  ;;  %v3647_v32 = vadd.f32 %v3582_v2, %v3551_v39 }
 0x5b7   :  { %v14296_v47 = vand.u32 4294901760, %v12380_v3 }
 0x5b8   :  { %v3597_v48 = vpop.permute.xlu0 %3596  ;;  %v4018_v13 = vand.u32 4294901760, %v12350_v34  ;;  %v3784_v58 = vand.u32 4294901760, %v3647_v32  ;;  %9766 = vmatprep.subr.bf16.mxu0 %v12348_v17 }
 0x5b9   :  { %v3496_v52 = vpop.permute.xlu1 %3495  ;;  %9768 = vmatpush3.bf16.msra.mxu0 %v12348_v17  ;;  %v3650_v41 = vadd.f32 %v3597_v48, %v3554_v38 }
 0x5ba   :  { %v12358_v37 = vpack.c.bf16 %v3784_v58, %v3781_v57  ;;  %v12360_v63 = vsub.f32 %v3647_v32, %v3784_v58  ;;  %v12366_v4 = vpack.c.bf16 %v4025_v50, %v4018_v13  ;;  %v3553_v0 = vmul.f32 %v3496_v52, %v12026_v30 }
 0x5bb   :  { %v3793_v26 = vand.u32 4294901760, %v3650_v41 }
 0x5bc   :  { %v3511_v21 = vpop.permute.xlu0 %3510  ;;  %14460 = vst [vmem:[#allocation17_spill] sm:$0xff] %v12366_v4  ;;  %v4039_v10 = vand.u32 4294901760, %v12360_v63  ;;  %9770 = vmatprep.subr.bf16.mxu0 %v12358_v37 }
 0x5bd   :  { %v3592_v9 = vpop.permute.xlu1 %3591  ;;  %9772 = vmatpush3.bf16.msra.mxu0 %v12358_v37  ;;  %v3556_v53 = vmul.f32 %v3511_v21, %v12042_v46  ;;  %v12398_v55 = vsub.f32 %v3650_v41, %v3793_v26 }
 0x5be   :  { %v3649_v19 = vadd.f32 %v3592_v9, %v3553_v0  ;;  %v12378_v15 = vpack.c.bf16 %v4039_v10, %v4032_v60 }
 0x5bf   :  { %v14294_v46 = vand.u32 4294901760, %v12398_v55 }
 0x5c0   :  { %14461 = vst [vmem:[#allocation8_spill] sm:$0xff] %v12378_v15  ;;  %v3607_v24 = vpop.permute.xlu0 %3606  ;;  %v3790_v56 = vand.u32 4294901760, %v3649_v19 }
 0x5c1   :  { %v3506_v30 = vpop.permute.xlu1 %3505  ;;  %v3652_v33 = vadd.f32 %v3607_v24, %v3556_v53  ;;  %v7605_v53 = vld [vmem:[%s14233_s1 + $0x110] sm:$0xff] }
 0x5c2   :  { %v12382_v49 = vpack.c.bf16 %v3790_v56, %v3787_v40  ;;  %v12384_v28 = vsub.f32 %v3649_v19, %v3790_v56  ;;  %v3555_v43 = vmul.f32 %v3506_v30, %v12040_v8  ;;  %v7604_v19 = vld [vmem:[%s14233_s1 + $0x108] sm:$0xff] }
 0x5c3   :  { %v3799_v12 = vand.u32 4294901760, %v3652_v33 }
 0x5c4   :  { %14462 = vst [vmem:[#allocation18_spill] sm:$0xff] %v12382_v49  ;;  %v3521_v29 = vpop.permute.xlu0 %3520  ;;  %v14297_v44 = vand.u32 4294901760, %v12384_v28  ;;  %9774 = vmatprep.subr.bf16.mxu0 %v12382_v49 }
 0x5c5   :  { %v3602_v7 = vpop.permute.xlu1 %3601  ;;  %9776 = vmatpush3.bf16.msra.mxu0 %v12382_v49  ;;  %v3558_v2 = vmul.f32 %v3521_v29, %v12056_v35  ;;  %v12416_v48 = vsub.f32 %v3652_v33, %v3799_v12  ;;  %v7606_v33 = vld [vmem:[%s14233_s1 + $0x118] sm:$0xff] }
 0x5c6   :  { %v3651_v18 = vadd.f32 %v3602_v7, %v3555_v43  ;;  %v12396_v11 = vpack.c.bf16 %v14297_v44, %v14296_v47 }
 0x5c7   :  { %v14292_v0 = vand.u32 4294901760, %v12416_v48 }
 0x5c8   :  { %14463 = vst [vmem:[#allocation20_spill] sm:$0xff] %v12396_v11  ;;  %v3617_v36 = vpop.permute.xlu0 %3616  ;;  %v3796_v42 = vand.u32 4294901760, %v3651_v18 }
 0x5c9   :  { %v3516_v8 = vpop.permute.xlu1 %3515  ;;  %v3654_v62 = vadd.f32 %v3617_v36, %v3558_v2 }
 0x5ca   :  { %v12400_v1 = vpack.c.bf16 %v3796_v42, %v3793_v26  ;;  %v12402_v59 = vsub.f32 %v3651_v18, %v3796_v42  ;;  %v3557_v39 = vmul.f32 %v3516_v8, %v12054_v20  ;;  %v12454_v8 = vand.u32 4294901760, %v7605_v53 }
 0x5cb   :  { %v3805_v35 = vand.u32 4294901760, %v3654_v62 }
 0x5cc   :  { %14464 = vst [vmem:[#allocation10_spill] sm:$0xff] %v12400_v1  ;;  %v3531_v6 = vpop.permute.xlu0 %3530  ;;  %v14295_v57 = vand.u32 4294901760, %v12402_v59  ;;  %9778 = vmatprep.subr.bf16.mxu0 %v12400_v1 }
 0x5cd   :  { %v3612_v14 = vpop.permute.xlu1 %3611  ;;  %9780 = vmatpush3.bf16.msra.mxu0 %v12400_v1  ;;  %v3560_v41 = vmul.f32 %v3531_v6, %v12070_v61  ;;  %v12439_v26 = vsub.f32 %v3654_v62, %v3805_v35  ;;  %v12461_v62 = vand.u32 4294901760, %v7606_v33 }
 0x5ce   :  { %v3653_v27 = vadd.f32 %v3612_v14, %v3557_v39  ;;  %v12414_v32 = vpack.c.bf16 %v14295_v57, %v14294_v46 }
 0x5cf   :  { %v14289_v6 = vand.u32 4294901760, %v12439_v26 }
 0x5d0   :  { %14465 = vst [vmem:[#allocation22_spill] sm:$0xff] %v12414_v32  ;;  %v3802_v58 = vand.u32 4294901760, %v3653_v27  ;;  %v3627_v20 = vpop.permute.xlu0 %3626 }
 0x5d1   :  { %v3526_v52 = vpop.permute.xlu1 %3525  ;;  %v3656_v43 = vadd.f32 %v3627_v20, %v3560_v41  ;;  %v7607_v20 = vld [vmem:[%s14233_s1 + $0x120] sm:$0xff] }
 0x5d2   :  { %v12418_v21 = vpack.c.bf16 %v3802_v58, %v3799_v12  ;;  %v12420_v40 = vsub.f32 %v3653_v27, %v3802_v58  ;;  %v3559_v38 = vmul.f32 %v3526_v52, %v12068_v23  ;;  %v12437_v23 = vand.u32 4294901760, %v7604_v19 }
 0x5d3   :  { %v3811_v12 = vand.u32 4294901760, %v3656_v43 }
 0x5d4   :  { %14466 = vst [vmem:[#allocation23_spill] sm:$0xff] %v12418_v21  ;;  %v14293_v9 = vand.u32 4294901760, %v12420_v40  ;;  %9782 = vmatprep.subr.bf16.mxu0 %v12418_v21  ;;  %v3541_v29 = vpop.permute.xlu0 %3540  ;;  %v12452_v42 = vsub.f32 %v7604_v19, %v12437_v23 }
 0x5d5   :  { %v3622_v24 = vpop.permute.xlu1 %3621  ;;  %9784 = vmatpush3.bf16.msra.mxu0 %v12418_v21  ;;  %v3562_v58 = vmul.f32 %v3541_v29, %v12084_v45  ;;  %v7608_v45 = vld [vmem:[%s14233_s1 + $0x128] sm:$0xff]  ;;  %v12480_v19 = vsub.f32 %v3656_v43, %v3811_v12  ;;  %v4019_v43 = vsub.f32 %v12350_v34, %v4018_v13  ;;  %v7610_v13 = vld [vmem:[%s14233_s1 + $0x138] sm:$0xff]  ;;  %v14485_v21 = vand.u32 4294901760, %v12402_v59 }
 0x5d6   :  { %v3655_v56 = vadd.f32 %v3622_v24, %v3559_v38  ;;  %v12435_v30 = vpack.c.bf16 %v14293_v9, %v14292_v0  ;;  %v12475_v38 = vsub.f32 %v7605_v53, %v12454_v8 }
 0x5d7   :  { %v14298_v51 = vand.u32 4294901760, %v12480_v19  ;;  %v4068_v1 = vsub.f32 %v12402_v59, %v14485_v21 }
 0x5d8   :  { %14467 = vst [vmem:[#allocation12_spill] sm:$0xff] %v12435_v30  ;;  %v3808_v7 = vand.u32 4294901760, %v3655_v56  ;;  %v3637_v2 = vpop.permute.xlu0 %3636 }
 0x5d9   :  { %v3536_v18 = vpop.permute.xlu1 %3535  ;;  %v3658_v24 = vadd.f32 %v3637_v2, %v3562_v58  ;;  %v14300_v58 = vand.u32 4294901760, %v12475_v38 }
 0x5da   :  { %v12444_v61 = vpack.c.bf16 %v3808_v7, %v3805_v35  ;;  %v12446_v36 = vsub.f32 %v3655_v56, %v3808_v7  ;;  %v3561_v14 = vmul.f32 %v3536_v18, %v12082_v22  ;;  %v14290_v35 = vand.u32 4294901760, %v12452_v42  ;;  %v7609_v56 = vld [vmem:[%s14233_s1 + $0x130] sm:$0xff] }
 0x5db   :  { %v12486_v7 = vsub.f32 %v7606_v33, %v12461_v62  ;;  %v12488_v18 = vand.u32 4294901760, %v7607_v20  ;;  %v12503_v33 = vand.u32 4294901760, %v7609_v56  ;;  %v3878_v44 = vsub.f32 %v12475_v38, %v14300_v58 }
 0x5dc   :  { %14468 = vst [vmem:[#allocation25_spill] sm:$0xff] %v12444_v61  ;;  %v14291_v39 = vand.u32 4294901760, %v12446_v36  ;;  %9786 = vmatprep.subr.bf16.mxu0 %v12444_v61  ;;  %v3868_v2 = vsub.f32 %v12452_v42, %v14290_v35  ;;  %v4026_v35 = vsub.f32 %v12345_v5, %v4025_v50  ;;  %v4020_v50 = vand.u32 4294901760, %v4019_v43  ;;  %v7612_v43 = vld [vmem:[%s14233_s1 + $0x148] sm:$0xff] }
 0x5dd   :  { %v3632_v27 = vpop.permute.xlu1 %3631  ;;  %9788 = vmatpush3.bf16.msra.mxu0 %v12444_v61  ;;  %v12518_v0 = vsub.f32 %v7607_v20, %v12488_v18  ;;  %v12533_v47 = vsub.f32 %v7609_v56, %v12503_v33  ;;  %v12535_v20 = vand.u32 4294901760, %v7610_v13  ;;  %v4033_v58 = vsub.f32 %v12352_v54, %v4032_v60 }
 0x5de   :  { %v3657_v52 = vadd.f32 %v3632_v27, %v3561_v14  ;;  %v12471_v22 = vpack.c.bf16 %v14291_v39, %v14289_v6  ;;  %v12494_v27 = vand.u32 4294901760, %v7608_v45  ;;  %v14303_v39 = vand.u32 4294901760, %v12486_v7 }
 0x5df   :  { %14471 = vst [vmem:[#allocation21_spill] sm:$0xff] %v12518_v0  ;;  %v3869_v57 = vand.u32 4294901760, %v3868_v2  ;;  %14474 = vst [vmem:[#allocation9_spill] sm:$0xff] %v12533_v47  ;;  %v4027_v2 = vand.u32 4294901760, %v4026_v35  ;;  %v7613_v35 = vld [vmem:[%s14233_s1 + $0x150] sm:$0xff] }
 0x5e0   :  { %14469 = vst [vmem:[#allocation14_spill] sm:$0xff] %v12471_v22  ;;  %v3814_v41 = vand.u32 4294901760, %v3657_v52  ;;  %v3888_v56 = vsub.f32 %v12486_v7, %v14303_v39 }
 0x5e1   :  { %v3546_v29 = vpop.permute.xlu1 %3545  ;;  %v9797_v22 = vpack.c.bf16 %v4027_v2, %v4020_v50  ;;  %v7614_v50 = vld [vmem:[%s14233_s1 + $0x158] sm:$0xff]  ;;  %v14478_v2 = vand.u32 4294901760, %v12518_v0 }
 0x5e2   :  { %v12490_v53 = vpack.c.bf16 %v3814_v41, %v3811_v12  ;;  %v12492_v14 = vsub.f32 %v3657_v52, %v3814_v41  ;;  %v3817_v12 = vand.u32 4294901760, %v3658_v24  ;;  %v3563_v41 = vmul.f32 %v3546_v29, %v12096_v31  ;;  %v7611_v29 = vld [vmem:[%s14233_s1 + $0x140] sm:$0xff] }
 0x5e3   :  { %v12521_v31 = vsub.f32 %v7608_v45, %v12494_v27  ;;  %v3898_v39 = vsub.f32 %v12518_v0, %v14478_v2 }
 0x5e4   :  { %14470 = vst [vmem:[#allocation16_spill] sm:$0xff] %v12490_v53  ;;  %v14299_v52 = vand.u32 4294901760, %v12492_v14  ;;  %9790 = vmatprep.subr.bf16.mxu0 %v12490_v53 }
 0x5e5   :  { %v3642_v6 = vpop.permute.xlu1 %3641  ;;  %9792 = vmatpush3.bf16.msra.mxu0 %v12490_v53  ;;  %14472 = vst [vmem:[#allocation6_spill] sm:$0xff] %v12521_v31  ;;  %v14481_v11 = vand.u32 4294901760, %v12521_v31 }
 0x5e6   :  { %v3659_v9 = vadd.f32 %v3642_v6, %v3563_v41  ;;  %v12530_v46 = vpack.c.bf16 %v14299_v52, %v14298_v51  ;;  %v12537_v6 = vsub.f32 %v3658_v24, %v3817_v12  ;;  %v4040_v41 = vsub.f32 %v12360_v63, %v4039_v10 }
 0x5e7   :  { %v12552_v51 = vand.u32 4294901760, %v7611_v29  ;;  %v12567_v24 = vsub.f32 %v7610_v13, %v12535_v20  ;;  %v3879_v13 = vand.u32 4294901760, %v3878_v44  ;;  %v3908_v15 = vsub.f32 %v12521_v31, %v14481_v11  ;;  %v7615_v44 = vld [vmem:[%s14233_s1 + $0x160] sm:$0xff] }
 0x5e8   :  { %14473 = vst [vmem:[#allocation7_spill] sm:$0xff] %v12530_v46  ;;  %v3820_v45 = vand.u32 4294901760, %v3659_v9  ;;  %v4041_v60 = vand.u32 4294901760, %v4040_v41  ;;  %v14477_v46 = vand.u32 4294901760, %v12384_v28  ;;  %v4034_v41 = vand.u32 4294901760, %v4033_v58 }
 0x5e9   :  { %14476 = vst [vmem:[#allocation13_spill] sm:$0xff] %v12567_v24  ;;  %v14482_v2 = vand.u32 4294901760, %v12537_v6  ;;  %v14326_v58 = vand.u32 4294901760, %v12567_v24  ;;  %v14486_v31 = vand.u32 4294901760, %v12533_v47 }
 0x5ea   :  { %v12554_v52 = vpack.c.bf16 %v3820_v45, %v3817_v12  ;;  %v12556_v10 = vsub.f32 %v3659_v9, %v3820_v45  ;;  %v12569_v12 = vand.u32 4294901760, %v7612_v43  ;;  %v4054_v30 = vsub.f32 %v12384_v28, %v14477_v46 }
 0x5eb   :  { %v12585_v45 = vsub.f32 %v7611_v29, %v12552_v51  ;;  %v12587_v9 = vand.u32 4294901760, %v7613_v35  ;;  %v14480_v46 = vand.u32 4294901760, %v12380_v3  ;;  %v9801_v11 = vpack.c.bf16 %v4041_v60, %v4034_v41 }
 0x5ec   :  { %14475 = vst [vmem:[#allocation11_spill] sm:$0xff] %v12554_v52  ;;  %9794 = vmatprep.subr.bf16.mxu0 %v12554_v52  ;;  %v14483_v29 = vand.u32 4294901760, %v12556_v10  ;;  %v12606_v53 = vsub.f32 %v7612_v43, %v12569_v12  ;;  %v4055_v61 = vand.u32 4294901760, %v4054_v30  ;;  %v3899_v43 = vand.u32 4294901760, %v3898_v39 }
 0x5ed   :  { %9796 = vmatpush3.bf16.msra.mxu0 %v12554_v52  ;;  %14479 = vst [vmem:[#allocation15_spill] sm:$0xff] %v12585_v45  ;;  %v4047_v32 = vsub.f32 %v12380_v3, %v14480_v46  ;;  %v3889_v52 = vand.u32 4294901760, %v3888_v56  ;;  %v12608_v46 = vand.u32 4294901760, %v7614_v50  ;;  %v7616_v56 = vld [vmem:[%s14233_s1 + $0x168] sm:$0xff]  ;;  %v12623_v30 = vand.u32 4294901760, %v7615_v44 }
 0x5ee   :  { %9798 = vmatprep.subr.bf16.mxu0 %v9797_v22  ;;  %v12602_v4 = vpack.c.bf16 %v14483_v29, %v14482_v2  ;;  %v3918_v2 = vsub.f32 %v12533_v47, %v14486_v31  ;;  %v3909_v60 = vand.u32 4294901760, %v3908_v15  ;;  %v14488_v41 = vand.u32 4294901760, %v12398_v55 }
 0x5ef   :  { %v4048_v21 = vand.u32 4294901760, %v4047_v32  ;;  %v3928_v39 = vsub.f32 %v12567_v24, %v14326_v58  ;;  %v12638_v29 = vand.u32 4294901760, %v7616_v56  ;;  %v4069_v32 = vand.u32 4294901760, %v4068_v1  ;;  %v7618_v1 = vld [vmem:[%s14233_s1 + $0x178] sm:$0xff] }
 0x5f0   :  { %14484 = vst [vmem:[#allocation19_spill] sm:$0xff] %v12602_v4  ;;  %8934 = vmatmul.mubr.f32.vlgmr.msra.gmra.mrb[16].mxu0 %v3869_v57  ;;  %v12621_v57 = vsub.f32 %v7613_v35, %v12587_v9  ;;  %v4061_v31 = vsub.f32 %v12398_v55, %v14488_v41  ;;  %v3919_v4 = vand.u32 4294901760, %v3918_v2  ;;  %v14489_v41 = vand.u32 4294901760, %v12420_v40 }
 0x5f1   :  { %9800 = vmatpush3.bf16.msra.mxu0 %v9797_v22  ;;  %8936 = vmatprep.mubr.f32.mxu0 %v3879_v13  ;;  %v7617_v22 = vld [vmem:[%s14233_s1 + $0x170] sm:$0xff]  ;;  %v12636_v13 = vsub.f32 %v7614_v50, %v12608_v46  ;;  %v9805_v15 = vpack.c.bf16 %v4055_v61, %v4048_v21  ;;  %v14490_v49 = vand.u32 4294901760, %v12585_v45  ;;  %v12648_v50 = vsub.f32 %v7615_v44, %v12623_v30 }
 0x5f2   :  { %14487 = vst [vmem:[#allocation24_spill] sm:$0xff] %v12621_v57  ;;  %9802 = vmatprep.subr.bf16.mxu0 %v9801_v11  ;;  %v4082_v47 = vsub.f32 %v12420_v40, %v14489_v41  ;;  %v12650_v24 = vand.u32 4294901760, %v7617_v22  ;;  %v4062_v61 = vand.u32 4294901760, %v4061_v31  ;;  %v3929_v2 = vand.u32 4294901760, %v3928_v39 }
 0x5f3   :  { %v3938_v58 = vsub.f32 %v12585_v45, %v14490_v49  ;;  %v14492_v49 = vand.u32 4294901760, %v12606_v53  ;;  %v12663_v21 = vsub.f32 %v7616_v56, %v12638_v29  ;;  %v14493_v45 = vand.u32 4294901760, %v12446_v36 }
 0x5f4   :  { %8937 = vmatmul.mubr.f32.gmra.mrb[18].mxu0 %v3889_v52  ;;  %v14491_v52 = vand.u32 4294901760, %v12416_v48  ;;  %v9809_v41 = vpack.c.bf16 %v4069_v32, %v4062_v61  ;;  %v4083_v35 = vand.u32 4294901760, %v4082_v47  ;;  %v12668_v0 = vand.u32 4294901760, %v7618_v1 }
 0x5f5   :  { %9804 = vmatpush3.bf16.msra.mxu0 %v9801_v11  ;;  %8939 = vmatprep.mubr.f32.mxu0 %v3899_v43  ;;  %v3948_v43 = vsub.f32 %v12606_v53, %v14492_v49  ;;  %v4096_v31 = vsub.f32 %v12446_v36, %v14493_v45  ;;  %v3939_v39 = vand.u32 4294901760, %v3938_v58  ;;  %v12675_v56 = vsub.f32 %v7617_v22, %v12650_v24 }
 0x5f6   :  { %9806 = vmatprep.subr.bf16.mxu0 %v9805_v15  ;;  %v4075_v11 = vsub.f32 %v12416_v48, %v14491_v52  ;;  %v14494_v52 = vand.u32 4294901760, %v12621_v57  ;;  %v14335_v58 = vand.u32 4294901760, %v12663_v21  ;;  %v14497_v44 = vand.u32 4294901760, %v12492_v14 }
 0x5f7   :  { %v3949_v32 = vand.u32 4294901760, %v3948_v43  ;;  %v14498_v43 = vand.u32 4294901760, %v12648_v50 }
 0x5f8   :  { %8940 = vmatmul.mubr.f32.gmra.mrb[20].mxu0 %v3909_v60  ;;  %v3958_v49 = vsub.f32 %v12621_v57, %v14494_v52  ;;  %v4076_v47 = vand.u32 4294901760, %v4075_v11  ;;  %v14495_v60 = vand.u32 4294901760, %v12439_v26  ;;  %v4097_v52 = vand.u32 4294901760, %v4096_v31 }
 0x5f9   :  { %9808 = vmatpush3.bf16.msra.mxu0 %v9805_v15  ;;  %8942 = vmatprep.mubr.f32.mxu0 %v3919_v4  ;;  %v14496_v15 = vand.u32 4294901760, %v12636_v13  ;;  %v4110_v22 = vsub.f32 %v12492_v14, %v14497_v44  ;;  %v12688_v11 = vsub.f32 %v7618_v1, %v12668_v0  ;;  %v3978_v57 = vsub.f32 %v12648_v50, %v14498_v43 }
 0x5fa   :  { %9810 = vmatprep.subr.bf16.mxu0 %v9809_v41  ;;  %v4089_v45 = vsub.f32 %v12439_v26, %v14495_v60  ;;  %v9813_v61 = vpack.c.bf16 %v4083_v35, %v4076_v47  ;;  %v3959_v60 = vand.u32 4294901760, %v3958_v49  ;;  %v14499_v35 = vand.u32 4294901760, %v12480_v19 }
 0x5fb   :  { %v3968_v4 = vsub.f32 %v12636_v13, %v14496_v15  ;;  %v3997_v15 = vand.u32 4294901760, %v12675_v56  ;;  %v3988_v1 = vsub.f32 %v12663_v21, %v14335_v58  ;;  %v4007_v43 = vand.u32 4294901760, %v12688_v11 }
 0x5fc   :  { %8943 = vmatmul.mubr.f32.gmra.mrb[22].mxu0 %v3929_v2  ;;  %v4090_v2 = vand.u32 4294901760, %v4089_v45  ;;  %v4103_v31 = vsub.f32 %v12480_v19, %v14499_v35  ;;  %v3979_v45 = vand.u32 4294901760, %v3978_v57  ;;  %v14501_v58 = vand.u32 4294901760, %v12537_v6 }
 0x5fd   :  { %9812 = vmatpush3.bf16.msra.mxu0 %v9809_v41  ;;  %8945 = vmatprep.mubr.f32.mxu0 %v3939_v39  ;;  %v3969_v47 = vand.u32 4294901760, %v3968_v4  ;;  %v4111_v41 = vand.u32 4294901760, %v4110_v22  ;;  %v14500_v39 = vand.u32 4294901760, %v12556_v10  ;;  %v3998_v4 = vsub.f32 %v12675_v56, %v3997_v15 }
 0x5fe   :  { %9814 = vmatprep.subr.bf16.mxu0 %v9813_v61  ;;  %v9817_v44 = vpack.c.bf16 %v4097_v52, %v4090_v2  ;;  %v4104_v35 = vand.u32 4294901760, %v4103_v31  ;;  %v3989_v22 = vand.u32 4294901760, %v3988_v1  ;;  %v9837_v1 = vpack.c.bf16 %v12384_v28, %v12380_v3  ;;  %v14502_v28 = vld [vmem:[#allocation21_spill] sm:$0xff] }
 0x5ff   :  { %v4124_v49 = vsub.f32 %v12556_v10, %v14500_v39  ;;  %v3999_v57 = vand.u32 4294901760, %v3998_v4  ;;  %v9857_v3 = vpack.c.bf16 %v12556_v10, %v12537_v6  ;;  %v14512_v10 = vld [vmem:[#allocation16_spill] sm:$0xff]  ;;  %v14517_v4 = vand.u32 4294901760, %v12475_v38 }
 0x600   :  { %8946 = vmatmul.mubr.f32.gmra.mrb[24].mxu0 %v3949_v32  ;;  %v4117_v32 = vsub.f32 %v12537_v6, %v14501_v58  ;;  %v9821_v52 = vpack.c.bf16 %v4111_v41, %v4104_v35  ;;  %v9829_v58 = vpack.c.bf16 %v12345_v5, %v12350_v34  ;;  %v9841_v5 = vpack.c.bf16 %v12402_v59, %v12398_v55  ;;  %v14503_v55 = vld [vmem:[#allocation18_spill] sm:$0xff]  ;;  %v14511_v6 = vld [vmem:[#allocation25_spill] sm:$0xff]  ;;  %v14518_v35 = vld [vmem:[#allocation8_spill] sm:$0xff] }
 0x601   :  { %9816 = vmatpush3.bf16.msra.mxu0 %v9813_v61  ;;  %8948 = vmatprep.mubr.f32.mxu0 %v3959_v60  ;;  %v4125_v2 = vand.u32 4294901760, %v4124_v49  ;;  %v4008_v61 = vsub.f32 %v12688_v11, %v4007_v43  ;;  %v9845_v34 = vpack.c.bf16 %v12420_v40, %v12416_v48  ;;  %v14504_v59 = vld [vmem:[#allocation6_spill] sm:$0xff]  ;;  %v14505_v48 = vld [vmem:[#allocation9_spill] sm:$0xff]  ;;  %v14514_v41 = vand.u32 4294901760, %v12302_v25 }
 0x602   :  { %9818 = vmatprep.subr.bf16.mxu0 %v9817_v44  ;;  %v4118_v60 = vand.u32 4294901760, %v4117_v32  ;;  %v14506_v40 = vld [vmem:[#allocation10_spill] sm:$0xff]  ;;  %v14515_v49 = vld [vmem:[#allocation17_spill] sm:$0xff]  ;;  %v14519_v32 = vand.u32 4294901760, %v12486_v7 }
 0x603   :  { %v4009_v31 = vand.u32 4294901760, %v4008_v61  ;;  %v14527_v61 = vld [vmem:[#allocation12_spill] sm:$0xff] }
 0x604   :  { %8949 = vmatmul.mubr.f32.gmra.mrb[26].mxu0 %v3969_v47  ;;  %v9825_v39 = vpack.c.bf16 %v4125_v2, %v4118_v60  ;;  %v9833_v47 = vpack.c.bf16 %v12360_v63, %v12352_v54  ;;  %v9849_v54 = vpack.c.bf16 %v12446_v36, %v12439_v26  ;;  %v9853_v63 = vpack.c.bf16 %v12492_v14, %v12480_v19  ;;  %v14507_v26 = vld [vmem:[#allocation13_spill] sm:$0xff]  ;;  %v14508_v36 = vld [vmem:[#allocation15_spill] sm:$0xff]  ;;  %v14510_v14 = vld [vmem:[#allocation24_spill] sm:$0xff] }
 0x605   :  { %9820 = vmatpush3.bf16.msra.mxu0 %v9817_v44  ;;  %8951 = vmatprep.mubr.f32.mxu0 %v3979_v45  ;;  %v14509_v19 = vld [vmem:[#allocation23_spill] sm:$0xff]  ;;  %v14516_v45 = vand.u32 4294901760, %v12452_v42  ;;  %v14526_v2 = vand.u32 4294901760, %v14508_v36  ;;  %v14529_v60 = vand.u32 4294901760, %v14510_v14 }
 0x606   :  { %9822 = vmatprep.subr.bf16.mxu0 %v9821_v52  ;;  %v14513_v44 = vld [vmem:[#allocation11_spill] sm:$0xff] }
 0x608   :  { %8952 = vmatmul.mubr.f32.gmra.mrb[28].mxu0 %v3989_v22  ;;  %v14524_v22 = vld [vmem:[#allocation22_spill] sm:$0xff] }
 0x609   :  { %9824 = vmatpush3.bf16.msra.mxu0 %v9821_v52  ;;  %8954 = vmatprep.mubr.f32.mxu0 %v3999_v57  ;;  %v14521_v52 = vld [vmem:[#allocation20_spill] sm:$0xff]  ;;  %v14528_v57 = vand.u32 4294901760, %v12606_v53 }
 0x60a   :  { %9826 = vmatprep.subr.bf16.mxu0 %v9825_v39 }
 0x60c   :  { %8955 = vmatmul.mubr.f32.gmra.mrb[30].mxu0 %v4009_v31  ;;  %v14531_v31 = vand.u32 4294901760, %v12636_v13 }
 0x60d   :  { %9828 = vmatpush3.bf16.msra.mxu0 %v9825_v39  ;;  %8989 = vmatprep.mubr.f32.mxu0 %v12296_v16  ;;  %v14530_v39 = vld [vmem:[#allocation14_spill] sm:$0xff] }
 0x60e   :  { %9830 = vmatprep.subr.bf16.mxu0 %v9829_v58 }
 0x610   :  { %8990 = vmatmul.mubr.f32.vlgmr.msra.gmra.mrb[16].mxu0 %v12437_v23 }
 0x611   :  { %9832 = vmatpush3.bf16.msra.mxu0 %v9829_v58  ;;  %8992 = vmatprep.mubr.f32.mxu0 %v12454_v8  ;;  %v14532_v58 = vand.u32 4294901760, %v12648_v50 }
 0x612   :  { %9834 = vmatprep.subr.bf16.mxu0 %v9833_v47 }
 0x614   :  { %8993 = vmatmul.mubr.f32.gmra.mrb[18].mxu0 %v12461_v62 }
 0x615   :  { %9836 = vmatpush3.bf16.msra.mxu0 %v9833_v47  ;;  %8995 = vmatprep.mubr.f32.mxu0 %v12488_v18  ;;  %v14533_v47 = vld [vmem:[#allocation7_spill] sm:$0xff] }
 0x616   :  { %9838 = vmatprep.subr.bf16.mxu0 %v9837_v1 }
 0x618   :  { %8996 = vmatmul.mubr.f32.gmra.mrb[20].mxu0 %v12494_v27 }
 0x619   :  { %9840 = vmatpush3.bf16.msra.mxu0 %v9837_v1  ;;  %8998 = vmatprep.mubr.f32.mxu0 %v12503_v33  ;;  %v14535_v1 = vld [vmem:[#allocation19_spill] sm:$0xff] }
 0x61a   :  { %9842 = vmatprep.subr.bf16.mxu0 %v9841_v5 }
 0x61c   :  { %8999 = vmatmul.mubr.f32.gmra.mrb[22].mxu0 %v12535_v20 }
 0x61d   :  { %9844 = vmatpush3.bf16.msra.mxu0 %v9841_v5  ;;  %9001 = vmatprep.mubr.f32.mxu0 %v12552_v51 }
 0x61e   :  { %9846 = vmatprep.subr.bf16.mxu0 %v9845_v34 }
 0x620   :  { %9002 = vmatmul.mubr.f32.gmra.mrb[24].mxu0 %v12569_v12 }
 0x621   :  { %9848 = vmatpush3.bf16.msra.mxu0 %v9845_v34  ;;  %9004 = vmatprep.mubr.f32.mxu0 %v12587_v9 }
 0x622   :  { %9850 = vmatprep.subr.bf16.mxu0 %v9849_v54 }
 0x624   :  { %9005 = vmatmul.mubr.f32.gmra.mrb[26].mxu0 %v12608_v46 }
 0x625   :  { %9852 = vmatpush3.bf16.msra.mxu0 %v9849_v54  ;;  %9007 = vmatprep.mubr.f32.mxu0 %v12623_v30 }
 0x626   :  { %9854 = vmatprep.subr.bf16.mxu0 %v9853_v63 }
 0x628   :  { %9008 = vmatmul.mubr.f32.gmra.mrb[28].mxu0 %v12638_v29 }
 0x629   :  { %9856 = vmatpush3.bf16.msra.mxu0 %v9853_v63  ;;  %9010 = vmatprep.mubr.f32.mxu0 %v12650_v24 }
 0x62a   :  { %9858 = vmatprep.subr.bf16.mxu0 %v9857_v3 }
 0x62c   :  { %9011 = vmatmul.mubr.f32.gmra.mrb[30].mxu0 %v12668_v0 }
 0x62d   :  { %9860 = vmatpush3.bf16.msra.mxu0 %v9857_v3  ;;  %9045 = vmatprep.mubr.f32.mxu0 %v12302_v25  ;;  %v14520_v25 = vand.u32 4294901760, %v14502_v28 }
 0x62e   :  { %9862 = vmatprep.subr.bf16.mxu0 %v12348_v17 }
 0x630   :  { %9046 = vmatmul.mubr.f32.vlgmr.msra.gmra.mrb[16].mxu0 %v12452_v42  ;;  %v14522_v42 = vand.u32 4294901760, %v14504_v59 }
 0x631   :  { %9864 = vmatpush3.bf16.msra.mxu0 %v12348_v17  ;;  %9048 = vmatprep.mubr.f32.mxu0 %v12475_v38  ;;  %v14523_v38 = vand.u32 4294901760, %v14505_v48 }
 0x632   :  { %9866 = vmatprep.subr.bf16.mxu0 %v12358_v37 }
 0x634   :  { %9049 = vmatmul.mubr.f32.gmra.mrb[18].mxu0 %v12486_v7  ;;  %v14525_v7 = vand.u32 4294901760, %v14507_v26 }
 0x635   :  { %9868 = vmatpush3.bf16.msra.mxu0 %v12358_v37  ;;  %9051 = vmatprep.mubr.f32.mxu0 %v14502_v28 }
 0x636   :  { %9870 = vmatprep.subr.bf16.mxu0 %v14503_v55 }
 0x638   :  { %9052 = vmatmul.mubr.f32.gmra.mrb[20].mxu0 %v14504_v59 }
 0x639   :  { %9872 = vmatpush3.bf16.msra.mxu0 %v14503_v55  ;;  %9054 = vmatprep.mubr.f32.mxu0 %v14505_v48 }
 0x63a   :  { %9874 = vmatprep.subr.bf16.mxu0 %v14506_v40 }
 0x63c   :  { %9055 = vmatmul.mubr.f32.gmra.mrb[22].mxu0 %v14507_v26 }
 0x63d   :  { %9876 = vmatpush3.bf16.msra.mxu0 %v14506_v40  ;;  %9057 = vmatprep.mubr.f32.mxu0 %v14508_v36 }
 0x63e   :  { %9878 = vmatprep.subr.bf16.mxu0 %v14509_v19 }
 0x640   :  { %9058 = vmatmul.mubr.f32.gmra.mrb[24].mxu0 %v12606_v53  ;;  %v14534_v53 = vand.u32 4294901760, %v12663_v21 }
 0x641   :  { %9880 = vmatpush3.bf16.msra.mxu0 %v14509_v19  ;;  %9060 = vmatprep.mubr.f32.mxu0 %v14510_v14 }
 0x642   :  { %9882 = vmatprep.subr.bf16.mxu0 %v14511_v6 }
 0x644   :  { %9061 = vmatmul.mubr.f32.gmra.mrb[26].mxu0 %v12636_v13 }
 0x645   :  { %9884 = vmatpush3.bf16.msra.mxu0 %v14511_v6  ;;  %9063 = vmatprep.mubr.f32.mxu0 %v12648_v50 }
 0x646   :  { %9886 = vmatprep.subr.bf16.mxu0 %v14512_v10 }
 0x648   :  { %9064 = vmatmul.mubr.f32.gmra.mrb[28].mxu0 %v12663_v21 }
 0x649   :  { %9888 = vmatpush3.bf16.msra.mxu0 %v14512_v10  ;;  %9066 = vmatprep.mubr.f32.mxu0 %v12675_v56 }
 0x64a   :  { %9890 = vmatprep.subr.bf16.mxu0 %v14513_v44 }
 0x64c   :  { %9067 = vmatmul.mubr.f32.gmra.mrb[30].mxu0 %v12688_v11 }
 0x64d   :  { %9892 = vmatpush3.bf16.msra.mxu0 %v14513_v44  ;;  %9101 = vmatprep.mubr.f32.mxu0 %v14514_v41 }
 0x64e   :  { %9894 = vmatprep.subr.bf16.mxu0 %v14515_v49 }
 0x650   :  { %9102 = vmatmul.mubr.f32.vlgmr.msra.gmra.mrb[16].mxu0 %v14516_v45 }
 0x651   :  { %9896 = vmatpush3.bf16.msra.mxu0 %v14515_v49  ;;  %9104 = vmatprep.mubr.f32.mxu0 %v14517_v4 }
 0x652   :  { %9898 = vmatprep.subr.bf16.mxu0 %v14518_v35 }
 0x654   :  { %9105 = vmatmul.mubr.f32.gmra.mrb[18].mxu0 %v14519_v32 }
 0x655   :  { %9900 = vmatpush3.bf16.msra.mxu0 %v14518_v35  ;;  %9107 = vmatprep.mubr.f32.mxu0 %v14520_v25 }
 0x656   :  { %9902 = vmatprep.subr.bf16.mxu0 %v14521_v52 }
 0x658   :  { %9108 = vmatmul.mubr.f32.gmra.mrb[20].mxu0 %v14522_v42 }
 0x659   :  { %9904 = vmatpush3.bf16.msra.mxu0 %v14521_v52  ;;  %9110 = vmatprep.mubr.f32.mxu0 %v14523_v38 }
 0x65a   :  { %9906 = vmatprep.subr.bf16.mxu0 %v14524_v22 }
 0x65c   :  { %9111 = vmatmul.mubr.f32.gmra.mrb[22].mxu0 %v14525_v7 }
 0x65d   :  { %9908 = vmatpush3.bf16.msra.mxu0 %v14524_v22  ;;  %9113 = vmatprep.mubr.f32.mxu0 %v14526_v2 }
 0x65e   :  { %9910 = vmatprep.subr.bf16.mxu0 %v14527_v61 }
 0x660   :  { %9114 = vmatmul.mubr.f32.gmra.mrb[24].mxu0 %v14528_v57 }
 0x661   :  { %9912 = vmatpush3.bf16.msra.mxu0 %v14527_v61  ;;  %9116 = vmatprep.mubr.f32.mxu0 %v14529_v60 }
 0x662   :  { %9914 = vmatprep.subr.bf16.mxu0 %v14530_v39 }
 0x664   :  { %9117 = vmatmul.mubr.f32.gmra.mrb[26].mxu0 %v14531_v31 }
 0x665   :  { %9916 = vmatpush3.bf16.msra.mxu0 %v14530_v39  ;;  %9119 = vmatprep.mubr.f32.mxu0 %v14532_v58 }
 0x666   :  { %9918 = vmatprep.subr.bf16.mxu0 %v14533_v47 }
 0x668   :  { %9120 = vmatmul.mubr.f32.gmra.mrb[28].mxu0 %v14534_v53 }
 0x669   :  { %9920 = vmatpush3.bf16.msra.mxu0 %v14533_v47  ;;  %9122 = vmatprep.mubr.f32.mxu0 %v3997_v15 }
 0x66a   :  { %9922 = vmatprep.subr.bf16.mxu0 %v14535_v1 }
 0x66c   :  { %9123 = vmatmul.mubr.f32.gmra.mrb[30].mxu0 %v4007_v43 }
 0x66d   :  { %9924 = vmatpush3.bf16.msra.mxu0 %v14535_v1  ;;  %9157 = vmatprep.mubr.f32.mxu0 %v12296_v16 }
 0x66e   :  { %9926 = vmatprep.subr.bf16.mxu0 %v12348_v17 }
 0x670   :  { %9158 = vmatmul.mubr.f32.vlgmr.msra.gmra.mrb[16].mxu0 %v12437_v23 }
 0x671   :  { %9928 = vmatpush3.bf16.msra.mxu0 %v12348_v17  ;;  %9160 = vmatprep.mubr.f32.mxu0 %v12454_v8  ;;  %v3702_v17 = vpop.permute.xlu1 %3701 }
 0x672   :  { %9930 = vmatprep.subr.bf16.mxu0 %v12358_v37 }
 0x674   :  { %9161 = vmatmul.mubr.f32.gmra.mrb[18].mxu0 %v12461_v62 }
 0x675   :  { %9932 = vmatpush3.bf16.msra.mxu0 %v12358_v37  ;;  %9163 = vmatprep.mubr.f32.mxu0 %v12488_v18 }
 0x676   :  { %9934 = vmatprep.subr.bf16.mxu0 %v14503_v55 }
 0x678   :  { %9164 = vmatmul.mubr.f32.gmra.mrb[20].mxu0 %v12494_v27 }
 0x679   :  { %9936 = vmatpush3.bf16.msra.mxu0 %v14503_v55  ;;  %9166 = vmatprep.mubr.f32.mxu0 %v12503_v33 }
 0x67a   :  { %9938 = vmatprep.subr.bf16.mxu0 %v14506_v40 }
 0x67c   :  { %9167 = vmatmul.mubr.f32.gmra.mrb[22].mxu0 %v12535_v20 }
 0x67d   :  { %9940 = vmatpush3.bf16.msra.mxu0 %v14506_v40  ;;  %9169 = vmatprep.mubr.f32.mxu0 %v12552_v51 }
 0x67e   :  { %9942 = vmatprep.subr.bf16.mxu0 %v14509_v19 }
 0x680   :  { %9170 = vmatmul.mubr.f32.gmra.mrb[24].mxu0 %v12569_v12 }
 0x681   :  { %9944 = vmatpush3.bf16.msra.mxu0 %v14509_v19  ;;  %9172 = vmatprep.mubr.f32.mxu0 %v12587_v9 }
 0x682   :  { %9946 = vmatprep.subr.bf16.mxu0 %v14511_v6 }
 0x684   :  { %9173 = vmatmul.mubr.f32.gmra.mrb[26].mxu0 %v12608_v46 }
 0x685   :  { %9948 = vmatpush3.bf16.msra.mxu0 %v14511_v6  ;;  %9175 = vmatprep.mubr.f32.mxu0 %v12623_v30 }
 0x686   :  { %9950 = vmatprep.subr.bf16.mxu0 %v14512_v10 }
 0x688   :  { %9176 = vmatmul.mubr.f32.gmra.mrb[28].mxu0 %v12638_v29 }
 0x689   :  { %9952 = vmatpush3.bf16.msra.mxu0 %v14512_v10  ;;  %9178 = vmatprep.mubr.f32.mxu0 %v12650_v24 }
 0x68a   :  { %9954 = vmatprep.subr.bf16.mxu0 %v14513_v44 }
 0x68c   :  { %9179 = vmatmul.mubr.f32.gmra.mrb[30].mxu0 %v12668_v0 }
 0x68d   :  { %9956 = vmatpush3.bf16.msra.mxu0 %v14513_v44  ;;  %9213 = vmatprep.mubr.f32.mxu0 %v12296_v16  ;;  %v3697_v16 = vpop.permute.xlu0 %3696 }
 0x690   :  { %9214 = vmatmul.mubr.f32.vlgmr.msra.gmra.mrb[16].mxu0 %v12437_v23 }
 0x691   :  { %9216 = vmatprep.mubr.f32.mxu0 %v12454_v8 }
 0x694   :  { %9217 = vmatmul.mubr.f32.gmra.mrb[18].mxu0 %v12461_v62  ;;  %v3707_v62 = vpop.permute.xlu0 %3706 }
 0x695   :  { %9219 = vmatprep.mubr.f32.mxu0 %v12488_v18 }
 0x698   :  { %9220 = vmatmul.mubr.f32.gmra.mrb[20].mxu0 %v12494_v27  ;;  %v3717_v13 = vpop.permute.xlu0 %3716 }
 0x699   :  { %9222 = vmatprep.mubr.f32.mxu0 %v12503_v33 }
 0x69c   :  { %9223 = vmatmul.mubr.f32.gmra.mrb[22].mxu0 %v12535_v20  ;;  %v3727_v40 = vpop.permute.xlu0 %3726 }
 0x69d   :  { %9225 = vmatprep.mubr.f32.mxu0 %v12552_v51 }
 0x6a0   :  { %9226 = vmatmul.mubr.f32.gmra.mrb[24].mxu0 %v12569_v12  ;;  %v3737_v42 = vpop.permute.xlu0 %3736 }
 0x6a1   :  { %9228 = vmatprep.mubr.f32.mxu0 %v12587_v9 }
 0x6a4   :  { %9229 = vmatmul.mubr.f32.gmra.mrb[26].mxu0 %v12608_v46  ;;  %v3712_v46 = vpop.permute.xlu1 %3711 }
 0x6a5   :  { %9231 = vmatprep.mubr.f32.mxu0 %v12623_v30 }
 0x6a8   :  { %9232 = vmatmul.mubr.f32.gmra.mrb[28].mxu0 %v12638_v29  ;;  %v3722_v59 = vpop.permute.xlu1 %3721 }
 0x6a9   :  { %9234 = vmatprep.mubr.f32.mxu0 %v12650_v24 }
 0x6ac   :  { %9235 = vmatmul.mubr.f32.gmra.mrb[30].mxu0 %v12668_v0  ;;  %v3732_v25 = vpop.permute.xlu1 %3731 }
 0x763   :  { %v9215_v37 = vpop.f32.mrb[16].mxu0 }
 0x764   :  { %v10197_v23 = vadd.f32 %v9215_v37, %v3702_v17  ;;  %v4966_v8 = vpop.f32.mrb[17].mxu0  ;;  %v3747_v17 = vpop.permute.xlu0 %3746 }
 0x765   :  { %v10198_v51 = vadd.f32 %v4966_v8, %v3697_v16  ;;  %v3742_v16 = vpop.permute.xlu1 %3741 }
 0x766   :  { %v12873_v18 = vmax.f32 %v10197_v23, 0.0 }
 0x767   :  { %v12875_v27 = vmax.f32 %v10198_v51, 0.0  ;;  %v9218_v33 = vpop.f32.mrb[18].mxu0 }
 0x768   :  { %v4978_v20 = vpop.f32.mrb[19].mxu0  ;;  %v5079_v12 = vsel %vm1249_vm0, %v12873_v18, 0.0  ;;  %v5141_v24 = vmul.f32 %v12873_v18, %v12873_v18  ;;  %v10199_v50 = vadd.f32 %v9218_v33, %v3712_v46  ;;  %v3757_v46 = vpop.permute.xlu0 %3756 }
 0x769   :  { %v10200_v9 = vadd.f32 %v4978_v20, %v3707_v62  ;;  %5080 = vadd.xlane.f32.xlu1 %v5079_v12  ;;  %v5076_v0 = vsel %vm1249_vm0, %v12875_v27, 0.0  ;;  %v5140_v56 = vmul.f32 %v12875_v27, %v12875_v27 }
 0x76a   :  { %5077 = vadd.xlane.f32.xlu0 %v5076_v0  ;;  %v5159_v15 = vsel %vm1249_vm0, %v5141_v24, 0.0  ;;  %v12892_v54 = vmax.f32 %v10199_v50, 0.0  ;;  %v3752_v24 = vpop.permute.xlu1 %3751 }
 0x76b   :  { %v12883_v29 = vmax.f32 %v10200_v9, 0.0  ;;  %v9221_v30 = vpop.f32.mrb[20].mxu0  ;;  %v5156_v28 = vsel %vm1249_vm0, %v5140_v56, 0.0 }
 0x76c   :  { %v4990_v21 = vpop.f32.mrb[21].mxu0  ;;  %v10201_v26 = vadd.f32 %v9221_v30, %v3722_v59  ;;  %v5085_v19 = vsel %vm1249_vm0, %v12892_v54, 0.0  ;;  %v5143_v10 = vmul.f32 %v12892_v54, %v12892_v54 }
 0x76d   :  { %v10202_v11 = vadd.f32 %v4990_v21, %v3717_v13  ;;  %v5082_v43 = vsel %vm1249_vm0, %v12883_v29, 0.0  ;;  %v5142_v5 = vmul.f32 %v12883_v29, %v12883_v29 }
 0x76e   :  { %5160 = vadd.xlane.f32.xlu0 %v5159_v15  ;;  %5083 = vadd.xlane.f32.xlu1 %v5082_v43  ;;  %v12906_v49 = vmax.f32 %v10201_v26, 0.0  ;;  %v5165_v35 = vsel %vm1249_vm0, %v5143_v10, 0.0 }
 0x76f   :  { %v9224_v34 = vpop.f32.mrb[22].mxu0  ;;  %v12894_v3 = vmax.f32 %v10202_v11, 0.0  ;;  %v5162_v55 = vsel %vm1249_vm0, %v5142_v5, 0.0 }
 0x770   :  { %v5002_v63 = vpop.f32.mrb[23].mxu0  ;;  %v10203_v38 = vadd.f32 %v9224_v34, %v3732_v25  ;;  %v5091_v7 = vsel %vm1249_vm0, %v12906_v49, 0.0  ;;  %v5145_v57 = vmul.f32 %v12906_v49, %v12906_v49 }
 0x771   :  { %v10204_v14 = vadd.f32 %v5002_v63, %v3727_v40  ;;  %v5088_v6 = vsel %vm1249_vm0, %v12894_v3, 0.0  ;;  %v5144_v44 = vmul.f32 %v12894_v3, %v12894_v3  ;;  %v3762_v63 = vpop.permute.xlu1 %3761 }
 0x772   :  { %5157 = vadd.xlane.f32.xlu0 %v5156_v28  ;;  %5163 = vadd.xlane.f32.xlu1 %v5162_v55  ;;  %v12920_v31 = vmax.f32 %v10203_v38, 0.0  ;;  %v5171_v53 = vsel %vm1249_vm0, %v5145_v57, 0.0  ;;  %v3767_v28 = vpop.permute.xlu0 %3766 }
 0x773   :  { %v9227_v48 = vpop.f32.mrb[24].mxu0  ;;  %v12908_v4 = vmax.f32 %v10204_v14, 0.0  ;;  %v5168_v32 = vsel %vm1249_vm0, %v5144_v44, 0.0 }
 0x774   :  { %v5014_v36 = vpop.f32.mrb[25].mxu0  ;;  %v10205_v37 = vadd.f32 %v9227_v48, %v3742_v16  ;;  %v5097_v23 = vsel %vm1249_vm0, %v12920_v31, 0.0  ;;  %v5147_v62 = vmul.f32 %v12920_v31, %v12920_v31 }
 0x775   :  { %v10206_v2 = vadd.f32 %v5014_v36, %v3737_v42  ;;  %v5094_v61 = vsel %vm1249_vm0, %v12908_v4, 0.0  ;;  %v5146_v60 = vmul.f32 %v12908_v4, %v12908_v4  ;;  %v3772_v44 = vpop.permute.xlu1 %3771 }
 0x776   :  { %5086 = vadd.xlane.f32.xlu0 %v5085_v19  ;;  %5089 = vadd.xlane.f32.xlu1 %v5088_v6  ;;  %v12934_v20 = vmax.f32 %v10205_v37, 0.0  ;;  %v5177_v9 = vsel %vm1249_vm0, %v5147_v62, 0.0 }
 0x777   :  { %v9230_v41 = vpop.f32.mrb[26].mxu0  ;;  %v12922_v47 = vmax.f32 %v10206_v2, 0.0  ;;  %v5174_v1 = vsel %vm1249_vm0, %v5146_v60, 0.0 }
 0x778   :  { %v5026_v45 = vpop.f32.mrb[27].mxu0  ;;  %v10207_v30 = vadd.f32 %v9230_v41, %v3752_v24  ;;  %v5103_v13 = vsel %vm1249_vm0, %v12934_v20, 0.0  ;;  %v5149_v56 = vmul.f32 %v12934_v20, %v12934_v20 }
 0x779   :  { %v10208_v8 = vadd.f32 %v5026_v45, %v3747_v17  ;;  %v5100_v51 = vsel %vm1249_vm0, %v12922_v47, 0.0  ;;  %v5148_v33 = vmul.f32 %v12922_v47, %v12922_v47 }
 0x77a   :  { %5166 = vadd.xlane.f32.xlu0 %v5165_v35  ;;  %5169 = vadd.xlane.f32.xlu1 %v5168_v32  ;;  %v12948_v15 = vmax.f32 %v10207_v30, 0.0  ;;  %v5183_v5 = vsel %vm1249_vm0, %v5149_v56, 0.0 }
 0x77b   :  { %v9233_v52 = vpop.f32.mrb[28].mxu0  ;;  %v12936_v12 = vmax.f32 %v10208_v8, 0.0  ;;  %v5180_v0 = vsel %vm1249_vm0, %v5148_v33, 0.0 }
 0x77c   :  { %v5038_v22 = vpop.f32.mrb[29].mxu0  ;;  %v10209_v55 = vadd.f32 %v9233_v52, %v3762_v63  ;;  %v5109_v59 = vsel %vm1249_vm0, %v12948_v15, 0.0  ;;  %v5151_v26 = vmul.f32 %v12948_v15, %v12948_v15 }
 0x77d   :  { %v10210_v50 = vadd.f32 %v5038_v22, %v3757_v46  ;;  %v5106_v21 = vsel %vm1249_vm0, %v12936_v12, 0.0  ;;  %v5150_v11 = vmul.f32 %v12936_v12, %v12936_v12 }
 0x77e   :  { %5092 = vadd.xlane.f32.xlu0 %v5091_v7  ;;  %5095 = vadd.xlane.f32.xlu1 %v5094_v61  ;;  %v12962_v19 = vmax.f32 %v10209_v55, 0.0  ;;  %v5189_v6 = vsel %vm1249_vm0, %v5151_v26, 0.0 }
 0x77f   :  { %v9236_v39 = vpop.f32.mrb[30].mxu0  ;;  %v12950_v43 = vmax.f32 %v10210_v50, 0.0  ;;  %v5186_v34 = vsel %vm1249_vm0, %v5150_v11, 0.0 }
 0x780   :  { %v5050_v58 = vpop.f32.mrb[31].mxu0  ;;  %v10211_v41 = vadd.f32 %v9236_v39, %v3772_v44  ;;  %v5115_v45 = vsel %vm1249_vm0, %v12962_v19, 0.0  ;;  %v5153_v32 = vmul.f32 %v12962_v19, %v12962_v19 }
 0x781   :  { %v10212_v48 = vadd.f32 %v5050_v58, %v3767_v28  ;;  %v5112_v40 = vsel %vm1249_vm0, %v12950_v43, 0.0  ;;  %v5152_v36 = vmul.f32 %v12950_v43, %v12950_v43 }
 0x782   :  { %5172 = vadd.xlane.f32.xlu0 %v5171_v53  ;;  %5175 = vadd.xlane.f32.xlu1 %v5174_v1  ;;  %v12976_v52 = vmax.f32 %v10211_v41, 0.0  ;;  %v5195_v42 = vsel %vm1249_vm0, %v5153_v32, 0.0 }
 0x783   :  { %v12964_v14 = vmax.f32 %v10212_v48, 0.0  ;;  %v5192_v10 = vsel %vm1249_vm0, %v5152_v36, 0.0 }
 0x784   :  { %v5121_v22 = vsel %vm1249_vm0, %v12976_v52, 0.0  ;;  %v5155_v7 = vmul.f32 %v12976_v52, %v12976_v52 }
 0x785   :  { %v5118_v35 = vsel %vm1249_vm0, %v12964_v14, 0.0  ;;  %v5154_v25 = vmul.f32 %v12964_v14, %v12964_v14 }
 0x786   :  { %5098 = vadd.xlane.f32.xlu0 %v5097_v23  ;;  %5101 = vadd.xlane.f32.xlu1 %v5100_v51  ;;  %v5201_v2 = vsel %vm1249_vm0, %v5155_v7, 0.0 }
 0x787   :  { %v5198_v38 = vsel %vm1249_vm0, %v5154_v25, 0.0  ;;  %v7636_v25 = vld [vmem:[%s14235_s3 + $0x108] sm:$0xff] }
 0x78a   :  { %5178 = vadd.xlane.f32.xlu0 %v5177_v9  ;;  %5181 = vadd.xlane.f32.xlu1 %v5180_v0 }
 0x78e   :  { %5104 = vadd.xlane.f32.xlu0 %v5103_v13  ;;  %5107 = vadd.xlane.f32.xlu1 %v5106_v21 }
 0x792   :  { %5184 = vadd.xlane.f32.xlu0 %v5183_v5  ;;  %5187 = vadd.xlane.f32.xlu1 %v5186_v34 }
 0x796   :  { %5110 = vadd.xlane.f32.xlu0 %v5109_v59  ;;  %5113 = vadd.xlane.f32.xlu1 %v5112_v40 }
 0x79a   :  { %5190 = vadd.xlane.f32.xlu0 %v5189_v6  ;;  %5193 = vadd.xlane.f32.xlu1 %v5192_v10 }
 0x79e   :  { %5116 = vadd.xlane.f32.xlu0 %v5115_v45  ;;  %5119 = vadd.xlane.f32.xlu1 %v5118_v35 }
 0x7a2   :  { %5196 = vadd.xlane.f32.xlu0 %v5195_v42  ;;  %5199 = vadd.xlane.f32.xlu1 %v5198_v38 }
 0x7a6   :  { %5122 = vadd.xlane.f32.xlu0 %v5121_v22 }
 0x7aa   :  { %5202 = vadd.xlane.f32.xlu0 %v5201_v2 }
 0x7f6   :  { %v5081_v61 = vpop.xlane.xlu1 %5080 }
 0x7f7   :  { %v5078_v57 = vpop.xlane.xlu0 %5077  ;;  %v12985_v60 = vmul.f32 0.125, %v5081_v61 }
 0x7f8   :  { %v12987_v39 = vmul.f32 0.125, %v5078_v57 }
 0x7f9   :  { %v5221_v1 = vmul.f32 %v12985_v60, %v12985_v60 }
 0x7fa   :  { %v5220_v23 = vmul.f32 %v12987_v39, %v12987_v39 }
 0x7fb   :  { %v5084_v58 = vpop.xlane.xlu1 %5083  ;;  %v5161_v53 = vpop.xlane.xlu0 %5160 }
 0x7fc   :  { %v12991_v16 = vmul.f32 0.125, %v5084_v58  ;;  %v5205_v17 = vmul.f32 0.125, %v5161_v53 }
 0x7fe   :  { %v5237_v37 = vsub.f32 %v5205_v17, %v5221_v1  ;;  %v5222_v62 = vmul.f32 %v12991_v16, %v12991_v16  ;;  %v7637_v17 = vld [vmem:[%s14235_s3 + $0x110] sm:$0xff] }
 0x7ff   :  { %v5164_v8 = vpop.xlane.xlu1 %5163  ;;  %v5158_v51 = vpop.xlane.xlu0 %5157 }
 0x800   :  { %v5253_v33 = vmax.f32 %v5237_v37, 0.0  ;;  %v5206_v9 = vmul.f32 0.125, %v5164_v8  ;;  %v5204_v0 = vmul.f32 0.125, %v5158_v51  ;;  %v7635_v51 = vld [vmem:[%s14235_s3 + $0x100] sm:$0xff] }
 0x802   :  { %v5286_v24 = vadd.f32 1e-05, %v5253_v33  ;;  %v5238_v46 = vsub.f32 %v5206_v9, %v5222_v62  ;;  %v5236_v30 = vsub.f32 %v5204_v0, %v5220_v23 }
 0x803   :  { %v5090_v13 = vpop.xlane.xlu1 %5089  ;;  %v5087_v50 = vpop.xlane.xlu0 %5086 }
 0x804   :  { %10621 = vrsqrt.f32 %v5286_v24  ;;  %v5254_v21 = vmax.f32 %v5238_v46, 0.0  ;;  %v5252_v56 = vmax.f32 %v5236_v30, 0.0  ;;  %v12997_v11 = vmul.f32 0.125, %v5090_v13 }
 0x805   :  { %v12999_v5 = vmul.f32 0.125, %v5087_v50  ;;  %v7653_v50 = vld [vmem:[%s14236_s4 + $0x110] sm:$0xff] }
 0x806   :  { %v5287_v34 = vadd.f32 1e-05, %v5254_v21  ;;  %v5285_v63 = vadd.f32 1e-05, %v5252_v56  ;;  %v5224_v28 = vmul.f32 %v12997_v11, %v12997_v11 }
 0x807   :  { %v5170_v55 = vpop.xlane.xlu1 %5169  ;;  %v5167_v59 = vpop.xlane.xlu0 %5166  ;;  %v5223_v48 = vmul.f32 %v12999_v5, %v12999_v5 }
 0x808   :  { %10623 = vrsqrt.f32 %v5287_v34  ;;  %v5208_v40 = vmul.f32 0.125, %v5170_v55  ;;  %v5207_v26 = vmul.f32 0.125, %v5167_v59  ;;  %v7652_v55 = vld [vmem:[%s14236_s4 + $0x108] sm:$0xff] }
 0x809   :  { %10625 = vrsqrt.f32 %v5285_v63 }
 0x80a   :  { %v5240_v36 = vsub.f32 %v5208_v40, %v5224_v28  ;;  %v5239_v6 = vsub.f32 %v5207_v26, %v5223_v48 }
 0x80b   :  { %v5096_v10 = vpop.xlane.xlu1 %5095  ;;  %v5093_v44 = vpop.xlane.xlu0 %5092 }
 0x80c   :  { %v5256_v41 = vmax.f32 %v5240_v36, 0.0  ;;  %v5255_v45 = vmax.f32 %v5239_v6, 0.0  ;;  %v13005_v35 = vmul.f32 0.125, %v5096_v10  ;;  %v13007_v32 = vmul.f32 0.125, %v5093_v44 }
 0x80e   :  { %v10622_v42 = vpop.eup %10621  ;;  %v5289_v38 = vadd.f32 1e-05, %v5256_v41  ;;  %v5288_v22 = vadd.f32 1e-05, %v5255_v45  ;;  %v5226_v7 = vmul.f32 %v13005_v35, %v13005_v35  ;;  %v5225_v58 = vmul.f32 %v13007_v32, %v13007_v32 }
 0x80f   :  { %v5176_v2 = vpop.xlane.xlu1 %5175  ;;  %v5173_v61 = vpop.xlane.xlu0 %5172  ;;  %v5318_v57 = vmul.f32 %v10622_v42, %v7636_v25  ;;  %v7638_v25 = vld [vmem:[%s14235_s3 + $0x118] sm:$0xff] }
 0x810   :  { %10627 = vrsqrt.f32 %v5289_v38  ;;  %v5210_v53 = vmul.f32 0.125, %v5176_v2  ;;  %v5209_v1 = vmul.f32 0.125, %v5173_v61 }
 0x811   :  { %10629 = vrsqrt.f32 %v5288_v22  ;;  %5389 = vperm.xlu0 %10555, %v5318_v57   ;;  %v5351_v34 = vmul.f32 %v5318_v57, %v12985_v60  ;;  %v7639_v60 = vld [vmem:[%s14235_s3 + $0x120] sm:$0xff] }
 0x812   :  { %v10624_v37 = vpop.eup %10623  ;;  %v5242_v23 = vsub.f32 %v5210_v53, %v5226_v7  ;;  %v5241_v8 = vsub.f32 %v5209_v1, %v5225_v58  ;;  %v7655_v53 = vld [vmem:[%s14236_s4 + $0x120] sm:$0xff] }
 0x813   :  { %v10626_v62 = vpop.eup %10625  ;;  %v5102_v33 = vpop.xlane.xlu1 %5101  ;;  %v5319_v0 = vmul.f32 %v10624_v37, %v7637_v17  ;;  %v5367_v10 = vsub.f32 %v7652_v55, %v5351_v34  ;;  %v7640_v55 = vld [vmem:[%s14235_s3 + $0x128] sm:$0xff] }
 0x814   :  { %v5099_v9 = vpop.xlane.xlu0 %5098  ;;  %v5258_v24 = vmax.f32 %v5242_v23, 0.0  ;;  %v5257_v46 = vmax.f32 %v5241_v8, 0.0  ;;  %v13022_v30 = vmul.f32 0.125, %v5102_v33  ;;  %v5317_v21 = vmul.f32 %v10626_v62, %v7635_v51  ;;  %v7651_v51 = vld [vmem:[%s14236_s4 + $0x100] sm:$0xff] }
 0x815   :  { %v13024_v13 = vmul.f32 0.125, %v5099_v9  ;;  %5394 = vperm.xlu0 %10555, %v5319_v0   ;;  %v5352_v56 = vmul.f32 %v5319_v0, %v12991_v16 }
 0x816   :  { %v5291_v63 = vadd.f32 1e-05, %v5258_v24  ;;  %v5290_v28 = vadd.f32 1e-05, %v5257_v46  ;;  %v5228_v59 = vmul.f32 %v13022_v30, %v13022_v30  ;;  %5384 = vperm.xlu1 %10556, %v5317_v21   ;;  %v5350_v37 = vmul.f32 %v5317_v21, %v12987_v39  ;;  %v7641_v39 = vld [vmem:[%s14235_s3 + $0x130] sm:$0xff] }
 0x817   :  { %v5182_v48 = vpop.xlane.xlu1 %5181  ;;  %v5368_v26 = vsub.f32 %v7653_v50, %v5352_v56  ;;  %v5227_v36 = vmul.f32 %v13024_v13, %v13024_v13 }
 0x818   :  { %v5179_v40 = vpop.xlane.xlu0 %5178  ;;  %10631 = vrsqrt.f32 %v5291_v63  ;;  %v5212_v16 = vmul.f32 0.125, %v5182_v48  ;;  %v5366_v50 = vsub.f32 %v7651_v51, %v5350_v37  ;;  %v7642_v51 = vld [vmem:[%s14235_s3 + $0x138] sm:$0xff] }
 0x819   :  { %v5211_v6 = vmul.f32 0.125, %v5179_v40  ;;  %10633 = vrsqrt.f32 %v5290_v28  ;;  %5490 = vperm.xlu0 %10555, %v5368_v26   ;;  %v7654_v28 = vld [vmem:[%s14236_s4 + $0x118] sm:$0xff] }
 0x81a   :  { %v10628_v44 = vpop.eup %10627  ;;  %v5244_v41 = vsub.f32 %v5212_v16, %v5228_v59  ;;  %5485 = vperm.xlu1 %10556, %v5367_v10  }
 0x81b   :  { %v5243_v45 = vsub.f32 %v5211_v6, %v5227_v36  ;;  %v10630_v42 = vpop.eup %10629  ;;  %v5108_v38 = vpop.xlane.xlu1 %5107  ;;  %v5321_v7 = vmul.f32 %v10628_v44, %v7639_v60  ;;  %v7657_v60 = vld [vmem:[%s14236_s4 + $0x130] sm:$0xff] }
 0x81c   :  { %v5105_v22 = vpop.xlane.xlu0 %5104  ;;  %v5260_v2 = vmax.f32 %v5244_v41, 0.0  ;;  %v13044_v57 = vmul.f32 0.125, %v5108_v38  ;;  %v5320_v1 = vmul.f32 %v10630_v42, %v7638_v25 }
 0x81d   :  { %v5259_v61 = vmax.f32 %v5243_v45, 0.0  ;;  %v13046_v58 = vmul.f32 0.125, %v5105_v22  ;;  %5404 = vperm.xlu0 %10555, %v5321_v7   ;;  %v5354_v17 = vmul.f32 %v5321_v7, %v12997_v11 }
 0x81e   :  { %v5293_v23 = vadd.f32 1e-05, %v5260_v2  ;;  %v5230_v62 = vmul.f32 %v13044_v57, %v13044_v57  ;;  %5399 = vperm.xlu1 %10556, %v5320_v1   ;;  %v5353_v21 = vmul.f32 %v5320_v1, %v12999_v5 }
 0x81f   :  { %v5292_v8 = vadd.f32 1e-05, %v5259_v61  ;;  %v5188_v33 = vpop.xlane.xlu1 %5187  ;;  %v5370_v0 = vsub.f32 %v7655_v53, %v5354_v17  ;;  %v5229_v24 = vmul.f32 %v13046_v58, %v13046_v58 }
 0x820   :  { %v5185_v9 = vpop.xlane.xlu0 %5184  ;;  %10635 = vrsqrt.f32 %v5293_v23  ;;  %v5214_v11 = vmul.f32 0.125, %v5188_v33  ;;  %v5369_v10 = vsub.f32 %v7654_v28, %v5353_v21 }
 0x821   :  { %v5213_v46 = vmul.f32 0.125, %v5185_v9  ;;  %10637 = vrsqrt.f32 %v5292_v8  ;;  %5500 = vperm.xlu0 %10555, %v5370_v0   ;;  %v7656_v8 = vld [vmem:[%s14236_s4 + $0x128] sm:$0xff] }
 0x822   :  { %v10632_v56 = vpop.eup %10631  ;;  %v5246_v34 = vsub.f32 %v5214_v11, %v5230_v62  ;;  %5480 = vperm.xlu1 %10556, %v5366_v50  }
 0x823   :  { %v5245_v63 = vsub.f32 %v5213_v46, %v5229_v24  ;;  %v10634_v59 = vpop.eup %10633  ;;  %v5114_v48 = vpop.xlane.xlu1 %5113  ;;  %v5323_v26 = vmul.f32 %v10632_v56, %v7641_v39  ;;  %v7659_v39 = vld [vmem:[%s14236_s4 + $0x140] sm:$0xff] }
 0x824   :  { %v5111_v40 = vpop.xlane.xlu0 %5110  ;;  %v5262_v36 = vmax.f32 %v5246_v34, 0.0  ;;  %v13070_v6 = vmul.f32 0.125, %v5114_v48  ;;  %v5322_v41 = vmul.f32 %v10634_v59, %v7640_v55 }
 0x825   :  { %v5261_v16 = vmax.f32 %v5245_v63, 0.0  ;;  %v13072_v5 = vmul.f32 0.125, %v5111_v40  ;;  %5414 = vperm.xlu0 %10555, %v5323_v26   ;;  %v5356_v44 = vmul.f32 %v5323_v26, %v13005_v35  ;;  %v7643_v35 = vld [vmem:[%s14235_s3 + $0x140] sm:$0xff] }
 0x826   :  { %v5295_v45 = vadd.f32 1e-05, %v5262_v36  ;;  %v5232_v42 = vmul.f32 %v13070_v6, %v13070_v6  ;;  %5495 = vperm.xlu1 %10556, %v5369_v10   ;;  %v5355_v1 = vmul.f32 %v5322_v41, %v13007_v32 }
 0x827   :  { %v5294_v25 = vadd.f32 1e-05, %v5261_v16  ;;  %v5194_v38 = vpop.xlane.xlu1 %5193  ;;  %v5372_v7 = vsub.f32 %v7657_v60, %v5356_v44  ;;  %v5231_v2 = vmul.f32 %v13072_v5, %v13072_v5 }
 0x828   :  { %v5191_v22 = vpop.xlane.xlu0 %5190  ;;  %10639 = vrsqrt.f32 %v5295_v45  ;;  %v5216_v61 = vmul.f32 0.125, %v5194_v38  ;;  %v5371_v50 = vsub.f32 %v7656_v8, %v5355_v1  ;;  %v7644_v45 = vld [vmem:[%s14235_s3 + $0x148] sm:$0xff] }
 0x829   :  { %v5215_v53 = vmul.f32 0.125, %v5191_v22  ;;  %10641 = vrsqrt.f32 %v5294_v25  ;;  %5510 = vperm.xlu0 %10555, %v5372_v7  }
 0x82a   :  { %v10636_v17 = vpop.eup %10635  ;;  %v5248_v37 = vsub.f32 %v5216_v61, %v5232_v42  ;;  %5409 = vperm.xlu1 %10556, %v5322_v41   ;;  %v7658_v41 = vld [vmem:[%s14236_s4 + $0x138] sm:$0xff] }
 0x82b   :  { %v5247_v23 = vsub.f32 %v5215_v53, %v5231_v2  ;;  %v10638_v62 = vpop.eup %10637  ;;  %v5120_v33 = vpop.xlane.xlu1 %5119  ;;  %v5325_v0 = vmul.f32 %v10636_v17, %v7643_v35 }
 0x82c   :  { %v5117_v9 = vpop.xlane.xlu0 %5116  ;;  %v5264_v24 = vmax.f32 %v5248_v37, 0.0  ;;  %v13092_v46 = vmul.f32 0.125, %v5120_v33  ;;  %v5324_v56 = vmul.f32 %v10638_v62, %v7642_v51  ;;  %v7647_v62 = vld [vmem:[%s14235_s3 + $0x160] sm:$0xff] }
 0x82d   :  { %v5263_v11 = vmax.f32 %v5247_v23, 0.0  ;;  %v13094_v32 = vmul.f32 0.125, %v5117_v9  ;;  %5424 = vperm.xlu0 %10555, %v5325_v0   ;;  %v5358_v21 = vmul.f32 %v5325_v0, %v13022_v30  ;;  %v7645_v30 = vld [vmem:[%s14235_s3 + $0x150] sm:$0xff]  ;;  %v7660_v0 = vld [vmem:[%s14236_s4 + $0x148] sm:$0xff] }
 0x82e   :  { %v5297_v34 = vadd.f32 1e-05, %v5264_v24  ;;  %v5234_v28 = vmul.f32 %v13092_v46, %v13092_v46  ;;  %5505 = vperm.xlu1 %10556, %v5371_v50   ;;  %v5357_v16 = vmul.f32 %v5324_v56, %v13024_v13  ;;  %v7661_v13 = vld [vmem:[%s14236_s4 + $0x150] sm:$0xff]  ;;  %v7646_v24 = vld [vmem:[%s14235_s3 + $0x158] sm:$0xff] }
 0x82f   :  { %v5296_v63 = vadd.f32 1e-05, %v5263_v11  ;;  %v5200_v55 = vpop.xlane.xlu1 %5199  ;;  %v5374_v48 = vsub.f32 %v7659_v39, %v5358_v21  ;;  %v5233_v40 = vmul.f32 %v13094_v32, %v13094_v32  ;;  %v7663_v21 = vld [vmem:[%s14236_s4 + $0x160] sm:$0xff] }
 0x830   :  { %v5197_v59 = vpop.xlane.xlu0 %5196  ;;  %10643 = vrsqrt.f32 %v5297_v34  ;;  %v5218_v26 = vmul.f32 0.125, %v5200_v55  ;;  %v5373_v61 = vsub.f32 %v7658_v41, %v5357_v16  ;;  %v7649_v55 = vld [vmem:[%s14235_s3 + $0x170] sm:$0xff] }
 0x831   :  { %v5217_v36 = vmul.f32 0.125, %v5197_v59  ;;  %10645 = vrsqrt.f32 %v5296_v63  ;;  %5520 = vperm.xlu0 %10555, %v5374_v48  }
 0x832   :  { %v10640_v60 = vpop.eup %10639  ;;  %v5250_v10 = vsub.f32 %v5218_v26, %v5234_v28  ;;  %5419 = vperm.xlu1 %10556, %v5324_v56  }
 0x833   :  { %v5249_v44 = vsub.f32 %v5217_v36, %v5233_v40  ;;  %v10642_v25 = vpop.eup %10641  ;;  %v5327_v38 = vmul.f32 %v10640_v60, %v7645_v30  ;;  %v7662_v40 = vld [vmem:[%s14236_s4 + $0x158] sm:$0xff]  ;;  %v7665_v30 = vld [vmem:[%s14236_s4 + $0x170] sm:$0xff] }
 0x834   :  { %v5123_v42 = vpop.xlane.xlu0 %5122  ;;  %v5266_v22 = vmax.f32 %v5250_v10, 0.0  ;;  %v5326_v35 = vmul.f32 %v10642_v25, %v7644_v45  ;;  %v7683_v45 = vld [vmem:[%s14234_s2 + $0x180] sm:$0xff]  ;;  %v7664_v25 = vld [vmem:[%s14236_s4 + $0x168] sm:$0xff] }
 0x835   :  { %v5265_v7 = vmax.f32 %v5249_v44, 0.0  ;;  %v13114_v2 = vmul.f32 0.125, %v5123_v42  ;;  %5434 = vperm.xlu0 %10555, %v5327_v38   ;;  %v5360_v53 = vmul.f32 %v5327_v38, %v13044_v57  ;;  %v7650_v42 = vld [vmem:[%s14235_s3 + $0x178] sm:$0xff] }
 0x836   :  { %v5299_v1 = vadd.f32 1e-05, %v5266_v22  ;;  %5515 = vperm.xlu1 %10556, %v5373_v61   ;;  %v5359_v33 = vmul.f32 %v5326_v35, %v13046_v58 }
 0x837   :  { %v5298_v17 = vadd.f32 1e-05, %v5265_v7  ;;  %v5376_v23 = vsub.f32 %v7661_v13, %v5360_v53  ;;  %v5235_v8 = vmul.f32 %v13114_v2, %v13114_v2  ;;  %v7687_v7 = vld [vmem:[%s14234_s2 + $0x1a0] sm:$0xff]  ;;  %v7666_v13 = vld [vmem:[%s14236_s4 + $0x178] sm:$0xff]  ;;  %v7689_v53 = vld [vmem:[%s14234_s2 + $0x1b0] sm:$0xff] }
 0x838   :  { %v5203_v37 = vpop.xlane.xlu0 %5202  ;;  %10647 = vrsqrt.f32 %v5299_v1  ;;  %v5375_v58 = vsub.f32 %v7660_v0, %v5359_v33  ;;  %v7684_v1 = vld [vmem:[%s14234_s2 + $0x188] sm:$0xff]  ;;  %v7690_v0 = vld [vmem:[%s14234_s2 + $0x1b8] sm:$0xff] }
 0x839   :  { %v5219_v51 = vmul.f32 0.125, %v5203_v37  ;;  %10649 = vrsqrt.f32 %v5298_v17  ;;  %5530 = vperm.xlu0 %10555, %v5376_v23   ;;  %v7691_v37 = vld [vmem:[%s14234_s2 + $0x1c0] sm:$0xff] }
 0x83a   :  { %v10644_v57 = vpop.eup %10643  ;;  %5429 = vperm.xlu1 %10556, %v5326_v35   ;;  %v7667_v35 = vld [vmem:[%s14233_s1 + $0x180] sm:$0xff] }
 0x83b   :  { %v5251_v9 = vsub.f32 %v5219_v51, %v5235_v8  ;;  %v10646_v11 = vpop.eup %10645  ;;  %v5329_v39 = vmul.f32 %v10644_v57, %v7647_v62  ;;  %v7686_v8 = vld [vmem:[%s14234_s2 + $0x198] sm:$0xff]  ;;  %v7693_v62 = vld [vmem:[%s14234_s2 + $0x1d0] sm:$0xff]  ;;  %v7688_v57 = vld [vmem:[%s14234_s2 + $0x1a8] sm:$0xff] }
 0x83c   :  { %v5328_v34 = vmul.f32 %v10646_v11, %v7646_v24  ;;  %v7697_v24 = vld [vmem:[%s14234_s2 + $0x1f0] sm:$0xff]  ;;  %v7692_v11 = vld [vmem:[%s14234_s2 + $0x1c8] sm:$0xff] }
 0x83d   :  { %v5267_v50 = vmax.f32 %v5251_v9, 0.0  ;;  %5444 = vperm.xlu0 %10555, %v5329_v39   ;;  %v5362_v56 = vmul.f32 %v5329_v39, %v13070_v6  ;;  %v7648_v6 = vld [vmem:[%s14235_s3 + $0x168] sm:$0xff]  ;;  %v7695_v9 = vld [vmem:[%s14234_s2 + $0x1e0] sm:$0xff]  ;;  %v7694_v39 = vld [vmem:[%s14234_s2 + $0x1d8] sm:$0xff] }
 0x83e   :  { %5525 = vperm.xlu1 %10556, %v5375_v58   ;;  %v5361_v59 = vmul.f32 %v5328_v34, %v13072_v5 }
 0x83f   :  { %v5300_v63 = vadd.f32 1e-05, %v5267_v50  ;;  %v5378_v28 = vsub.f32 %v7663_v21, %v5362_v56  ;;  %v7696_v50 = vld [vmem:[%s14234_s2 + $0x1e8] sm:$0xff]  ;;  %v7698_v21 = vld [vmem:[%s14234_s2 + $0x1f8] sm:$0xff] }
 0x840   :  { %v5377_v16 = vsub.f32 %v7662_v40, %v5361_v59 }
 0x841   :  { %10651 = vrsqrt.f32 %v5300_v63  ;;  %5540 = vperm.xlu0 %10555, %v5378_v28  }
 0x842   :  { %v10648_v48 = vpop.eup %10647  ;;  %5439 = vperm.xlu1 %10556, %v5328_v34  }
 0x843   :  { %v10650_v26 = vpop.eup %10649  ;;  %v5331_v36 = vmul.f32 %v10648_v48, %v7649_v55 }
 0x844   :  { %v5330_v60 = vmul.f32 %v10650_v26, %v7648_v6 }
 0x845   :  { %5454 = vperm.xlu0 %10555, %v5331_v36   ;;  %v5364_v5 = vmul.f32 %v5331_v36, %v13092_v46 }
 0x846   :  { %5535 = vperm.xlu1 %10556, %v5377_v16   ;;  %v5363_v44 = vmul.f32 %v5330_v60, %v13094_v32  ;;  %v7685_v32 = vld [vmem:[%s14234_s2 + $0x190] sm:$0xff] }
 0x847   :  { %v5380_v10 = vsub.f32 %v7665_v30, %v5364_v5 }
 0x848   :  { %v5379_v46 = vsub.f32 %v7664_v25, %v5363_v44 }
 0x849   :  { %5550 = vperm.xlu0 %10555, %v5380_v10  }
 0x84a   :  { %5449 = vperm.xlu1 %10556, %v5330_v60  }
 0x84b   :  { %v10652_v41 = vpop.eup %10651 }
 0x84c   :  { %v5332_v38 = vmul.f32 %v10652_v41, %v7650_v42 }
 0x84d   :  { %5610 = vperm.xlu0 %10555, %v7683_v45  }
 0x84e   :  { %5545 = vperm.xlu1 %10556, %v5379_v46   ;;  %v5365_v22 = vmul.f32 %v5332_v38, %v13114_v2  ;;  %v13176_v2 = vand.u32 4294901760, %v7667_v35 }
 0x850   :  { %v5381_v61 = vsub.f32 %v7666_v13, %v5365_v22  ;;  %v13182_v17 = vsub.f32 %v7667_v35, %v13176_v2  ;;  %9549 = vmatprep.mubr.f32.mxu0 %v13176_v2 }
 0x851   :  { %5620 = vperm.xlu0 %10555, %v7685_v32  }
 0x852   :  { %5459 = vperm.xlu1 %10556, %v5332_v38   ;;  %v14336_v23 = vand.u32 4294901760, %v13182_v17 }
 0x854   :  { %v5772_v51 = vsub.f32 %v13182_v17, %v14336_v23 }
 0x855   :  { %5630 = vperm.xlu0 %10555, %v7687_v7  }
 0x856   :  { %5555 = vperm.xlu1 %10556, %v5381_v61   ;;  %v5773_v33 = vand.u32 4294901760, %v5772_v51 }
 0x858   :  { %9269 = vmatprep.mubr.f32.mxu1 %v5773_v33 }
 0x859   :  { %5640 = vperm.xlu0 %10555, %v7689_v53  }
 0x85a   :  { %5615 = vperm.xlu1 %10556, %v7684_v1  }
 0x85d   :  { %5650 = vperm.xlu0 %10555, %v7691_v37  }
 0x85e   :  { %5625 = vperm.xlu1 %10556, %v7686_v8  }
 0x861   :  { %5660 = vperm.xlu0 %10555, %v7693_v62  }
 0x862   :  { %5635 = vperm.xlu1 %10556, %v7688_v57  }
 0x865   :  { %5670 = vperm.xlu0 %10555, %v7695_v9  }
 0x866   :  { %5645 = vperm.xlu1 %10556, %v7690_v0  }
 0x869   :  { %5680 = vperm.xlu0 %10555, %v7697_v24  }
 0x86a   :  { %5655 = vperm.xlu1 %10556, %v7692_v11  }
 0x86e   :  { %5665 = vperm.xlu1 %10556, %v7694_v39  }
 0x872   :  { %5675 = vperm.xlu1 %10556, %v7696_v50  }
 0x876   :  { %5685 = vperm.xlu1 %10556, %v7698_v21  }
 0x890   :  { %v5390_v58 = vpop.permute.xlu0 %5389 }
 0x891   :  { %v5463_v55 = vmul.f32 %v5390_v58, %v12873_v18 }
 0x894   :  { %v5395_v56 = vpop.permute.xlu0 %5394 }
 0x895   :  { %v5385_v34 = vpop.permute.xlu1 %5384  ;;  %v5464_v6 = vmul.f32 %v5395_v56, %v12883_v29 }
 0x896   :  { %v5462_v36 = vmul.f32 %v5385_v34, %v12875_v27 }
 0x898   :  { %v5491_v63 = vpop.permute.xlu0 %5490 }
 0x899   :  { %v5486_v28 = vpop.permute.xlu1 %5485  ;;  %v5560_v30 = vadd.f32 %v5491_v63, %v5464_v6 }
 0x89a   :  { %v5559_v48 = vadd.f32 %v5486_v28, %v5463_v55 }
 0x89b   :  { %v5695_v44 = vand.u32 4294901760, %v5560_v30 }
 0x89c   :  { %v5405_v59 = vpop.permute.xlu0 %5404  ;;  %v5692_v16 = vand.u32 4294901760, %v5559_v48 }
 0x89d   :  { %v5400_v40 = vpop.permute.xlu1 %5399  ;;  %v5466_v42 = vmul.f32 %v5405_v59, %v12894_v3  ;;  %v13233_v32 = vsub.f32 %v5560_v30, %v5695_v44 }
 0x89e   :  { %v5465_v41 = vmul.f32 %v5400_v40, %v12892_v54  ;;  %v13226_v25 = vsub.f32 %v5559_v48, %v5692_v16 }
 0x89f   :  { %v5946_v37 = vand.u32 4294901760, %v13233_v32 }
 0x8a0   :  { %v5501_v26 = vpop.permute.xlu0 %5500  ;;  %v5939_v54 = vand.u32 4294901760, %v13226_v25 }
 0x8a1   :  { %v5481_v5 = vpop.permute.xlu1 %5480  ;;  %v5562_v7 = vadd.f32 %v5501_v26, %v5466_v42 }
 0x8a2   :  { %v5558_v60 = vadd.f32 %v5481_v5, %v5462_v36 }
 0x8a3   :  { %v5701_v8 = vand.u32 4294901760, %v5562_v7 }
 0x8a4   :  { %v5415_v10 = vpop.permute.xlu0 %5414  ;;  %v5689_v45 = vand.u32 4294901760, %v5558_v60 }
 0x8a5   :  { %v5496_v18 = vpop.permute.xlu1 %5495  ;;  %v5468_v57 = vmul.f32 %v5415_v10, %v12908_v4 }
 0x8a6   :  { %v13229_v46 = vpack.c.bf16 %v5692_v16, %v5689_v45  ;;  %v13231_v29 = vsub.f32 %v5558_v60, %v5689_v45  ;;  %v5561_v38 = vadd.f32 %v5496_v18, %v5465_v41 }
 0x8a8   :  { %v5511_v27 = vpop.permute.xlu0 %5510  ;;  %v5932_v22 = vand.u32 4294901760, %v13231_v29  ;;  %v5698_v13 = vand.u32 4294901760, %v5561_v38  ;;  %9958 = vmatprep.subr.bf16.mxu1 %v13229_v46  ;;  %10118 = vmatprep.subr.bf16.mxu0 %v13229_v46 }
 0x8a9   :  { %v5410_v61 = vpop.permute.xlu1 %5409  ;;  %9960 = vmatpush3.bf16.msra.mxu1 %v13229_v46  ;;  %10120 = vmatpush3.bf16.msra.mxu0 %v13229_v46  ;;  %v5564_v11 = vadd.f32 %v5511_v27, %v5468_v57 }
 0x8aa   :  { %v13241_v3 = vpack.c.bf16 %v5698_v13, %v5695_v44  ;;  %v13243_v53 = vsub.f32 %v5561_v38, %v5698_v13  ;;  %v13249_v1 = vpack.c.bf16 %v5939_v54, %v5932_v22  ;;  %v5467_v62 = vmul.f32 %v5410_v61, %v12906_v49 }
 0x8ab   :  { %v13265_v49 = vsub.f32 %v5562_v7, %v5701_v8  ;;  %v5707_v34 = vand.u32 4294901760, %v5564_v11 }
 0x8ac   :  { %v5425_v35 = vpop.permute.xlu0 %5424  ;;  %14536 = vst [vmem:[#allocation21_spill] sm:$0xff] %v13249_v1  ;;  %v5953_v51 = vand.u32 4294901760, %v13243_v53  ;;  %9962 = vmatprep.subr.bf16.mxu1 %v13241_v3  ;;  %10122 = vmatprep.subr.bf16.mxu0 %v13241_v3 }
 0x8ad   :  { %v5506_v33 = vpop.permute.xlu1 %5505  ;;  %9964 = vmatpush3.bf16.msra.mxu1 %v13241_v3  ;;  %10124 = vmatpush3.bf16.msra.mxu0 %v13241_v3  ;;  %v14344_v4 = vand.u32 4294901760, %v13265_v49  ;;  %v5470_v59 = vmul.f32 %v5425_v35, %v12922_v47 }
 0x8ae   :  { %v5563_v9 = vadd.f32 %v5506_v33, %v5467_v62  ;;  %v13263_v0 = vpack.c.bf16 %v5953_v51, %v5946_v37 }
 0x8b0   :  { %14537 = vst [vmem:[#allocation18_spill] sm:$0xff] %v13263_v0  ;;  %v5521_v24 = vpop.permute.xlu0 %5520  ;;  %v5704_v39 = vand.u32 4294901760, %v5563_v9 }
 0x8b1   :  { %v5420_v50 = vpop.permute.xlu1 %5419  ;;  %v5566_v26 = vadd.f32 %v5521_v24, %v5470_v59  ;;  %v7669_v59 = vld [vmem:[%s14233_s1 + $0x190] sm:$0xff] }
 0x8b2   :  { %v13267_v21 = vpack.c.bf16 %v5704_v39, %v5701_v8  ;;  %v13269_v58 = vsub.f32 %v5563_v9, %v5704_v39  ;;  %v5469_v28 = vmul.f32 %v5420_v50, %v12920_v31  ;;  %v13285_v31 = vsub.f32 %v5564_v11, %v5707_v34  ;;  %v7668_v9 = vld [vmem:[%s14233_s1 + $0x188] sm:$0xff] }
 0x8b3   :  { %v5713_v10 = vand.u32 4294901760, %v5566_v26 }
 0x8b4   :  { %14538 = vst [vmem:[#allocation6_spill] sm:$0xff] %v13267_v21  ;;  %v5435_v56 = vpop.permute.xlu0 %5434  ;;  %v14347_v63 = vand.u32 4294901760, %v13269_v58  ;;  %9966 = vmatprep.subr.bf16.mxu1 %v13267_v21  ;;  %10126 = vmatprep.subr.bf16.mxu0 %v13267_v21  ;;  %v14342_v47 = vand.u32 4294901760, %v13285_v31 }
 0x8b5   :  { %v5516_v55 = vpop.permute.xlu1 %5515  ;;  %9968 = vmatpush3.bf16.msra.mxu1 %v13267_v21  ;;  %10128 = vmatpush3.bf16.msra.mxu0 %v13267_v21  ;;  %v5472_v18 = vmul.f32 %v5435_v56, %v12936_v12  ;;  %v13305_v27 = vsub.f32 %v5566_v26, %v5713_v10  ;;  %v13328_v56 = vand.u32 4294901760, %v7668_v9  ;;  %v7670_v26 = vld [vmem:[%s14233_s1 + $0x198] sm:$0xff] }
 0x8b6   :  { %v5565_v48 = vadd.f32 %v5516_v55, %v5469_v28  ;;  %v13283_v40 = vpack.c.bf16 %v14347_v63, %v14344_v4  ;;  %v5954_v4 = vsub.f32 %v13243_v53, %v5953_v51 }
 0x8b7   :  { %v14340_v62 = vand.u32 4294901760, %v13305_v27 }
 0x8b8   :  { %14539 = vst [vmem:[#allocation9_spill] sm:$0xff] %v13283_v40  ;;  %v5531_v6 = vpop.permute.xlu0 %5530  ;;  %v5710_v36 = vand.u32 4294901760, %v5565_v48 }
 0x8b9   :  { %v5430_v30 = vpop.permute.xlu1 %5429 }
 0x8ba   :  { %v13287_v16 = vpack.c.bf16 %v5710_v36, %v5707_v34  ;;  %v13289_v5 = vsub.f32 %v5565_v48, %v5710_v36  ;;  %v5471_v41 = vmul.f32 %v5430_v30, %v12934_v20  ;;  %v5568_v20 = vadd.f32 %v5531_v6, %v5472_v18 }
 0x8bb   :  { %v13343_v36 = vsub.f32 %v7668_v9, %v13328_v56  ;;  %v13345_v30 = vand.u32 4294901760, %v7669_v59 }
 0x8bc   :  { %14540 = vst [vmem:[#allocation10_spill] sm:$0xff] %v13287_v16  ;;  %v5445_v60 = vpop.permute.xlu0 %5444  ;;  %v14343_v44 = vand.u32 4294901760, %v13289_v5  ;;  %9970 = vmatprep.subr.bf16.mxu1 %v13287_v16  ;;  %10130 = vmatprep.subr.bf16.mxu0 %v13287_v16  ;;  %v5719_v12 = vand.u32 4294901760, %v5568_v20 }
 0x8bd   :  { %v5526_v45 = vpop.permute.xlu1 %5525  ;;  %9972 = vmatpush3.bf16.msra.mxu1 %v13287_v16  ;;  %10132 = vmatpush3.bf16.msra.mxu0 %v13287_v16  ;;  %v5474_v11 = vmul.f32 %v5445_v60, %v12950_v43 }
 0x8be   :  { %v5567_v42 = vadd.f32 %v5526_v45, %v5471_v41  ;;  %v13303_v38 = vpack.c.bf16 %v14343_v44, %v14342_v47  ;;  %v13330_v34 = vsub.f32 %v5568_v20, %v5719_v12  ;;  %v13354_v20 = vand.u32 4294901760, %v7670_v26 }
 0x8c0   :  { %14541 = vst [vmem:[#allocation13_spill] sm:$0xff] %v13303_v38  ;;  %v5716_v7 = vand.u32 4294901760, %v5567_v42  ;;  %v5541_v61 = vpop.permute.xlu0 %5540  ;;  %v14338_v60 = vand.u32 4294901760, %v13330_v34 }
 0x8c1   :  { %v5440_v13 = vpop.permute.xlu1 %5439  ;;  %v5570_v28 = vadd.f32 %v5541_v61, %v5474_v11  ;;  %v7671_v61 = vld [vmem:[%s14233_s1 + $0x1a0] sm:$0xff] }
 0x8c2   :  { %v13307_v35 = vpack.c.bf16 %v5716_v7, %v5713_v10  ;;  %v13309_v8 = vsub.f32 %v5567_v42, %v5716_v7  ;;  %v5473_v57 = vmul.f32 %v5440_v13, %v12948_v15 }
 0x8c3   :  { %v5725_v10 = vand.u32 4294901760, %v5570_v28 }
 0x8c4   :  { %14542 = vst [vmem:[#allocation15_spill] sm:$0xff] %v13307_v35  ;;  %v14341_v33 = vand.u32 4294901760, %v13309_v8  ;;  %9974 = vmatprep.subr.bf16.mxu1 %v13307_v35  ;;  %10134 = vmatprep.subr.bf16.mxu0 %v13307_v35  ;;  %v5455_v50 = vpop.permute.xlu0 %5454 }
 0x8c5   :  { %v5536_v24 = vpop.permute.xlu1 %5535  ;;  %9976 = vmatpush3.bf16.msra.mxu1 %v13307_v35  ;;  %10136 = vmatpush3.bf16.msra.mxu0 %v13307_v35  ;;  %v5476_v7 = vmul.f32 %v5455_v50, %v12964_v14  ;;  %v7672_v14 = vld [vmem:[%s14233_s1 + $0x1a8] sm:$0xff]  ;;  %v13373_v9 = vsub.f32 %v5570_v28, %v5725_v10  ;;  %v5933_v28 = vsub.f32 %v13231_v29, %v5932_v22  ;;  %v7674_v22 = vld [vmem:[%s14233_s1 + $0x1b8] sm:$0xff]  ;;  %v14561_v35 = vand.u32 4294901760, %v13289_v5 }
 0x8c6   :  { %v5569_v39 = vadd.f32 %v5536_v24, %v5473_v57  ;;  %v13326_v15 = vpack.c.bf16 %v14341_v33, %v14340_v62  ;;  %v13368_v57 = vsub.f32 %v7669_v59, %v13345_v30  ;;  %v7675_v33 = vld [vmem:[%s14233_s1 + $0x1c0] sm:$0xff] }
 0x8c7   :  { %v5982_v16 = vsub.f32 %v13289_v5, %v14561_v35 }
 0x8c8   :  { %14543 = vst [vmem:[#allocation23_spill] sm:$0xff] %v13326_v15  ;;  %v5722_v55 = vand.u32 4294901760, %v5569_v39  ;;  %v5551_v18 = vpop.permute.xlu0 %5550  ;;  %v14555_v15 = vand.u32 4294901760, %v13265_v49 }
 0x8c9   :  { %v5450_v48 = vpop.permute.xlu1 %5449  ;;  %v5572_v24 = vadd.f32 %v5551_v18, %v5476_v7 }
 0x8ca   :  { %v13335_v43 = vpack.c.bf16 %v5722_v55, %v5719_v12  ;;  %v13337_v6 = vsub.f32 %v5569_v39, %v5722_v55  ;;  %v5475_v45 = vmul.f32 %v5450_v48, %v12962_v19  ;;  %v14337_v12 = vand.u32 4294901760, %v13343_v36  ;;  %v7673_v39 = vld [vmem:[%s14233_s1 + $0x1b0] sm:$0xff] }
 0x8cb   :  { %v13379_v55 = vsub.f32 %v7670_v26, %v13354_v20  ;;  %v13381_v48 = vand.u32 4294901760, %v7671_v61  ;;  %v14348_v26 = vand.u32 4294901760, %v13368_v57  ;;  %v13398_v7 = vand.u32 4294901760, %v7673_v39 }
 0x8cc   :  { %14544 = vst [vmem:[#allocation24_spill] sm:$0xff] %v13335_v43  ;;  %v14339_v41 = vand.u32 4294901760, %v13337_v6  ;;  %9978 = vmatprep.subr.bf16.mxu1 %v13335_v43  ;;  %10138 = vmatprep.subr.bf16.mxu0 %v13335_v43  ;;  %v13395_v18 = vsub.f32 %v13343_v36, %v14337_v12  ;;  %v5731_v23 = vand.u32 4294901760, %v5572_v24  ;;  %v5961_v38 = vsub.f32 %v13265_v49, %v14555_v15 }
 0x8cd   :  { %v5546_v42 = vpop.permute.xlu1 %5545  ;;  %9980 = vmatpush3.bf16.msra.mxu1 %v13335_v43  ;;  %10140 = vmatpush3.bf16.msra.mxu0 %v13335_v43 }
 0x8ce   :  { %v5571_v13 = vadd.f32 %v5546_v42, %v5475_v45  ;;  %v13364_v19 = vpack.c.bf16 %v14339_v41, %v14338_v60  ;;  %v13387_v42 = vand.u32 4294901760, %v7672_v14  ;;  %v5940_v60 = vsub.f32 %v13226_v25, %v5939_v54 }
 0x8cf   :  { %v14351_v41 = vand.u32 4294901760, %v13379_v55  ;;  %v5934_v54 = vand.u32 4294901760, %v5933_v28  ;;  %v5783_v44 = vand.u32 4294901760, %v13395_v18  ;;  %v7676_v28 = vld [vmem:[%s14233_s1 + $0x1c8] sm:$0xff]  ;;  %v5962_v35 = vand.u32 4294901760, %v5961_v38 }
 0x8d0   :  { %14545 = vst [vmem:[#allocation25_spill] sm:$0xff] %v13364_v19  ;;  %v5728_v11 = vand.u32 4294901760, %v5571_v13  ;;  %v13418_v62 = vsub.f32 %v7672_v14, %v13387_v42  ;;  %v13435_v14 = vsub.f32 %v5572_v24, %v5731_v23  ;;  %v5941_v18 = vand.u32 4294901760, %v5940_v60  ;;  %v7677_v60 = vld [vmem:[%s14233_s1 + $0x1d0] sm:$0xff] }
 0x8d1   :  { %v5460_v50 = vpop.permute.xlu1 %5459 }
 0x8d2   :  { %v13383_v59 = vpack.c.bf16 %v5728_v11, %v5725_v10  ;;  %v13385_v45 = vsub.f32 %v5571_v13, %v5728_v11  ;;  %v14345_v10 = vand.u32 4294901760, %v13373_v9  ;;  %v5477_v11 = vmul.f32 %v5460_v50, %v12976_v52  ;;  %14547 = vst [vmem:[#allocation11_spill] sm:$0xff] %v13418_v62 }
 0x8d3   :  { %v13415_v52 = vsub.f32 %v7671_v61, %v13381_v48  ;;  %v13431_v61 = vsub.f32 %v7673_v39, %v13398_v7  ;;  %v5802_v39 = vsub.f32 %v13379_v55, %v14351_v41  ;;  %v9989_v19 = vpack.c.bf16 %v5941_v18, %v5934_v54 }
 0x8d4   :  { %14546 = vst [vmem:[#allocation16_spill] sm:$0xff] %v13383_v59  ;;  %v14346_v13 = vand.u32 4294901760, %v13385_v45  ;;  %9982 = vmatprep.subr.bf16.mxu1 %v13383_v59  ;;  %10142 = vmatprep.subr.bf16.mxu0 %v13383_v59  ;;  %v14556_v40 = vand.u32 4294901760, %v13418_v62 }
 0x8d5   :  { %v5556_v12 = vpop.permute.xlu1 %5555  ;;  %9984 = vmatpush3.bf16.msra.mxu1 %v13383_v59  ;;  %10144 = vmatpush3.bf16.msra.mxu0 %v13383_v59  ;;  %14549 = vst [vmem:[#allocation8_spill] sm:$0xff] %v13431_v61  ;;  %v14553_v41 = vand.u32 4294901760, %v13415_v52 }
 0x8d6   :  { %v5573_v50 = vadd.f32 %v5556_v12, %v5477_v11  ;;  %v13427_v47 = vpack.c.bf16 %v14346_v13, %v14345_v10  ;;  %v13433_v12 = vand.u32 4294901760, %v7674_v22  ;;  %v5792_v10 = vsub.f32 %v13368_v57, %v14348_v26 }
 0x8d7   :  { %v13450_v13 = vand.u32 4294901760, %v7675_v33  ;;  %v5947_v26 = vsub.f32 %v13233_v32, %v5946_v37  ;;  %v5955_v37 = vand.u32 4294901760, %v5954_v4  ;;  %v13487_v4 = vand.u32 4294901760, %v7677_v60 }
 0x8d8   :  { %14548 = vst [vmem:[#allocation17_spill] sm:$0xff] %v13427_v47  ;;  %v5734_v11 = vand.u32 4294901760, %v5573_v50  ;;  %v13465_v24 = vsub.f32 %v7674_v22, %v13433_v12  ;;  %v14552_v47 = vand.u32 4294901760, %v13269_v58  ;;  %v7678_v22 = vld [vmem:[%s14233_s1 + $0x1d8] sm:$0xff]  ;;  %v5793_v18 = vand.u32 4294901760, %v5792_v10  ;;  %v7679_v10 = vld [vmem:[%s14233_s1 + $0x1e0] sm:$0xff] }
 0x8d9   :  { %v5822_v0 = vsub.f32 %v13418_v62, %v14556_v40  ;;  %v13508_v15 = vand.u32 4294901760, %v7678_v22  ;;  %v14562_v62 = vand.u32 4294901760, %v13431_v61 }
 0x8da   :  { %v13452_v63 = vpack.c.bf16 %v5734_v11, %v5731_v23  ;;  %v13454_v51 = vsub.f32 %v5573_v50, %v5734_v11  ;;  %14551 = vst [vmem:[#allocation22_spill] sm:$0xff] %v13465_v24  ;;  %v13467_v23 = vand.u32 4294901760, %v7676_v28  ;;  %v5968_v54 = vsub.f32 %v13269_v58, %v14552_v47 }
 0x8db   :  { %v5812_v11 = vsub.f32 %v13415_v52, %v14553_v41  ;;  %v13485_v50 = vsub.f32 %v7675_v33, %v13450_v13  ;;  %v5948_v47 = vand.u32 4294901760, %v5947_v26  ;;  %v14557_v41 = vand.u32 4294901760, %v13435_v14 }
 0x8dc   :  { %14550 = vst [vmem:[#allocation20_spill] sm:$0xff] %v13452_v63  ;;  %9986 = vmatprep.subr.bf16.mxu1 %v13452_v63  ;;  %10146 = vmatprep.subr.bf16.mxu0 %v13452_v63  ;;  %v14558_v33 = vand.u32 4294901760, %v13454_v51  ;;  %v14372_v26 = vand.u32 4294901760, %v13465_v24  ;;  %v13506_v59 = vsub.f32 %v7676_v28, %v13467_v23  ;;  %v5969_v43 = vand.u32 4294901760, %v5968_v54 }
 0x8dd   :  { %9988 = vmatpush3.bf16.msra.mxu1 %v13452_v63  ;;  %10148 = vmatpush3.bf16.msra.mxu0 %v13452_v63  ;;  %14554 = vst [vmem:[#allocation12_spill] sm:$0xff] %v13485_v50  ;;  %v5803_v63 = vand.u32 4294901760, %v5802_v39  ;;  %v9993_v40 = vpack.c.bf16 %v5955_v37, %v5948_v47  ;;  %v7680_v39 = vld [vmem:[%s14233_s1 + $0x1e8] sm:$0xff]  ;;  %v5813_v28 = vand.u32 4294901760, %v5812_v11  ;;  %v13522_v37 = vsub.f32 %v7677_v60, %v13487_v4 }
 0x8de   :  { %9990 = vmatprep.subr.bf16.mxu1 %v9989_v19  ;;  %v13502_v1 = vpack.c.bf16 %v14558_v33, %v14557_v41  ;;  %14560 = vst [vmem:[#allocation7_spill] sm:$0xff] %v13506_v59  ;;  %v5832_v41 = vsub.f32 %v13431_v61, %v14562_v62  ;;  %v13524_v54 = vand.u32 4294901760, %v7679_v10  ;;  %v5823_v47 = vand.u32 4294901760, %v5822_v0 }
 0x8df   :  { %14563 = vst [vmem:[#allocation19_spill] sm:$0xff] %v13522_v37  ;;  %v14564_v62 = vand.u32 4294901760, %v13285_v31  ;;  %v5842_v60 = vsub.f32 %v13465_v24, %v14372_v26  ;;  %v13540_v0 = vand.u32 4294901760, %v7680_v39  ;;  %v9997_v38 = vpack.c.bf16 %v5969_v43, %v5962_v35 }
 0x8e0   :  { %14559 = vst [vmem:[#allocation14_spill] sm:$0xff] %v13502_v1  ;;  %9270 = vmatmul.mubr.f32.vlgmr.msra.gmra.mrb[16].mxu1 %v5783_v44  ;;  %9550 = vmatmul.mubr.f32.vlgmr.msra.gmra.mrb[32].mxu0 %v13328_v56  ;;  %v5833_v44 = vand.u32 4294901760, %v5832_v41  ;;  %v14565_v1 = vand.u32 4294901760, %v13309_v8  ;;  %v14566_v26 = vand.u32 4294901760, %v13485_v50  ;;  %v13551_v24 = vsub.f32 %v7679_v10, %v13524_v54 }
 0x8e1   :  { %9992 = vmatpush3.bf16.msra.mxu1 %v9989_v19  ;;  %9272 = vmatprep.mubr.f32.mxu1 %v5793_v18  ;;  %v5975_v33 = vsub.f32 %v13285_v31, %v14564_v62  ;;  %v7681_v19 = vld [vmem:[%s14233_s1 + $0x1f0] sm:$0xff]  ;;  %v13538_v18 = vsub.f32 %v7678_v22, %v13508_v15  ;;  %v5983_v62 = vand.u32 4294901760, %v5982_v16  ;;  %v7682_v16 = vld [vmem:[%s14233_s1 + $0x1f8] sm:$0xff]  ;;  %v14567_v43 = vand.u32 4294901760, %v13305_v27 }
 0x8e2   :  { %9994 = vmatprep.subr.bf16.mxu1 %v9993_v40  ;;  %9552 = vmatprep.mubr.f32.mxu0 %v13345_v30  ;;  %v5996_v61 = vsub.f32 %v13309_v8, %v14565_v1  ;;  %v5852_v11 = vsub.f32 %v13485_v50, %v14566_v26  ;;  %v5843_v26 = vand.u32 4294901760, %v5842_v60  ;;  %v14568_v41 = vand.u32 4294901760, %v13506_v59 }
 0x8e3   :  { %v5976_v1 = vand.u32 4294901760, %v5975_v33  ;;  %v13567_v35 = vsub.f32 %v7680_v39, %v13540_v0  ;;  %v14569_v33 = vand.u32 4294901760, %v13337_v6  ;;  %v14573_v39 = vand.u32 4294901760, %v13385_v45 }
 0x8e4   :  { %9273 = vmatmul.mubr.f32.gmra.mrb[18].mxu1 %v5803_v63  ;;  %9553 = vmatmul.mubr.f32.gmra.mrb[34].mxu0 %v13354_v20  ;;  %v13553_v63 = vand.u32 4294901760, %v7681_v19  ;;  %v5862_v10 = vsub.f32 %v13506_v59, %v14568_v41  ;;  %v5997_v50 = vand.u32 4294901760, %v5996_v61  ;;  %v5853_v60 = vand.u32 4294901760, %v5852_v11 }
 0x8e5   :  { %9996 = vmatpush3.bf16.msra.mxu1 %v9993_v40  ;;  %9275 = vmatprep.mubr.f32.mxu1 %v5813_v28  ;;  %v5989_v40 = vsub.f32 %v13305_v27, %v14567_v43  ;;  %v10001_v22 = vpack.c.bf16 %v5983_v62, %v5976_v1  ;;  %v6010_v21 = vsub.f32 %v13337_v6, %v14569_v33  ;;  %v13572_v43 = vand.u32 4294901760, %v7682_v16 }
 0x8e6   :  { %9998 = vmatprep.subr.bf16.mxu1 %v9997_v38  ;;  %9555 = vmatprep.mubr.f32.mxu0 %v13381_v48  ;;  %v14570_v41 = vand.u32 4294901760, %v13522_v37  ;;  %v14571_v62 = vand.u32 4294901760, %v13330_v34  ;;  %v5863_v33 = vand.u32 4294901760, %v5862_v10  ;;  %v14383_v11 = vand.u32 4294901760, %v13567_v35 }
 0x8e7   :  { %v5990_v61 = vand.u32 4294901760, %v5989_v40  ;;  %v13593_v40 = vsub.f32 %v7682_v16, %v13572_v43  ;;  %v14574_v10 = vand.u32 4294901760, %v13551_v24 }
 0x8e8   :  { %9276 = vmatmul.mubr.f32.gmra.mrb[20].mxu1 %v5823_v47  ;;  %9556 = vmatmul.mubr.f32.gmra.mrb[36].mxu0 %v13387_v42  ;;  %v5872_v28 = vsub.f32 %v13522_v37, %v14570_v41  ;;  %v13580_v47 = vsub.f32 %v7681_v19, %v13553_v63  ;;  %v6003_v1 = vsub.f32 %v13330_v34, %v14571_v62  ;;  %v6011_v37 = vand.u32 4294901760, %v6010_v21 }
 0x8e9   :  { %10000 = vmatpush3.bf16.msra.mxu1 %v9997_v38  ;;  %9278 = vmatprep.mubr.f32.mxu1 %v5833_v44  ;;  %v14572_v38 = vand.u32 4294901760, %v13538_v18  ;;  %v10005_v41 = vpack.c.bf16 %v5997_v50, %v5990_v61  ;;  %v6024_v19 = vsub.f32 %v13385_v45, %v14573_v39  ;;  %v5892_v59 = vsub.f32 %v13551_v24, %v14574_v10 }
 0x8ea   :  { %10002 = vmatprep.subr.bf16.mxu1 %v10001_v22  ;;  %v5873_v62 = vand.u32 4294901760, %v5872_v28  ;;  %v14575_v21 = vand.u32 4294901760, %v13373_v9  ;;  %v5902_v16 = vsub.f32 %v13567_v35, %v14383_v11  ;;  %v5921_v10 = vand.u32 4294901760, %v13593_v40 }
 0x8eb   :  { %v5882_v44 = vsub.f32 %v13538_v18, %v14572_v38  ;;  %v5911_v38 = vand.u32 4294901760, %v13580_v47  ;;  %v6025_v28 = vand.u32 4294901760, %v6024_v19  ;;  %v14577_v11 = vand.u32 4294901760, %v13435_v14 }
 0x8ec   :  { %9279 = vmatmul.mubr.f32.gmra.mrb[22].mxu1 %v5843_v26  ;;  %v6004_v26 = vand.u32 4294901760, %v6003_v1  ;;  %v6017_v50 = vsub.f32 %v13373_v9, %v14575_v21  ;;  %v5893_v1 = vand.u32 4294901760, %v5892_v59  ;;  %v5903_v19 = vand.u32 4294901760, %v5902_v16 }
 0x8ed   :  { %10004 = vmatpush3.bf16.msra.mxu1 %v10001_v22  ;;  %9281 = vmatprep.mubr.f32.mxu1 %v5853_v60  ;;  %v5883_v61 = vand.u32 4294901760, %v5882_v44  ;;  %v14576_v60 = vand.u32 4294901760, %v13454_v51  ;;  %v5912_v44 = vsub.f32 %v13580_v47, %v5911_v38  ;;  %v10029_v16 = vpack.c.bf16 %v13269_v58, %v13265_v49  ;;  %v14578_v58 = vld [vmem:[#allocation6_spill] sm:$0xff] }
 0x8ee   :  { %10006 = vmatprep.subr.bf16.mxu1 %v10005_v41  ;;  %v10009_v22 = vpack.c.bf16 %v6011_v37, %v6004_v26  ;;  %v6018_v21 = vand.u32 4294901760, %v6017_v50  ;;  %v6031_v37 = vsub.f32 %v13435_v14, %v14577_v11  ;;  %v10021_v11 = vpack.c.bf16 %v13226_v25, %v13231_v29 }
 0x8ef   :  { %v6038_v39 = vsub.f32 %v13454_v51, %v14576_v60  ;;  %v5913_v59 = vand.u32 4294901760, %v5912_v44  ;;  %v10033_v25 = vpack.c.bf16 %v13289_v5, %v13285_v31  ;;  %v10037_v29 = vpack.c.bf16 %v13309_v8, %v13305_v27  ;;  %v14579_v31 = vld [vmem:[#allocation11_spill] sm:$0xff]  ;;  %v14580_v5 = vld [vmem:[#allocation8_spill] sm:$0xff]  ;;  %v14581_v27 = vld [vmem:[#allocation10_spill] sm:$0xff] }
 0x8f0   :  { %9282 = vmatmul.mubr.f32.gmra.mrb[24].mxu1 %v5863_v33  ;;  %v10013_v33 = vpack.c.bf16 %v6025_v28, %v6018_v21  ;;  %v10049_v49 = vpack.c.bf16 %v13454_v51, %v13435_v14  ;;  %v14582_v8 = vld [vmem:[#allocation22_spill] sm:$0xff]  ;;  %v14587_v14 = vld [vmem:[#allocation24_spill] sm:$0xff]  ;;  %v14590_v28 = vand.u32 4294901760, %v13182_v17  ;;  %v14593_v44 = vand.u32 4294901760, %v13368_v57 }
 0x8f1   :  { %10008 = vmatpush3.bf16.msra.mxu1 %v10005_v41  ;;  %9284 = vmatprep.mubr.f32.mxu1 %v5873_v62  ;;  %v6039_v26 = vand.u32 4294901760, %v6038_v39  ;;  %v5922_v41 = vsub.f32 %v13593_v40, %v5921_v10  ;;  %v6032_v62 = vand.u32 4294901760, %v6031_v37  ;;  %v14588_v51 = vld [vmem:[#allocation16_spill] sm:$0xff]  ;;  %v14591_v39 = vld [vmem:[#allocation21_spill] sm:$0xff]  ;;  %v14594_v21 = vld [vmem:[#allocation18_spill] sm:$0xff]  ;;  %v14595_v37 = vand.u32 4294901760, %v13379_v55 }
 0x8f2   :  { %10010 = vmatprep.subr.bf16.mxu1 %v10009_v22 }
 0x8f3   :  { %v10017_v60 = vpack.c.bf16 %v6039_v26, %v6032_v62  ;;  %v5923_v50 = vand.u32 4294901760, %v5922_v41  ;;  %v14603_v26 = vld [vmem:[#allocation23_spill] sm:$0xff]  ;;  %v14606_v62 = vld [vmem:[#allocation25_spill] sm:$0xff] }
 0x8f4   :  { %9285 = vmatmul.mubr.f32.gmra.mrb[26].mxu1 %v5883_v61  ;;  %v10025_v61 = vpack.c.bf16 %v13243_v53, %v13233_v32  ;;  %v10041_v32 = vpack.c.bf16 %v13337_v6, %v13330_v34  ;;  %v10045_v53 = vpack.c.bf16 %v13385_v45, %v13373_v9  ;;  %v14583_v34 = vld [vmem:[#allocation12_spill] sm:$0xff]  ;;  %v14584_v6 = vld [vmem:[#allocation15_spill] sm:$0xff] }
 0x8f5   :  { %10012 = vmatpush3.bf16.msra.mxu1 %v10009_v22  ;;  %9287 = vmatprep.mubr.f32.mxu1 %v5893_v1  ;;  %v14585_v9 = vld [vmem:[#allocation7_spill] sm:$0xff]  ;;  %v14589_v22 = vld [vmem:[#allocation20_spill] sm:$0xff]  ;;  %v14592_v1 = vand.u32 4294901760, %v13343_v36 }
 0x8f6   :  { %10014 = vmatprep.subr.bf16.mxu1 %v10013_v33  ;;  %v14586_v45 = vld [vmem:[#allocation19_spill] sm:$0xff]  ;;  %v14604_v41 = vand.u32 4294901760, %v14585_v9 }
 0x8f8   :  { %9288 = vmatmul.mubr.f32.gmra.mrb[28].mxu1 %v5903_v19  ;;  %v14600_v19 = vld [vmem:[#allocation13_spill] sm:$0xff] }
 0x8f9   :  { %10016 = vmatpush3.bf16.msra.mxu1 %v10013_v33  ;;  %9290 = vmatprep.mubr.f32.mxu1 %v5913_v59  ;;  %v14597_v33 = vld [vmem:[#allocation9_spill] sm:$0xff]  ;;  %v14605_v59 = vand.u32 4294901760, %v14586_v45 }
 0x8fa   :  { %10018 = vmatprep.subr.bf16.mxu1 %v10017_v60 }
 0x8fc   :  { %9291 = vmatmul.mubr.f32.gmra.mrb[30].mxu1 %v5923_v50  ;;  %v14608_v50 = vand.u32 4294901760, %v13551_v24 }
 0x8fd   :  { %10020 = vmatpush3.bf16.msra.mxu1 %v10017_v60  ;;  %9325 = vmatprep.mubr.f32.mxu1 %v13176_v2  ;;  %v14607_v60 = vand.u32 4294901760, %v13538_v18 }
 0x8fe   :  { %10022 = vmatprep.subr.bf16.mxu1 %v10021_v11 }
 0x900   :  { %9326 = vmatmul.mubr.f32.vlgmr.msra.gmra.mrb[16].mxu1 %v13328_v56 }
 0x901   :  { %10024 = vmatpush3.bf16.msra.mxu1 %v10021_v11  ;;  %9328 = vmatprep.mubr.f32.mxu1 %v13345_v30  ;;  %v14609_v11 = vld [vmem:[#allocation17_spill] sm:$0xff] }
 0x902   :  { %10026 = vmatprep.subr.bf16.mxu1 %v10025_v61 }
 0x904   :  { %9329 = vmatmul.mubr.f32.gmra.mrb[18].mxu1 %v13354_v20 }
 0x905   :  { %10028 = vmatpush3.bf16.msra.mxu1 %v10025_v61  ;;  %9331 = vmatprep.mubr.f32.mxu1 %v13381_v48  ;;  %v14610_v61 = vand.u32 4294901760, %v13567_v35 }
 0x906   :  { %10030 = vmatprep.subr.bf16.mxu1 %v10029_v16 }
 0x908   :  { %9332 = vmatmul.mubr.f32.gmra.mrb[20].mxu1 %v13387_v42 }
 0x909   :  { %10032 = vmatpush3.bf16.msra.mxu1 %v10029_v16  ;;  %9334 = vmatprep.mubr.f32.mxu1 %v13398_v7  ;;  %v14611_v16 = vld [vmem:[#allocation14_spill] sm:$0xff] }
 0x90a   :  { %10034 = vmatprep.subr.bf16.mxu1 %v10033_v25 }
 0x90c   :  { %9335 = vmatmul.mubr.f32.gmra.mrb[22].mxu1 %v13433_v12 }
 0x90d   :  { %10036 = vmatpush3.bf16.msra.mxu1 %v10033_v25  ;;  %9337 = vmatprep.mubr.f32.mxu1 %v13450_v13 }
 0x90e   :  { %10038 = vmatprep.subr.bf16.mxu1 %v10037_v29 }
 0x910   :  { %9338 = vmatmul.mubr.f32.gmra.mrb[24].mxu1 %v13467_v23 }
 0x911   :  { %10040 = vmatpush3.bf16.msra.mxu1 %v10037_v29  ;;  %9340 = vmatprep.mubr.f32.mxu1 %v13487_v4 }
 0x912   :  { %10042 = vmatprep.subr.bf16.mxu1 %v10041_v32 }
 0x914   :  { %9341 = vmatmul.mubr.f32.gmra.mrb[26].mxu1 %v13508_v15 }
 0x915   :  { %10044 = vmatpush3.bf16.msra.mxu1 %v10041_v32  ;;  %9343 = vmatprep.mubr.f32.mxu1 %v13524_v54 }
 0x916   :  { %10046 = vmatprep.subr.bf16.mxu1 %v10045_v53 }
 0x918   :  { %9344 = vmatmul.mubr.f32.gmra.mrb[28].mxu1 %v13540_v0 }
 0x919   :  { %10048 = vmatpush3.bf16.msra.mxu1 %v10045_v53  ;;  %9346 = vmatprep.mubr.f32.mxu1 %v13553_v63 }
 0x91a   :  { %10050 = vmatprep.subr.bf16.mxu1 %v10049_v49 }
 0x91c   :  { %9347 = vmatmul.mubr.f32.gmra.mrb[30].mxu1 %v13572_v43 }
 0x91d   :  { %10052 = vmatpush3.bf16.msra.mxu1 %v10049_v49  ;;  %9381 = vmatprep.mubr.f32.mxu1 %v13182_v17  ;;  %v14596_v17 = vand.u32 4294901760, %v13415_v52 }
 0x91e   :  { %10054 = vmatprep.subr.bf16.mxu1 %v13229_v46 }
 0x920   :  { %9382 = vmatmul.mubr.f32.vlgmr.msra.gmra.mrb[16].mxu1 %v13343_v36  ;;  %v14598_v36 = vand.u32 4294901760, %v14579_v31 }
 0x921   :  { %10056 = vmatpush3.bf16.msra.mxu1 %v13229_v46  ;;  %9384 = vmatprep.mubr.f32.mxu1 %v13368_v57  ;;  %v14599_v57 = vand.u32 4294901760, %v14580_v5 }
 0x922   :  { %10058 = vmatprep.subr.bf16.mxu1 %v13241_v3 }
 0x924   :  { %9385 = vmatmul.mubr.f32.gmra.mrb[18].mxu1 %v13379_v55  ;;  %v14601_v55 = vand.u32 4294901760, %v14582_v8 }
 0x925   :  { %10060 = vmatpush3.bf16.msra.mxu1 %v13241_v3  ;;  %9387 = vmatprep.mubr.f32.mxu1 %v13415_v52  ;;  %v14602_v52 = vand.u32 4294901760, %v14583_v34 }
 0x926   :  { %10062 = vmatprep.subr.bf16.mxu1 %v14578_v58 }
 0x928   :  { %9388 = vmatmul.mubr.f32.gmra.mrb[20].mxu1 %v14579_v31 }
 0x929   :  { %10064 = vmatpush3.bf16.msra.mxu1 %v14578_v58  ;;  %9390 = vmatprep.mubr.f32.mxu1 %v14580_v5 }
 0x92a   :  { %10066 = vmatprep.subr.bf16.mxu1 %v14581_v27 }
 0x92c   :  { %9391 = vmatmul.mubr.f32.gmra.mrb[22].mxu1 %v14582_v8 }
 0x92d   :  { %10068 = vmatpush3.bf16.msra.mxu1 %v14581_v27  ;;  %9393 = vmatprep.mubr.f32.mxu1 %v14583_v34 }
 0x92e   :  { %10070 = vmatprep.subr.bf16.mxu1 %v14584_v6 }
 0x930   :  { %9394 = vmatmul.mubr.f32.gmra.mrb[24].mxu1 %v14585_v9 }
 0x931   :  { %10072 = vmatpush3.bf16.msra.mxu1 %v14584_v6  ;;  %9396 = vmatprep.mubr.f32.mxu1 %v14586_v45 }
 0x932   :  { %10074 = vmatprep.subr.bf16.mxu1 %v14587_v14 }
 0x934   :  { %9397 = vmatmul.mubr.f32.gmra.mrb[26].mxu1 %v13538_v18 }
 0x935   :  { %10076 = vmatpush3.bf16.msra.mxu1 %v14587_v14  ;;  %9399 = vmatprep.mubr.f32.mxu1 %v13551_v24 }
 0x936   :  { %10078 = vmatprep.subr.bf16.mxu1 %v14588_v51 }
 0x938   :  { %9400 = vmatmul.mubr.f32.gmra.mrb[28].mxu1 %v13567_v35 }
 0x939   :  { %10080 = vmatpush3.bf16.msra.mxu1 %v14588_v51  ;;  %9402 = vmatprep.mubr.f32.mxu1 %v13580_v47 }
 0x93a   :  { %10082 = vmatprep.subr.bf16.mxu1 %v14589_v22 }
 0x93c   :  { %9403 = vmatmul.mubr.f32.gmra.mrb[30].mxu1 %v13593_v40 }
 0x93d   :  { %10084 = vmatpush3.bf16.msra.mxu1 %v14589_v22  ;;  %9437 = vmatprep.mubr.f32.mxu1 %v14590_v28 }
 0x93e   :  { %10086 = vmatprep.subr.bf16.mxu1 %v14591_v39 }
 0x940   :  { %9438 = vmatmul.mubr.f32.vlgmr.msra.gmra.mrb[16].mxu1 %v14592_v1 }
 0x941   :  { %10088 = vmatpush3.bf16.msra.mxu1 %v14591_v39  ;;  %9440 = vmatprep.mubr.f32.mxu1 %v14593_v44 }
 0x942   :  { %10090 = vmatprep.subr.bf16.mxu1 %v14594_v21 }
 0x944   :  { %9441 = vmatmul.mubr.f32.gmra.mrb[18].mxu1 %v14595_v37 }
 0x945   :  { %10092 = vmatpush3.bf16.msra.mxu1 %v14594_v21  ;;  %9443 = vmatprep.mubr.f32.mxu1 %v14596_v17 }
 0x946   :  { %10094 = vmatprep.subr.bf16.mxu1 %v14597_v33 }
 0x948   :  { %9444 = vmatmul.mubr.f32.gmra.mrb[20].mxu1 %v14598_v36 }
 0x949   :  { %10096 = vmatpush3.bf16.msra.mxu1 %v14597_v33  ;;  %9446 = vmatprep.mubr.f32.mxu1 %v14599_v57 }
 0x94a   :  { %10098 = vmatprep.subr.bf16.mxu1 %v14600_v19 }
 0x94c   :  { %9447 = vmatmul.mubr.f32.gmra.mrb[22].mxu1 %v14601_v55 }
 0x94d   :  { %10100 = vmatpush3.bf16.msra.mxu1 %v14600_v19  ;;  %9449 = vmatprep.mubr.f32.mxu1 %v14602_v52 }
 0x94e   :  { %10102 = vmatprep.subr.bf16.mxu1 %v14603_v26 }
 0x950   :  { %9450 = vmatmul.mubr.f32.gmra.mrb[24].mxu1 %v14604_v41 }
 0x951   :  { %10104 = vmatpush3.bf16.msra.mxu1 %v14603_v26  ;;  %9452 = vmatprep.mubr.f32.mxu1 %v14605_v59 }
 0x952   :  { %10106 = vmatprep.subr.bf16.mxu1 %v14606_v62 }
 0x954   :  { %9453 = vmatmul.mubr.f32.gmra.mrb[26].mxu1 %v14607_v60 }
 0x955   :  { %10108 = vmatpush3.bf16.msra.mxu1 %v14606_v62  ;;  %9455 = vmatprep.mubr.f32.mxu1 %v14608_v50 }
 0x956   :  { %10110 = vmatprep.subr.bf16.mxu1 %v14609_v11 }
 0x958   :  { %9456 = vmatmul.mubr.f32.gmra.mrb[28].mxu1 %v14610_v61 }
 0x959   :  { %10112 = vmatpush3.bf16.msra.mxu1 %v14609_v11  ;;  %9458 = vmatprep.mubr.f32.mxu1 %v5911_v38 }
 0x95a   :  { %10114 = vmatprep.subr.bf16.mxu1 %v14611_v16 }
 0x95c   :  { %9459 = vmatmul.mubr.f32.gmra.mrb[30].mxu1 %v5921_v10 }
 0x95d   :  { %10116 = vmatpush3.bf16.msra.mxu1 %v14611_v16  ;;  %9493 = vmatprep.mubr.f32.mxu1 %v13176_v2 }
 0x95e   :  { %10149 = vmatprep.subr.bf16.mxu1 %v13229_v46 }
 0x960   :  { %9494 = vmatmul.mubr.f32.vlgmr.msra.gmra.mrb[16].mxu1 %v13328_v56 }
 0x961   :  { %10157 = vmatpush3.bf16.msra.mxu1 %v13229_v46  ;;  %9496 = vmatprep.mubr.f32.mxu1 %v13345_v30 }
 0x962   :  { %10150 = vmatprep.subr.bf16.mxu1 %v13241_v3 }
 0x964   :  { %9497 = vmatmul.mubr.f32.gmra.mrb[18].mxu1 %v13354_v20 }
 0x965   :  { %10158 = vmatpush3.bf16.msra.mxu1 %v13241_v3  ;;  %9499 = vmatprep.mubr.f32.mxu1 %v13381_v48  ;;  %v5616_v48 = vpop.permute.xlu1 %5615 }
 0x966   :  { %10151 = vmatprep.subr.bf16.mxu1 %v14578_v58 }
 0x968   :  { %9500 = vmatmul.mubr.f32.gmra.mrb[20].mxu1 %v13387_v42  ;;  %v5611_v42 = vpop.permute.xlu0 %5610 }
 0x969   :  { %10159 = vmatpush3.bf16.msra.mxu1 %v14578_v58  ;;  %9502 = vmatprep.mubr.f32.mxu1 %v13398_v7  ;;  %v5626_v24 = vpop.permute.xlu1 %5625 }
 0x96a   :  { %10152 = vmatprep.subr.bf16.mxu1 %v14581_v27 }
 0x96c   :  { %9503 = vmatmul.mubr.f32.gmra.mrb[22].mxu1 %v13433_v12 }
 0x96d   :  { %10160 = vmatpush3.bf16.msra.mxu1 %v14581_v27  ;;  %9505 = vmatprep.mubr.f32.mxu1 %v13450_v13  ;;  %v5636_v25 = vpop.permute.xlu1 %5635 }
 0x96e   :  { %10153 = vmatprep.subr.bf16.mxu1 %v14584_v6 }
 0x970   :  { %9506 = vmatmul.mubr.f32.gmra.mrb[24].mxu1 %v13467_v23 }
 0x971   :  { %10161 = vmatpush3.bf16.msra.mxu1 %v14584_v6  ;;  %9508 = vmatprep.mubr.f32.mxu1 %v13487_v4  ;;  %v5646_v52 = vpop.permute.xlu1 %5645 }
 0x972   :  { %10154 = vmatprep.subr.bf16.mxu1 %v14587_v14 }
 0x974   :  { %9509 = vmatmul.mubr.f32.gmra.mrb[26].mxu1 %v13508_v15 }
 0x975   :  { %10162 = vmatpush3.bf16.msra.mxu1 %v14587_v14  ;;  %9511 = vmatprep.mubr.f32.mxu1 %v13524_v54  ;;  %v5656_v11 = vpop.permute.xlu1 %5655 }
 0x976   :  { %10155 = vmatprep.subr.bf16.mxu1 %v14588_v51 }
 0x978   :  { %9512 = vmatmul.mubr.f32.gmra.mrb[28].mxu1 %v13540_v0 }
 0x979   :  { %10163 = vmatpush3.bf16.msra.mxu1 %v14588_v51  ;;  %9514 = vmatprep.mubr.f32.mxu1 %v13553_v63 }
 0x97a   :  { %10156 = vmatprep.subr.bf16.mxu1 %v14589_v22 }
 0x97c   :  { %9515 = vmatmul.mubr.f32.gmra.mrb[30].mxu1 %v13572_v43 }
 0x97d   :  { %10164 = vmatpush3.bf16.msra.mxu1 %v14589_v22  ;;  %9558 = vmatprep.mubr.f32.mxu1 %v13398_v7 }
 0x980   :  { %9559 = vmatmul.mubr.f32.vlgmr.msra.gmra.mrb[22].mxu1 %v13433_v12 }
 0x981   :  { %9561 = vmatprep.mubr.f32.mxu1 %v13450_v13 }
 0x984   :  { %9562 = vmatmul.mubr.f32.gmra.mrb[24].mxu1 %v13467_v23 }
 0x985   :  { %9564 = vmatprep.mubr.f32.mxu1 %v13487_v4  ;;  %v5621_v4 = vpop.permute.xlu0 %5620 }
 0x988   :  { %9565 = vmatmul.mubr.f32.gmra.mrb[26].mxu1 %v13508_v15 }
 0x989   :  { %9567 = vmatprep.mubr.f32.mxu1 %v13524_v54  ;;  %v5631_v58 = vpop.permute.xlu0 %5630 }
 0x98c   :  { %9568 = vmatmul.mubr.f32.gmra.mrb[28].mxu1 %v13540_v0 }
 0x98d   :  { %9570 = vmatprep.mubr.f32.mxu1 %v13553_v63  ;;  %v5641_v26 = vpop.permute.xlu0 %5640 }
 0x990   :  { %9571 = vmatmul.mubr.f32.gmra.mrb[30].mxu1 %v13572_v43 }
 0x9b3   :  { %v9551_v2 = vpop.f32.mrb[32].mxu0 }
 0x9b4   :  { %v6880_v46 = vpop.f32.mrb[33].mxu0 }
 0x9b7   :  { %v9554_v3 = vpop.f32.mrb[34].mxu0 }
 0x9b8   :  { %v6892_v56 = vpop.f32.mrb[35].mxu0 }
 0x9bb   :  { %v9557_v30 = vpop.f32.mrb[36].mxu0 }
 0x9bc   :  { %v6904_v20 = vpop.f32.mrb[37].mxu0 }
 0xa33   :  { %v9495_v7 = vpop.f32.mrb[16].mxu1 }
 0xa34   :  { %v10213_v13 = vadd.f32 %v9495_v7, %v5616_v48  ;;  %v6703_v12 = vpop.f32.mrb[17].mxu1 }
 0xa35   :  { %v10215_v23 = vadd.f32 %v6703_v12, %v5611_v42 }
 0xa36   :  { %v10214_v15 = vadd.f32 %v10213_v13, %v9551_v2 }
 0xa37   :  { %v10216_v54 = vadd.f32 %v10215_v23, %v6880_v46  ;;  %v9498_v18 = vpop.f32.mrb[18].mxu1  ;;  %v5666_v23 = vpop.permute.xlu1 %5665 }
 0xa38   :  { %v13772_v0 = vmax.f32 %v10214_v15, 0.0  ;;  %v10217_v63 = vadd.f32 %v9498_v18, %v5626_v24  ;;  %v6715_v35 = vpop.f32.mrb[19].mxu1 }
 0xa39   :  { %v13774_v43 = vmax.f32 %v10216_v54, 0.0  ;;  %v10219_v47 = vadd.f32 %v6715_v35, %v5621_v4 }
 0xa3a   :  { %v10218_v40 = vadd.f32 %v10217_v63, %v9554_v3  ;;  %v6993_v38 = vsel %vm1249_vm0, %v13772_v0, 0.0  ;;  %v7055_v10 = vmul.f32 %v13772_v0, %v13772_v0 }
 0xa3b   :  { %v10220_v29 = vadd.f32 %v10219_v47, %v6892_v56  ;;  %6994 = vadd.xlane.f32.xlu1 %v6993_v38  ;;  %v9501_v32 = vpop.f32.mrb[20].mxu1  ;;  %v6990_v53 = vsel %vm1249_vm0, %v13774_v43, 0.0  ;;  %v7054_v49 = vmul.f32 %v13774_v43, %v13774_v43 }
 0xa3c   :  { %v13784_v31 = vmax.f32 %v10218_v40, 0.0  ;;  %v10221_v5 = vadd.f32 %v9501_v32, %v5636_v25  ;;  %v6727_v27 = vpop.f32.mrb[21].mxu1  ;;  %6991 = vadd.xlane.f32.xlu0 %v6990_v53  ;;  %v7073_v9 = vsel %vm1249_vm0, %v7055_v10, 0.0 }
 0xa3d   :  { %v10223_v8 = vadd.f32 %v6727_v27, %v5631_v58  ;;  %v13786_v34 = vmax.f32 %v10220_v29, 0.0  ;;  %v7070_v51 = vsel %vm1249_vm0, %v7054_v49, 0.0  ;;  %v5676_v58 = vpop.permute.xlu1 %5675 }
 0xa3e   :  { %v10222_v6 = vadd.f32 %v10221_v5, %v9557_v30  ;;  %v7057_v45 = vmul.f32 %v13784_v31, %v13784_v31  ;;  %v6999_v1 = vsel %vm1249_vm0, %v13784_v31, 0.0  ;;  %v5651_v30 = vpop.permute.xlu0 %5650 }
 0xa3f   :  { %v10224_v14 = vadd.f32 %v10223_v8, %v6904_v20  ;;  %7074 = vadd.xlane.f32.xlu1 %v7073_v9  ;;  %v7056_v39 = vmul.f32 %v13786_v34, %v13786_v34  ;;  %v6996_v17 = vsel %vm1249_vm0, %v13786_v34, 0.0 }
 0xa40   :  { %7071 = vadd.xlane.f32.xlu0 %v7070_v51  ;;  %v13792_v22 = vmax.f32 %v10222_v6, 0.0  ;;  %v7079_v28 = vsel %vm1249_vm0, %v7057_v45, 0.0 }
 0xa41   :  { %v13799_v44 = vmax.f32 %v10224_v14, 0.0  ;;  %v7076_v21 = vsel %vm1249_vm0, %v7056_v39, 0.0 }
 0xa42   :  { %v7059_v37 = vmul.f32 %v13792_v22, %v13792_v22  ;;  %v7005_v57 = vsel %vm1249_vm0, %v13792_v22, 0.0  ;;  %v5661_v40 = vpop.permute.xlu0 %5660 }
 0xa43   :  { %7080 = vadd.xlane.f32.xlu1 %v7079_v28  ;;  %v7058_v36 = vmul.f32 %v13799_v44, %v13799_v44  ;;  %v7002_v55 = vsel %vm1249_vm0, %v13799_v44, 0.0 }
 0xa44   :  { %7000 = vadd.xlane.f32.xlu0 %v6999_v1  ;;  %v7085_v33 = vsel %vm1249_vm0, %v7059_v37, 0.0 }
 0xa45   :  { %v7082_v19 = vsel %vm1249_vm0, %v7058_v36, 0.0 }
 0xa46   :  { %v5671_v9 = vpop.permute.xlu0 %5670 }
 0xa47   :  { %7077 = vadd.xlane.f32.xlu1 %v7076_v21 }
 0xa48   :  { %6997 = vadd.xlane.f32.xlu0 %v6996_v17 }
 0xa4a   :  { %v5681_v21 = vpop.permute.xlu0 %5680 }
 0xa4b   :  { %7086 = vadd.xlane.f32.xlu1 %v7085_v33 }
 0xa4c   :  { %7006 = vadd.xlane.f32.xlu0 %v7005_v57  ;;  %v5686_v57 = vpop.permute.xlu1 %5685 }
 0xa4f   :  { %7083 = vadd.xlane.f32.xlu1 %v7082_v19 }
 0xa50   :  { %7003 = vadd.xlane.f32.xlu0 %v7002_v55 }
 0xa53   :  { %v9560_v41 = vpop.f32.mrb[22].mxu1 }
 0xa54   :  { %v10225_v59 = vadd.f32 %v9560_v41, %v5646_v52  ;;  %v6916_v62 = vpop.f32.mrb[23].mxu1 }
 0xa55   :  { %v10226_v60 = vadd.f32 %v6916_v62, %v5641_v26 }
 0xa56   :  { %v13814_v50 = vmax.f32 %v10225_v59, 0.0 }
 0xa57   :  { %v13816_v61 = vmax.f32 %v10226_v60, 0.0  ;;  %v9563_v16 = vpop.f32.mrb[24].mxu1 }
 0xa58   :  { %v10227_v2 = vadd.f32 %v9563_v16, %v5656_v11  ;;  %v6928_v46 = vpop.f32.mrb[25].mxu1  ;;  %v7011_v3 = vsel %vm1249_vm0, %v13814_v50, 0.0  ;;  %v7061_v56 = vmul.f32 %v13814_v50, %v13814_v50 }
 0xa59   :  { %7012 = vadd.xlane.f32.xlu0 %v7011_v3  ;;  %v10228_v48 = vadd.f32 %v6928_v46, %v5651_v30  ;;  %v7060_v7 = vmul.f32 %v13816_v61, %v13816_v61  ;;  %v7008_v24 = vsel %vm1249_vm0, %v13816_v61, 0.0 }
 0xa5a   :  { %v13822_v20 = vmax.f32 %v10227_v2, 0.0  ;;  %v7091_v42 = vsel %vm1249_vm0, %v7061_v56, 0.0 }
 0xa5b   :  { %v9566_v13 = vpop.f32.mrb[26].mxu1  ;;  %7092 = vadd.xlane.f32.xlu1 %v7091_v42  ;;  %v13829_v4 = vmax.f32 %v10228_v48, 0.0  ;;  %v7088_v54 = vsel %vm1249_vm0, %v7060_v7, 0.0 }
 0xa5c   :  { %v6940_v12 = vpop.f32.mrb[27].mxu1  ;;  %v10229_v15 = vadd.f32 %v9566_v13, %v5666_v23  ;;  %v7063_v18 = vmul.f32 %v13822_v20, %v13822_v20  ;;  %v7017_v47 = vsel %vm1249_vm0, %v13822_v20, 0.0 }
 0xa5d   :  { %7009 = vadd.xlane.f32.xlu0 %v7008_v24  ;;  %v10230_v10 = vadd.f32 %v6940_v12, %v5661_v40  ;;  %v7062_v29 = vmul.f32 %v13829_v4, %v13829_v4  ;;  %v7014_v49 = vsel %vm1249_vm0, %v13829_v4, 0.0 }
 0xa5e   :  { %v13836_v38 = vmax.f32 %v10229_v15, 0.0  ;;  %v7097_v25 = vsel %vm1249_vm0, %v7063_v18, 0.0 }
 0xa5f   :  { %v9569_v63 = vpop.f32.mrb[28].mxu1  ;;  %7089 = vadd.xlane.f32.xlu1 %v7088_v54  ;;  %v13843_v5 = vmax.f32 %v10230_v10, 0.0  ;;  %v7094_v8 = vsel %vm1249_vm0, %v7062_v29, 0.0 }
 0xa60   :  { %v6952_v35 = vpop.f32.mrb[29].mxu1  ;;  %v10231_v27 = vadd.f32 %v9569_v63, %v5676_v58  ;;  %v7065_v6 = vmul.f32 %v13836_v38, %v13836_v38  ;;  %v7023_v45 = vsel %vm1249_vm0, %v13836_v38, 0.0 }
 0xa61   :  { %7018 = vadd.xlane.f32.xlu0 %v7017_v47  ;;  %v10232_v51 = vadd.f32 %v6952_v35, %v5671_v9  ;;  %v7064_v39 = vmul.f32 %v13843_v5, %v13843_v5  ;;  %v7020_v1 = vsel %vm1249_vm0, %v13843_v5, 0.0 }
 0xa62   :  { %v13850_v14 = vmax.f32 %v10231_v27, 0.0  ;;  %v7103_v28 = vsel %vm1249_vm0, %v7065_v6, 0.0 }
 0xa63   :  { %v9572_v32 = vpop.f32.mrb[30].mxu1  ;;  %7098 = vadd.xlane.f32.xlu1 %v7097_v25  ;;  %v13857_v37 = vmax.f32 %v10232_v51, 0.0  ;;  %v7100_v33 = vsel %vm1249_vm0, %v7064_v39, 0.0 }
 0xa64   :  { %v6964_v53 = vpop.f32.mrb[31].mxu1  ;;  %v7067_v36 = vmul.f32 %v13850_v14, %v13850_v14  ;;  %v10233_v19 = vadd.f32 %v9572_v32, %v5686_v57  ;;  %v7029_v55 = vsel %vm1249_vm0, %v13850_v14, 0.0 }
 0xa65   :  { %7015 = vadd.xlane.f32.xlu0 %v7014_v49  ;;  %v10234_v17 = vadd.f32 %v6964_v53, %v5681_v21  ;;  %v7066_v41 = vmul.f32 %v13857_v37, %v13857_v37  ;;  %v7026_v62 = vsel %vm1249_vm0, %v13857_v37, 0.0 }
 0xa66   :  { %v7109_v26 = vsel %vm1249_vm0, %v7067_v36, 0.0  ;;  %v13869_v59 = vmax.f32 %v10233_v19, 0.0 }
 0xa67   :  { %7095 = vadd.xlane.f32.xlu1 %v7094_v8  ;;  %v13864_v52 = vmax.f32 %v10234_v17, 0.0  ;;  %v7106_v60 = vsel %vm1249_vm0, %v7066_v41, 0.0 }
 0xa68   :  { %v7035_v16 = vsel %vm1249_vm0, %v13869_v59, 0.0  ;;  %v7069_v3 = vmul.f32 %v13869_v59, %v13869_v59 }
 0xa69   :  { %7024 = vadd.xlane.f32.xlu0 %v7023_v45  ;;  %v7068_v11 = vmul.f32 %v13864_v52, %v13864_v52  ;;  %v7032_v46 = vsel %vm1249_vm0, %v13864_v52, 0.0 }
 0xa6a   :  { %v7115_v56 = vsel %vm1249_vm0, %v7069_v3, 0.0 }
 0xa6b   :  { %7104 = vadd.xlane.f32.xlu1 %v7103_v28  ;;  %v7112_v2 = vsel %vm1249_vm0, %v7068_v11, 0.0  ;;  %v7699_v11 = vld [vmem:[%s14235_s3 + $0x180] sm:$0xff] }
 0xa6d   :  { %7021 = vadd.xlane.f32.xlu0 %v7020_v1 }
 0xa6f   :  { %7101 = vadd.xlane.f32.xlu1 %v7100_v33 }
 0xa71   :  { %7030 = vadd.xlane.f32.xlu0 %v7029_v55 }
 0xa73   :  { %7110 = vadd.xlane.f32.xlu1 %v7109_v26  ;;  %v7700_v26 = vld [vmem:[%s14235_s3 + $0x188] sm:$0xff] }
 0xa75   :  { %7027 = vadd.xlane.f32.xlu0 %v7026_v62 }
 0xa77   :  { %7107 = vadd.xlane.f32.xlu1 %v7106_v60 }
 0xa79   :  { %7036 = vadd.xlane.f32.xlu0 %v7035_v16 }
 0xa7b   :  { %7113 = vadd.xlane.f32.xlu1 %v7112_v2 }
 0xa7d   :  { %7033 = vadd.xlane.f32.xlu0 %v7032_v46  ;;  %v13915_v46 = vld [vmem:[%s14237_s5 + $0x8] sm:$0xff] }
 0xa81   :  { %7116 = vadd.xlane.f32.xlu0 %v7115_v56 }
 0xac8   :  { %v6995_v30 = vpop.xlane.xlu1 %6994 }
 0xac9   :  { %v13884_v48 = vmul.f32 0.125, %v6995_v30  ;;  %v6992_v42 = vpop.xlane.xlu0 %6991 }
 0xaca   :  { %v13886_v7 = vmul.f32 0.125, %v6992_v42 }
 0xacb   :  { %v7135_v12 = vmul.f32 %v13884_v48, %v13884_v48 }
 0xacc   :  { %v7075_v13 = vpop.xlane.xlu1 %7074  ;;  %v7134_v15 = vmul.f32 %v13886_v7, %v13886_v7 }
 0xacd   :  { %v7119_v24 = vmul.f32 0.125, %v7075_v13  ;;  %v7072_v23 = vpop.xlane.xlu0 %7071  ;;  %v13922_v13 = vld [vmem:[%s14237_s5] sm:$0xff] }
 0xace   :  { %v7118_v54 = vmul.f32 0.125, %v7072_v23 }
 0xacf   :  { %v7151_v18 = vsub.f32 %v7119_v24, %v7135_v12 }
 0xad0   :  { %v7150_v63 = vsub.f32 %v7118_v54, %v7134_v15  ;;  %v7081_v35 = vpop.xlane.xlu1 %7080 }
 0xad1   :  { %v7167_v47 = vmax.f32 %v7151_v18, 0.0  ;;  %v7001_v40 = vpop.xlane.xlu0 %7000  ;;  %v7121_v53 = vmul.f32 0.125, %v7081_v35  ;;  %v7702_v18 = vld [vmem:[%s14235_s3 + $0x198] sm:$0xff] }
 0xad2   :  { %v7166_v10 = vmax.f32 %v7150_v63, 0.0  ;;  %v13892_v25 = vmul.f32 0.125, %v7001_v40 }
 0xad3   :  { %v7200_v29 = vadd.f32 1e-05, %v7167_v47  ;;  %v13932_v47 = vld [vmem:[%s14237_s5 + $0x18] sm:$0xff] }
 0xad4   :  { %v7199_v32 = vadd.f32 1e-05, %v7166_v10  ;;  %v7137_v49 = vmul.f32 %v13892_v25, %v13892_v25  ;;  %v7078_v58 = vpop.xlane.xlu1 %7077 }
 0xad5   :  { %10653 = vrsqrt.f32 %v7200_v29  ;;  %v6998_v27 = vpop.xlane.xlu0 %6997  ;;  %v7120_v45 = vmul.f32 0.125, %v7078_v58 }
 0xad6   :  { %10655 = vrsqrt.f32 %v7199_v32  ;;  %v7153_v8 = vsub.f32 %v7121_v53, %v7137_v49  ;;  %v13896_v6 = vmul.f32 0.125, %v6998_v27  ;;  %v7701_v53 = vld [vmem:[%s14235_s3 + $0x190] sm:$0xff] }
 0xad8   :  { %v7169_v9 = vmax.f32 %v7153_v8, 0.0  ;;  %v7136_v51 = vmul.f32 %v13896_v6, %v13896_v6  ;;  %v7087_v28 = vpop.xlane.xlu1 %7086 }
 0xad9   :  { %v7007_v39 = vpop.xlane.xlu0 %7006  ;;  %v7123_v36 = vmul.f32 0.125, %v7087_v28 }
 0xada   :  { %v7202_v1 = vadd.f32 1e-05, %v7169_v9  ;;  %v7152_v21 = vsub.f32 %v7120_v45, %v7136_v51  ;;  %v13900_v17 = vmul.f32 0.125, %v7007_v39  ;;  %v13948_v9 = vld [vmem:[%s14237_s5 + $0x10] sm:$0xff] }
 0xadc   :  { %10657 = vrsqrt.f32 %v7202_v1  ;;  %v7168_v33 = vmax.f32 %v7152_v21, 0.0  ;;  %v7139_v57 = vmul.f32 %v13900_v17, %v13900_v17  ;;  %v7084_v19 = vpop.xlane.xlu1 %7083  ;;  %v7704_v1 = vld [vmem:[%s14235_s3 + $0x1a8] sm:$0xff] }
 0xadd   :  { %v7004_v55 = vpop.xlane.xlu0 %7003  ;;  %v7122_v2 = vmul.f32 0.125, %v7084_v19 }
 0xade   :  { %v7201_v41 = vadd.f32 1e-05, %v7168_v33  ;;  %v7155_v62 = vsub.f32 %v7123_v36, %v7139_v57  ;;  %v13907_v60 = vmul.f32 0.125, %v7004_v55  ;;  %v13961_v55 = vld [vmem:[%s14237_s5 + $0x28] sm:$0xff] }
 0xadf   :  { %v10654_v16 = vpop.eup %10653 }
 0xae0   :  { %v10656_v3 = vpop.eup %10655  ;;  %10659 = vrsqrt.f32 %v7201_v41  ;;  %v7171_v56 = vmax.f32 %v7155_v62, 0.0  ;;  %v7138_v30 = vmul.f32 %v13907_v60, %v13907_v60  ;;  %v7232_v42 = vmul.f32 %v10654_v16, %v7700_v26 }
 0xae1   :  { %v7231_v12 = vmul.f32 %v10656_v3, %v7699_v11 }
 0xae2   :  { %v7204_v24 = vadd.f32 1e-05, %v7171_v56  ;;  %v7154_v23 = vsub.f32 %v7122_v2, %v7138_v30  ;;  %v7313_v15 = vmul.f32 %v13915_v46, %v7232_v42  ;;  %v7265_v2 = vmul.f32 %v7232_v42, %v13884_v48 }
 0xae3   :  { %v7312_v54 = vmul.f32 %v13922_v13, %v7231_v12 }
 0xae4   :  { %10661 = vrsqrt.f32 %v7204_v24  ;;  %v7170_v63 = vmax.f32 %v7154_v23, 0.0  ;;  %7395 = vperm.xlu1 %10556, %v7313_v15   ;;  %v7716_v23 = vld [vmem:[%s14236_s4 + $0x188] sm:$0xff]  ;;  %v7264_v15 = vmul.f32 %v7231_v12, %v13886_v7 }
 0xae5   :  { %7390 = vperm.xlu0 %10555, %v7312_v54   ;;  %v7281_v12 = vsub.f32 %v7716_v23, %v7265_v2  ;;  %v7719_v23 = vld [vmem:[%s14236_s4 + $0x1a0] sm:$0xff] }
 0xae6   :  { %v10658_v35 = vpop.eup %10657  ;;  %v7203_v40 = vadd.f32 1e-05, %v7170_v63  ;;  %v7013_v10 = vpop.xlane.xlu0 %7012 }
 0xae7   :  { %v13934_v29 = vmul.f32 %v10658_v35, %v7702_v18  ;;  %v13936_v32 = vmul.f32 0.125, %v7013_v10  ;;  %v7715_v18 = vld [vmem:[%s14236_s4 + $0x180] sm:$0xff] }
 0xae8   :  { %v7093_v49 = vpop.xlane.xlu1 %7092  ;;  %10663 = vrsqrt.f32 %v7203_v40  ;;  %v7703_v40 = vld [vmem:[%s14235_s3 + $0x1a0] sm:$0xff] }
 0xae9   :  { %v7315_v58 = vmul.f32 %v13932_v47, %v13934_v29  ;;  %v7141_v27 = vmul.f32 %v13936_v32, %v13936_v32  ;;  %v7125_v45 = vmul.f32 0.125, %v7093_v49 }
 0xaea   :  { %v10660_v8 = vpop.eup %10659  ;;  %v7010_v51 = vpop.xlane.xlu0 %7009 }
 0xaeb   :  { %v7233_v28 = vmul.f32 %v10660_v8, %v7701_v53  ;;  %v13950_v39 = vmul.f32 0.125, %v7010_v51  ;;  %7405 = vperm.xlu0 %10555, %v7315_v58   ;;  %v7157_v21 = vsub.f32 %v7125_v45, %v7141_v27  ;;  %v7717_v27 = vld [vmem:[%s14236_s4 + $0x190] sm:$0xff]  ;;  %v7280_v8 = vsub.f32 %v7715_v18, %v7264_v15 }
 0xaec   :  { %v7090_v33 = vpop.xlane.xlu1 %7089 }
 0xaed   :  { %v7314_v36 = vmul.f32 %v13948_v9, %v7233_v28  ;;  %v7140_v57 = vmul.f32 %v13950_v39, %v13950_v39  ;;  %v7173_v26 = vmax.f32 %v7157_v21, 0.0  ;;  %v7124_v41 = vmul.f32 0.125, %v7090_v33 }
 0xaee   :  { %v10662_v19 = vpop.eup %10661  ;;  %v7019_v62 = vpop.xlane.xlu0 %7018  ;;  %v7266_v7 = vmul.f32 %v7233_v28, %v13896_v6  ;;  %v7329_v28 = vmul.f32 %v13915_v46, %v7281_v12  ;;  %v7706_v46 = vld [vmem:[%s14235_s3 + $0x1b8] sm:$0xff] }
 0xaef   :  { %v13963_v11 = vmul.f32 %v10662_v19, %v7704_v1  ;;  %v13965_v16 = vmul.f32 0.125, %v7019_v62  ;;  %7400 = vperm.xlu1 %10556, %v7314_v36   ;;  %v7206_v3 = vadd.f32 1e-05, %v7173_v26  ;;  %v7156_v56 = vsub.f32 %v7124_v41, %v7140_v57 }
 0xaf0   :  { %v7099_v30 = vpop.xlane.xlu1 %7098  ;;  %v7282_v6 = vsub.f32 %v7717_v27, %v7266_v7  ;;  %v7328_v41 = vmul.f32 %v13922_v13, %v7280_v8  ;;  %v7718_v13 = vld [vmem:[%s14236_s4 + $0x198] sm:$0xff] }
 0xaf1   :  { %v7317_v24 = vmul.f32 %v13961_v55, %v13963_v11  ;;  %v7143_v54 = vmul.f32 %v13965_v16, %v13965_v16  ;;  %10665 = vrsqrt.f32 %v7206_v3  ;;  %v7172_v48 = vmax.f32 %v7156_v56, 0.0 }
 0xaf2   :  { %v7127_v42 = vmul.f32 0.125, %v7099_v30  ;;  %v7016_v63 = vpop.xlane.xlu0 %7015  ;;  %v10664_v35 = vpop.eup %10663  ;;  %v7267_v3 = vmul.f32 %v13934_v29, %v13892_v25 }
 0xaf3   :  { %v13982_v10 = vmul.f32 0.125, %v7016_v63  ;;  %7415 = vperm.xlu0 %10555, %v7317_v24   ;;  %v7205_v53 = vadd.f32 1e-05, %v7172_v48  ;;  %v13990_v51 = vmul.f32 %v10664_v35, %v7703_v40 }
 0xaf4   :  { %v7159_v49 = vsub.f32 %v7127_v42, %v7143_v54  ;;  %v7096_v58 = vpop.xlane.xlu1 %7095  ;;  %v7346_v54 = vsel %vm7344_vm1, %v7329_v28, 0.0  ;;  %v14018_v42 = vld [vmem:[%s14237_s5 + $0x38] sm:$0xff]  ;;  %v7283_v12 = vsub.f32 %v7718_v13, %v7267_v3  ;;  %v7708_v13 = vld [vmem:[%s14235_s3 + $0x1c8] sm:$0xff] }
 0xaf5   :  { %v7142_v45 = vmul.f32 %v13982_v10, %v13982_v10  ;;  %10667 = vrsqrt.f32 %v7205_v53  ;;  %v7126_v21 = vmul.f32 0.125, %v7096_v58  ;;  %v7268_v56 = vmul.f32 %v13990_v51, %v13907_v60 }
 0xaf6   :  { %v7175_v1 = vmax.f32 %v7159_v49, 0.0  ;;  %v7025_v33 = vpop.xlane.xlu0 %7024  ;;  %v7330_v60 = vmul.f32 %v13948_v9, %v7282_v6  ;;  %v7345_v49 = vsel %vm7344_vm1, %v7328_v41, 0.0  ;;  %v7705_v9 = vld [vmem:[%s14235_s3 + $0x1b0] sm:$0xff]  ;;  %v7269_v41 = vmul.f32 %v13963_v11, %v13900_v17 }
 0xaf7   :  { %v13992_v36 = vmul.f32 0.125, %v7025_v33  ;;  %v7158_v19 = vsub.f32 %v7126_v21, %v7142_v45  ;;  %v7284_v53 = vsub.f32 %v7719_v23, %v7268_v56 }
 0xaf8   :  { %v7208_v57 = vadd.f32 1e-05, %v7175_v1  ;;  %v7105_v26 = vpop.xlane.xlu1 %7104  ;;  %v7348_v33 = vsel %vm7344_vm1, %v7330_v60, 0.0 }
 0xaf9   :  { %v7145_v62 = vmul.f32 %v13992_v36, %v13992_v36  ;;  %v7129_v2 = vmul.f32 0.125, %v7105_v26  ;;  %v7174_v30 = vmax.f32 %v7158_v19, 0.0  ;;  %v7331_v26 = vmul.f32 %v13932_v47, %v7283_v12  ;;  %v7721_v47 = vld [vmem:[%s14236_s4 + $0x1b0] sm:$0xff] }
 0xafa   :  { %10669 = vrsqrt.f32 %v7208_v57  ;;  %v7022_v24 = vpop.xlane.xlu0 %7021 }
 0xafb   :  { %v7161_v15 = vsub.f32 %v7129_v2, %v7145_v62  ;;  %v14011_v25 = vmul.f32 0.125, %v7022_v24  ;;  %v10666_v29 = vpop.eup %10665  ;;  %v7207_v18 = vadd.f32 1e-05, %v7174_v30  ;;  %v14040_v62 = vld [vmem:[%s14237_s5 + $0x20] sm:$0xff]  ;;  %v7347_v2 = vadd.f32 %v7346_v54, %v7345_v49  ;;  %v7720_v30 = vld [vmem:[%s14236_s4 + $0x1a8] sm:$0xff] }
 0xafc   :  { %v7102_v48 = vpop.xlane.xlu1 %7101  ;;  %v7238_v7 = vmul.f32 %v10666_v29, %v7706_v46  ;;  %v7332_v24 = vmul.f32 %v14040_v62, %v7284_v53  ;;  %v7350_v49 = vsel %vm7344_vm1, %v7331_v26, 0.0 }
 0xafd   :  { %v7177_v63 = vmax.f32 %v7161_v15, 0.0  ;;  %v7144_v35 = vmul.f32 %v14011_v25, %v14011_v25  ;;  %v7128_v40 = vmul.f32 0.125, %v7102_v48  ;;  %10671 = vrsqrt.f32 %v7207_v18 }
 0xafe   :  { %v7031_v58 = vpop.xlane.xlu0 %7030  ;;  %v7319_v1 = vmul.f32 %v14018_v42, %v7238_v7  ;;  %v7349_v15 = vadd.f32 %v7348_v33, %v7347_v2  ;;  %v7285_v48 = vsub.f32 %v7720_v30, %v7269_v41  ;;  %v7710_v41 = vld [vmem:[%s14235_s3 + $0x1d8] sm:$0xff]  ;;  %v7723_v2 = vld [vmem:[%s14236_s4 + $0x1c0] sm:$0xff] }
 0xaff   :  { %v7210_v27 = vadd.f32 1e-05, %v7177_v63  ;;  %v7160_v8 = vsub.f32 %v7128_v40, %v7144_v35  ;;  %v14026_v45 = vmul.f32 0.125, %v7031_v58  ;;  %v10668_v21 = vpop.eup %10667  ;;  %v7707_v35 = vld [vmem:[%s14235_s3 + $0x1c0] sm:$0xff] }
 0xb00   :  { %v7111_v6 = vpop.xlane.xlu1 %7110  ;;  %v14030_v28 = vmul.f32 %v10668_v21, %v7705_v9  ;;  %7425 = vperm.xlu0 %10555, %v7319_v1   ;;  %v7352_v9 = vsel %vm7344_vm1, %v7332_v24, 0.0  ;;  %v7271_v21 = vmul.f32 %v7238_v7, %v13936_v32  ;;  %v7333_v32 = vmul.f32 %v13961_v55, %v7285_v48  ;;  %v7307_v55 = vld [vmem:[%s14237_s5 + $0x58] sm:$0xff] }
 0xb01   :  { %10673 = vrsqrt.f32 %v7210_v27  ;;  %v7176_v57 = vmax.f32 %v7160_v8, 0.0  ;;  %v7147_v19 = vmul.f32 %v14026_v45, %v14026_v45  ;;  %v7131_v3 = vmul.f32 0.125, %v7111_v6 }
 0xb02   :  { %v7028_v56 = vpop.xlane.xlu0 %7027  ;;  %v7270_v17 = vmul.f32 %v14030_v28, %v13950_v39  ;;  %v14061_v39 = vld [vmem:[%s14237_s5 + $0x48] sm:$0xff]  ;;  %v7351_v8 = vadd.f32 %v7350_v49, %v7349_v15 }
 0xb03   :  { %v7209_v11 = vadd.f32 1e-05, %v7176_v57  ;;  %v14051_v46 = vmul.f32 0.125, %v7028_v56  ;;  %v7163_v29 = vsub.f32 %v7131_v3, %v7147_v19  ;;  %v7722_v57 = vld [vmem:[%s14236_s4 + $0x1b8] sm:$0xff]  ;;  %v14078_v19 = vld [vmem:[%s14237_s5 + $0x30] sm:$0xff] }
 0xb04   :  { %v10670_v23 = vpop.eup %10669  ;;  %v7108_v60 = vpop.xlane.xlu1 %7107  ;;  %v7286_v63 = vsub.f32 %v7721_v47, %v7270_v17  ;;  %v7353_v7 = vadd.f32 %v7352_v9, %v7351_v8 }
 0xb05   :  { %10675 = vrsqrt.f32 %v7209_v11  ;;  %v7146_v54 = vmul.f32 %v14051_v46, %v14051_v46  ;;  %v7130_v18 = vmul.f32 0.125, %v7108_v60  ;;  %v7179_v40 = vmax.f32 %v7163_v29, 0.0  ;;  %v7709_v60 = vld [vmem:[%s14235_s3 + $0x1d0] sm:$0xff] }
 0xb06   :  { %v7037_v12 = vpop.xlane.xlu0 %7036  ;;  %v7240_v53 = vmul.f32 %v10670_v23, %v7708_v13  ;;  %v7334_v3 = vmul.f32 %v14078_v19, %v7286_v63  ;;  %v7287_v23 = vsub.f32 %v7722_v57, %v7271_v21 }
 0xb07   :  { %v7162_v58 = vsub.f32 %v7130_v18, %v7146_v54  ;;  %v10672_v27 = vpop.eup %10671  ;;  %v7212_v1 = vadd.f32 1e-05, %v7179_v40  ;;  %v14090_v11 = vmul.f32 0.125, %v7037_v12  ;;  %v7354_v18 = vsel %vm7344_vm1, %v7333_v32, 0.0 }
 0xb08   :  { %v7321_v33 = vmul.f32 %v14061_v39, %v7240_v53  ;;  %v14070_v6 = vmul.f32 %v10672_v27, %v7707_v35  ;;  %v7114_v56 = vpop.xlane.xlu1 %7113  ;;  %v7356_v48 = vsel %vm7344_vm1, %v7334_v3, 0.0  ;;  %v7273_v63 = vmul.f32 %v7240_v53, %v13965_v16  ;;  %v14113_v27 = vld [vmem:[%s14237_s5 + $0x40] sm:$0xff] }
 0xb09   :  { %v7178_v26 = vmax.f32 %v7162_v58, 0.0  ;;  %10677 = vrsqrt.f32 %v7212_v1  ;;  %v7132_v54 = vmul.f32 0.125, %v7114_v56  ;;  %v7355_v49 = vadd.f32 %v7354_v18, %v7353_v7  ;;  %v7724_v58 = vld [vmem:[%s14236_s4 + $0x1c8] sm:$0xff] }
 0xb0a   :  { %7435 = vperm.xlu0 %10555, %v7321_v33   ;;  %v7034_v30 = vpop.xlane.xlu0 %7033  ;;  %v7272_v47 = vmul.f32 %v14070_v6, %v13982_v10  ;;  %v7149_v9 = vmul.f32 %v14090_v11, %v14090_v11  ;;  %v7335_v16 = vmul.f32 %v14018_v42, %v7287_v23  ;;  %v7289_v7 = vsub.f32 %v7724_v58, %v7273_v63 }
 0xb0b   :  { %v10674_v24 = vpop.eup %10673  ;;  %v7211_v17 = vadd.f32 1e-05, %v7178_v26  ;;  %v14092_v13 = vmul.f32 0.125, %v7034_v30  ;;  %v7357_v33 = vadd.f32 %v7356_v48, %v7355_v49  ;;  %v7727_v49 = vld [vmem:[%s14236_s4 + $0x1e0] sm:$0xff] }
 0xb0c   :  { %v7242_v15 = vmul.f32 %v10674_v24, %v7710_v41  ;;  %v7288_v29 = vsub.f32 %v7723_v2, %v7272_v47  ;;  %v7725_v41 = vld [vmem:[%s14236_s4 + $0x1d0] sm:$0xff]  ;;  %v7712_v2 = vld [vmem:[%s14235_s3 + $0x1e8] sm:$0xff]  ;;  %v7358_v30 = vsel %vm7344_vm1, %v7335_v16, 0.0 }
 0xb0d   :  { %10679 = vrsqrt.f32 %v7211_v17  ;;  %v7148_v10 = vmul.f32 %v14092_v13, %v14092_v13  ;;  %v7309_v17 = vld [vmem:[%s14237_s5 + $0x68] sm:$0xff] }
 0xb0e   :  { %v7117_v35 = vpop.xlane.xlu0 %7116  ;;  %v7323_v40 = vmul.f32 %v7307_v55, %v7242_v15  ;;  %v7336_v53 = vmul.f32 %v14113_v27, %v7288_v29  ;;  %v7275_v47 = vmul.f32 %v7242_v15, %v13992_v36  ;;  %v7711_v29 = vld [vmem:[%s14235_s3 + $0x1e0] sm:$0xff]  ;;  %v7306_v36 = vld [vmem:[%s14237_s5 + $0x50] sm:$0xff]  ;;  %v7337_v15 = vmul.f32 %v14061_v39, %v7289_v7  ;;  %v7728_v16 = vld [vmem:[%s14236_s4 + $0x1e8] sm:$0xff] }
 0xb0f   :  { %v10676_v12 = vpop.eup %10675  ;;  %v7164_v8 = vsub.f32 %v7132_v54, %v7148_v10  ;;  %v7133_v1 = vmul.f32 0.125, %v7117_v35  ;;  %v7726_v54 = vld [vmem:[%s14236_s4 + $0x1d8] sm:$0xff] }
 0xb10   :  { %v14115_v21 = vmul.f32 %v10676_v12, %v7709_v60  ;;  %7445 = vperm.xlu0 %10555, %v7323_v40   ;;  %v7360_v24 = vsel %vm7344_vm1, %v7336_v53, 0.0  ;;  %v7291_v12 = vsub.f32 %v7726_v54, %v7275_v47  ;;  %v7714_v7 = vld [vmem:[%s14235_s3 + $0x1f8] sm:$0xff] }
 0xb11   :  { %v7180_v57 = vmax.f32 %v7164_v8, 0.0  ;;  %v7165_v26 = vsub.f32 %v7133_v1, %v7149_v9  ;;  %v7362_v9 = vsel %vm7344_vm1, %v7337_v15, 0.0 }
 0xb12   :  { %v7274_v32 = vmul.f32 %v14115_v21, %v14011_v25  ;;  %v7359_v25 = vadd.f32 %v7358_v30, %v7357_v33  ;;  %v7339_v53 = vmul.f32 %v7307_v55, %v7291_v12  ;;  %v7311_v30 = vld [vmem:[%s14237_s5 + $0x78] sm:$0xff] }
 0xb13   :  { %v7213_v3 = vadd.f32 1e-05, %v7180_v57  ;;  %v7181_v42 = vmax.f32 %v7165_v26, 0.0  ;;  %v10678_v56 = vpop.eup %10677  ;;  %v7713_v57 = vld [vmem:[%s14235_s3 + $0x1f0] sm:$0xff]  ;;  %v7308_v26 = vld [vmem:[%s14237_s5 + $0x60] sm:$0xff] }
 0xb14   :  { %v7290_v23 = vsub.f32 %v7725_v41, %v7274_v32  ;;  %v7244_v10 = vmul.f32 %v10678_v56, %v7712_v2  ;;  %v7361_v63 = vadd.f32 %v7360_v24, %v7359_v25  ;;  %v7366_v55 = vsel %vm7344_vm1, %v7339_v53, 0.0  ;;  %v7729_v56 = vld [vmem:[%s14236_s4 + $0x1f0] sm:$0xff] }
 0xb15   :  { %10681 = vrsqrt.f32 %v7213_v3  ;;  %v7214_v60 = vadd.f32 1e-05, %v7181_v42 }
 0xb16   :  { %v7338_v18 = vmul.f32 %v7306_v36, %v7290_v23  ;;  %v7325_v35 = vmul.f32 %v7309_v17, %v7244_v10  ;;  %v7277_v58 = vmul.f32 %v7244_v10, %v14026_v45  ;;  %v7363_v1 = vadd.f32 %v7362_v9, %v7361_v63 }
 0xb17   :  { %v10680_v48 = vpop.eup %10679  ;;  %10683 = vrsqrt.f32 %v7214_v60 }
 0xb18   :  { %v7243_v40 = vmul.f32 %v10680_v48, %v7711_v29  ;;  %7455 = vperm.xlu0 %10555, %v7325_v35   ;;  %v7364_v39 = vsel %vm7344_vm1, %v7338_v18, 0.0  ;;  %v7293_v41 = vsub.f32 %v7728_v16, %v7277_v58  ;;  %v7730_v29 = vld [vmem:[%s14236_s4 + $0x1f8] sm:$0xff]  ;;  %v7310_v18 = vld [vmem:[%s14237_s5 + $0x70] sm:$0xff] }
 0xb19   :  { %v7365_v45 = vadd.f32 %v7364_v39, %v7363_v1  ;;  %v7320_v39 = vmul.f32 %v14113_v27, %v14070_v6  ;;  %v7322_v1 = vmul.f32 %v7306_v36, %v14115_v21 }
 0xb1a   :  { %v7276_v8 = vmul.f32 %v7243_v40, %v14051_v46  ;;  %v7341_v23 = vmul.f32 %v7309_v17, %v7293_v41  ;;  %v7324_v16 = vmul.f32 %v7308_v26, %v7243_v40 }
 0xb1b   :  { %v7367_v24 = vadd.f32 %v7366_v55, %v7365_v45 }
 0xb1c   :  { %v7292_v33 = vsub.f32 %v7727_v49, %v7276_v8  ;;  %v7318_v8 = vmul.f32 %v14078_v19, %v14030_v28 }
 0xb1e   :  { %v7340_v46 = vmul.f32 %v7308_v26, %v7292_v33 }
 0xb1f   :  { %v10682_v32 = vpop.eup %10681 }
 0xb20   :  { %v7245_v2 = vmul.f32 %v10682_v32, %v7713_v57  ;;  %v7368_v3 = vsel %vm7344_vm1, %v7340_v46, 0.0 }
 0xb21   :  { %v10684_v42 = vpop.eup %10683  ;;  %v7369_v60 = vadd.f32 %v7368_v3, %v7367_v24 }
 0xb22   :  { %v7278_v47 = vmul.f32 %v7245_v2, %v14092_v13  ;;  %v7246_v25 = vmul.f32 %v10684_v42, %v7714_v7  ;;  %v7370_v13 = vsel %vm7344_vm1, %v7341_v23, 0.0  ;;  %v7326_v53 = vmul.f32 %v7310_v18, %v7245_v2 }
 0xb23   :  { %v7371_v17 = vadd.f32 %v7370_v13, %v7369_v60 }
 0xb24   :  { %v7294_v54 = vsub.f32 %v7729_v56, %v7278_v47  ;;  %v7327_v10 = vmul.f32 %v7311_v30, %v7246_v25  ;;  %v7279_v15 = vmul.f32 %v7246_v25, %v14090_v11  ;;  %v7316_v11 = vmul.f32 %v14040_v62, %v13990_v51 }
 0xb26   :  { %v7342_v48 = vmul.f32 %v7310_v18, %v7294_v54  ;;  %7465 = vperm.xlu0 %10555, %v7327_v10   ;;  %v7295_v63 = vsub.f32 %v7730_v29, %v7279_v15 }
 0xb28   :  { %v7343_v35 = vmul.f32 %v7311_v30, %v7295_v63  ;;  %v7372_v12 = vsel %vm7344_vm1, %v7342_v48, 0.0 }
 0xb29   :  { %v7373_v49 = vadd.f32 %v7372_v12, %v7371_v17 }
 0xb2a   :  { %v7374_v9 = vsel %vm7344_vm1, %v7343_v35, 0.0 }
 0xb2b   :  { %v7375_v58 = vadd.f32 %v7374_v9, %v7373_v49 }
 0xb2d   :  { %7376 = vadd.xlane.f32.xlu1 %v7375_v58 }
 0xb3e   :  { %7410 = vperm.xlu1 %10556, %v7316_v11  }
 0xb42   :  { %7420 = vperm.xlu1 %10556, %v7318_v8  }
 0xb46   :  { %7430 = vperm.xlu1 %10556, %v7320_v39  }
 0xb4a   :  { %7440 = vperm.xlu1 %10556, %v7322_v1  }
 0xb4e   :  { %7450 = vperm.xlu1 %10556, %v7324_v16  }
 0xb52   :  { %7460 = vperm.xlu1 %10556, %v7326_v53  }
 0xb63   :  { %v7396_v33 = vpop.permute.xlu1 %7395 }
 0xb64   :  { %v7391_v57 = vpop.permute.xlu0 %7390  ;;  %v7469_v51 = vmul.f32 %v7396_v33, %v13772_v0 }
 0xb65   :  { %v7468_v62 = vmul.f32 %v7391_v57, %v13774_v43 }
 0xb66   :  { %v7485_v19 = vsel %vm1249_vm0, %v7469_v51, 0.0 }
 0xb67   :  { %v7484_v6 = vsel %vm1249_vm0, %v7468_v62, 0.0 }
 0xb68   :  { %v7486_v36 = vadd.f32 %v7485_v19, %v7484_v6 }
 0xb6a   :  { %v7406_v27 = vpop.permute.xlu0 %7405 }
 0xb6b   :  { %v7471_v26 = vmul.f32 %v7406_v27, %v13784_v31 }
 0xb6d   :  { %v7489_v43 = vsel %vm1249_vm0, %v7471_v26, 0.0 }
 0xb6e   :  { %v7401_v45 = vpop.permute.xlu1 %7400 }
 0xb6f   :  { %v7470_v28 = vmul.f32 %v7401_v45, %v13786_v34 }
 0xb71   :  { %v7487_v21 = vsel %vm1249_vm0, %v7470_v28, 0.0 }
 0xb72   :  { %v7488_v46 = vadd.f32 %v7487_v21, %v7486_v36  ;;  %v7416_v32 = vpop.permute.xlu0 %7415 }
 0xb73   :  { %v7473_v34 = vmul.f32 %v7416_v32, %v13792_v22 }
 0xb74   :  { %v7490_v42 = vadd.f32 %v7489_v43, %v7488_v46 }
 0xb75   :  { %v7493_v31 = vsel %vm1249_vm0, %v7473_v34, 0.0 }
 0xb7f   :  { %v7426_v3 = vpop.permute.xlu0 %7425 }
 0xb80   :  { %v7475_v23 = vmul.f32 %v7426_v3, %v13814_v50 }
 0xb82   :  { %v7497_v48 = vsel %vm1249_vm0, %v7475_v23, 0.0 }
 0xb89   :  { %v7436_v60 = vpop.permute.xlu0 %7435 }
 0xb8a   :  { %v7477_v63 = vmul.f32 %v7436_v60, %v13822_v20 }
 0xb8c   :  { %v7501_v12 = vsel %vm1249_vm0, %v7477_v63, 0.0 }
 0xb8f   :  { %v7446_v49 = vpop.permute.xlu0 %7445 }
 0xb90   :  { %v7479_v8 = vmul.f32 %v7446_v49, %v13836_v38 }
 0xb92   :  { %v7505_v1 = vsel %vm1249_vm0, %v7479_v8, 0.0 }
 0xb97   :  { %v7456_v16 = vpop.permute.xlu0 %7455 }
 0xb98   :  { %v7481_v45 = vmul.f32 %v7456_v16, %v13850_v14 }
 0xb9a   :  { %v7509_v62 = vsel %vm1249_vm0, %v7481_v45, 0.0 }
 0xba5   :  { %v7466_v28 = vpop.permute.xlu0 %7465 }
 0xbba   :  { %v7377_v40 = vpop.xlane.xlu1 %7376 }
 0xbbb   :  { %v7378_v41 = vrot.slane %v7377_v40, 4 }
 0xbbd   :  { %v7379_v7 = vadd.f32 %v7378_v41, %v7377_v40 }
 0xbbe   :  { %v7411_v0 = vpop.permute.xlu1 %7410 }
 0xbbf   :  { %v7380_v2 = vrot.slane %v7379_v7, 2  ;;  %v7472_v55 = vmul.f32 %v7411_v0, %v13799_v44  ;;  %v7385_v44 = vld [vmem:[#allocation2] sm:$0x1] }
 0xbc1   :  { %v7491_v56 = vsel %vm1249_vm0, %v7472_v55, 0.0  ;;  %v7381_v30 = vadd.f32 %v7380_v2, %v7379_v7 }
 0xbc2   :  { %v7492_v24 = vadd.f32 %v7491_v56, %v7490_v42  ;;  %v7421_v47 = vpop.permute.xlu1 %7420 }
 0xbc3   :  { %v7474_v25 = vmul.f32 %v7421_v47, %v13816_v61  ;;  %v7382_v29 = vrot.slane %v7381_v30, 1 }
 0xbc4   :  { %v7494_v54 = vadd.f32 %v7493_v31, %v7492_v24 }
 0xbc5   :  { %v7495_v22 = vsel %vm1249_vm0, %v7474_v25, 0.0  ;;  %v7383_v10 = vadd.f32 %v7382_v29, %v7381_v30 }
 0xbc6   :  { %v7496_v15 = vadd.f32 %v7495_v22, %v7494_v54  ;;  %v7431_v18 = vpop.permute.xlu1 %7430 }
 0xbc7   :  { %v7476_v13 = vmul.f32 %v7431_v18, %v13829_v4  ;;  %10549 = vpush %v7383_v10 }
 0xbc8   :  { %v7498_v17 = vadd.f32 %v7497_v48, %v7496_v15  ;;  %10551 = vpush %v7385_v44 }
 0xbc9   :  { %v7499_v50 = vsel %vm1249_vm0, %v7476_v13, 0.0 }
 0xbca   :  { %v7500_v61 = vadd.f32 %v7499_v50, %v7498_v17  ;;  %v7441_v35 = vpop.permute.xlu1 %7440 }
 0xbcb   :  { %v7478_v9 = vmul.f32 %v7441_v35, %v13843_v5 }
 0xbcc   :  { %v7502_v58 = vadd.f32 %v7501_v12, %v7500_v61 }
 0xbcd   :  { %v7503_v11 = vsel %vm1249_vm0, %v7478_v9, 0.0 }
 0xbce   :  { %v7451_v20 = vpop.permute.xlu1 %7450  ;;  %v7504_v39 = vadd.f32 %v7503_v11, %v7502_v58 }
 0xbcf   :  { %v7480_v4 = vmul.f32 %v7451_v20, %v13857_v37  ;;  %v7483_v37 = vmul.f32 %v7466_v28, %v13869_v59 }
 0xbd0   :  { %v7506_v53 = vadd.f32 %v7505_v1, %v7504_v39 }
 0xbd1   :  { %v7507_v33 = vsel %vm1249_vm0, %v7480_v4, 0.0  ;;  %v7513_v27 = vsel %vm1249_vm0, %v7483_v37, 0.0 }
 0xbd2   :  { %v7461_v57 = vpop.permute.xlu1 %7460  ;;  %v7508_v51 = vadd.f32 %v7507_v33, %v7506_v53 }
 0xbd3   :  { %v7482_v5 = vmul.f32 %v7461_v57, %v13864_v52 }
 0xbd4   :  { %v7510_v38 = vadd.f32 %v7509_v62, %v7508_v51 }
 0xbd5   :  { %v7511_v19 = vsel %vm1249_vm0, %v7482_v5, 0.0 }
 0xbd6   :  { %v7512_v6 = vadd.f32 %v7511_v19, %v7510_v38 }
 0xbd8   :  { %v7514_v21 = vadd.f32 %v7513_v27, %v7512_v6 }
 0xbda   :  { %v7515_v36 = vrot.slane %v7514_v21, 4 }
 0xbdc   :  { %v7516_v40 = vadd.f32 %v7515_v36, %v7514_v21 }
 0xbde   :  { %v7517_v26 = vrot.slane %v7516_v40, 2 }
 0xbe0   :  { %v7518_v41 = vadd.f32 %v7517_v26, %v7516_v40 }
 0xbe2   :  { %v7519_v14 = vrot.slane %v7518_v41, 1 }
 0xbe4   :  { %v7520_v52 = vadd.f32 %v7519_v14, %v7518_v41 }
 0xbf8   :  { %s10550_s4 = spop %10549 }
 0xbf9   :  { %s10552_s5 = spop %10551 }
 0xbfa   :  { %s7387_s12 = sadd.f32 %s10552_s5, %s10550_s4 }
 0xbfc   :  { %v7521_v46 = vstv %s7387_s12 }
 0xbfd   :  { %v7522_v32 = vadd.f32 %v7521_v46, %v7520_v52 }
 0xbff   :  { %7524 = vst.msk [vmem:[#allocation3] sm:$0x1] %vm7523_vm2, %v7522_v32 }
 0xc00   :  { %10696 = shalt.err (!%p10693_p4)
}
 0xc01   :  { %s10697_s19 = scalar_lea.hbm %s14239_s7, 16 }
 0xc02   :  { %p10698_p5 = scmp.ne.s32.totalorder %s14239_s7, %s10697_s19  ;;  %p10701_p6 = scmp.lt.u32.totalorder %s10697_s19, %s14239_s7 }
 0xc04   :  { %p10703_p7 = pnand %p10701_p6, %p10698_p5 }
 0xc06   :  { %10706 = shalt.err (!%p10703_p7)
}
 0xc07   :  { %7534 = dma.vmem_to_hbm [thread:$0]  %s7532_s14, 16, %s14239_s7, [#allocation4]  }
 0xc08   :  { %10707 = dma.done.wait [#allocation4], 16  }
 0xc09   :  { %10708 = vsyncadd [#allocation4], 4294967280 }
 0xc0a   :  { %7538 = vsyncpa [#allocation4], 1 }

</bundles_post_ra>
